<compile_context>
chip_gen: v6e
topology: v6e:2x2x1
jax: 0.10.0
libtpu: 0.0.40
codegen_flags: <defaults>
</compile_context>

<pallas_src>
import functools

import jax
import jax.numpy as jnp
from jax import lax
from jax.experimental import pallas as pl
from jax.experimental.pallas import tpu as pltpu


MXU_DTYPE = jnp.bfloat16   # MXU input dtype; accumulation is always f32.
FC_K_TILE = 2688           # fused-FC K tile: K=5184 -> Kp=5376 -> 2 K steps.


def _round_up(x, m):
    return ((x + m - 1) // m) * m


def _pad2d(x, rows, cols):
    r, c = x.shape
    if (r, c) == (rows, cols):
        return x
    return jnp.pad(x, ((0, rows - r), (0, cols - c)))


def _pick_m_tiling(m, *, align=16, max_tile=512, split_threshold=128):
    """Return (tm, Mp).  Prefer >=2 M tiles (v7x megacore) once M is big."""
    m_aligned = _round_up(m, align)
    if m_aligned < split_threshold:
        return m_aligned, m_aligned
    ntiles = max(2, -(-m_aligned // max_tile))
    tm = _round_up(-(-m // ntiles), align)
    return tm, tm * ntiles


# ---------------------------------------------------------------------------
# Kernel 1: tiled matmul + (bias-initialised accumulator) + optional ReLU.
# Grid = (M tiles [parallel], K tiles [reduction, arbitrary, innermost]).
# ---------------------------------------------------------------------------
def _matmul_bias_act_kernel(x_ref, w_ref, b_ref, o_ref, acc_ref, *, apply_relu):
    k = pl.program_id(1)

    @pl.when(k == 0)
    def _():  # bias-initialised accumulator: no bias add in the finalize
        acc_ref[...] = jnp.broadcast_to(b_ref[...], acc_ref.shape)

    acc_ref[...] += jnp.dot(x_ref[...], w_ref[...],
                            preferred_element_type=jnp.float32)

    @pl.when(k == pl.num_programs(1) - 1)
    def _():
        acc = acc_ref[...]
        if apply_relu:
            acc = jnp.maximum(acc, 0.0)
        o_ref[...] = acc.astype(o_ref.dtype)


def matmul_bias_act(x, w_p, b_p, *, apply_relu, out_dtype, tk=None):
    """act(x @ w + b) with PRE-padded bf16 weights w_p:(Kp,Np), b_p:(1,Np) f32.
    Only the (small) activation is padded / cast inside the jitted path."""
    m, k_dim = x.shape
    kp, np_ = w_p.shape
    assert kp >= k_dim and kp % 128 == 0 and np_ % 128 == 0

    if tk is None or tk >= kp or kp % tk != 0:
        tk = kp
    tm, mp = _pick_m_tiling(m)

    xp = _pad2d(x, mp, kp).astype(MXU_DTYPE)

    out = pl.pallas_call(
        functools.partial(_matmul_bias_act_kernel, apply_relu=apply_relu),
        out_shape=jax.ShapeDtypeStruct((mp, np_), out_dtype),
        grid=(mp // tm, kp // tk),
        in_specs=[
            pl.BlockSpec((tm, tk), lambda i, k: (i, k)),
            pl.BlockSpec((tk, np_), lambda i, k: (k, 0)),
            pl.BlockSpec((1, np_), lambda i, k: (0, 0)),
        ],
        out_specs=pl.BlockSpec((tm, np_), lambda i, k: (i, 0)),
        scratch_shapes=[pltpu.VMEM((tm, np_), jnp.float32)],
        compiler_params=pltpu.CompilerParams(
            dimension_semantics=("parallel", "arbitrary")),
    )(xp, w_p, b_p)
    return out[:m]


# ---------------------------------------------------------------------------
# Kernel 2: fused fc1 (K-tiled, VMEM-accumulated) + ReLU + fc2 head.
# The 512-wide hidden activation never leaves VMEM.
# ---------------------------------------------------------------------------
def _fused_fc_kernel(h_ref, w1_ref, b1_ref, w2_ref, b2_ref, o_ref, hid_ref):
    k = pl.program_id(1)

    @pl.when(k == 0)
    def _():  # fc1 bias folded into the accumulator init
        hid_ref[...] = jnp.broadcast_to(b1_ref[...], hid_ref.shape)

    hid_ref[...] += jnp.dot(h_ref[...], w1_ref[...],
                            preferred_element_type=jnp.float32)

    @pl.when(k == pl.num_programs(1) - 1)
    def _():
        hid = jnp.maximum(hid_ref[...], 0.0)                      # fc1 ReLU
        q = jnp.dot(hid.astype(w2_ref.dtype), w2_ref[...],
                    preferred_element_type=jnp.float32) + b2_ref[...]
        o_ref[...] = q.astype(o_ref.dtype)


def fused_fc(h, w1_p, b1_p, w2_p, b2_p, *, tk=FC_K_TILE):
    """q = relu(h @ w1 + b1) @ w2 + b2 in ONE pallas_call.
    w1_p:(Kp,H) / w2_p:(H,Np) pre-padded bf16; biases (1,*) f32."""
    m, k_dim = h.shape
    kp, hidden = w1_p.shape
    hidden2, np_ = w2_p.shape
    assert hidden == hidden2 and kp >= k_dim and kp % 128 == 0 and np_ % 128 == 0

    if tk >= kp or kp % tk != 0:
        tk = kp
    tm, mp = _pick_m_tiling(m)

    hp = _pad2d(h, mp, kp).astype(MXU_DTYPE)

    out = pl.pallas_call(
        _fused_fc_kernel,
        out_shape=jax.ShapeDtypeStruct((mp, np_), jnp.float32),
        grid=(mp // tm, kp // tk),
        in_specs=[
            pl.BlockSpec((tm, tk), lambda i, k: (i, k)),      # activations
            pl.BlockSpec((tk, hidden), lambda i, k: (k, 0)),  # fc1 w (K-tiled)
            pl.BlockSpec((1, hidden), lambda i, k: (0, 0)),   # fc1 bias (resident)
            pl.BlockSpec((hidden, np_), lambda i, k: (0, 0)), # fc2 w (resident)
            pl.BlockSpec((1, np_), lambda i, k: (0, 0)),      # fc2 bias (resident)
        ],
        out_specs=pl.BlockSpec((tm, np_), lambda i, k: (i, 0)),
        scratch_shapes=[pltpu.VMEM((tm, hidden), jnp.float32)],
        compiler_params=pltpu.CompilerParams(
            dimension_semantics=("parallel", "arbitrary")),
    )(hp, w1_p, b1_p, w2_p, b2_p)
    return out[:m]


# ---------------------------------------------------------------------------
# Conv layers = NHWC im2col (XLA glue) + Pallas matmul kernel.
# ---------------------------------------------------------------------------
def _im2col_nhwc(x, kh, kw, stride):
    """x: (B,H,W,C) -> (B*oh*ow, kh*kw*C); patch feature order (KH, KW, C)."""
    b, h, w, c = x.shape
    oh = (h - kh) // stride + 1
    ow = (w - kw) // stride + 1
    cols = []
    for i in range(kh):
        for j in range(kw):
            cols.append(x[:, i:i + stride * oh:stride,
                          j:j + stride * ow:stride, :])
    patches = jnp.stack(cols, axis=3)                  # (B, oh, ow, kh*kw, C)
    return patches.reshape(b * oh * ow, kh * kw * c), oh, ow


def conv2d_relu_nhwc(x, w_p, b_p, kh, kw, stride, out_channels):
    """Valid conv on NHWC input via im2col + Pallas matmul.  Returns NHWC bf16."""
    b = x.shape[0]
    patches, oh, ow = _im2col_nhwc(x, kh, kw, stride)
    y = matmul_bias_act(patches, w_p, b_p, apply_relu=True, out_dtype=MXU_DTYPE)
    return y[:, :out_channels].reshape(b, oh, ow, out_channels)


# ---------------------------------------------------------------------------
# Parameters (PyTorch layout) + ONE-TIME TPU-friendly layout/pad/bf16 prep.
# ---------------------------------------------------------------------------
def dqn_init(key, n_actions):
    """Synthetic params, PyTorch layouts: Conv2d (O,C,KH,KW); Linear stored
    as (in,out) with the "in" index in torch's NCHW (C,H,W) flatten order."""
    ks = jax.random.split(key, 8)

    def u(k, shape, fan_in):
        bound = 1.0 / jnp.sqrt(jnp.float32(fan_in))
        return jax.random.uniform(k, shape, jnp.float32, -bound, bound)

    return {
        "conv1_w": u(ks[0], (32, 1, 8, 8), 1 * 8 * 8),
        "conv1_b": u(ks[1], (32,), 1 * 8 * 8),
        "conv2_w": u(ks[2], (64, 32, 4, 4), 32 * 4 * 4),
        "conv2_b": u(ks[3], (64,), 32 * 4 * 4),
        "fc1_w":   u(ks[4], (64 * 9 * 9, 512), 64 * 9 * 9),
        "fc1_b":   u(ks[5], (512,), 64 * 9 * 9),
        "fc2_w":   u(ks[6], (512, n_actions), 512),
        "fc2_b":   u(ks[7], (n_actions,), 512),
    }


def prepare_params(params):
    """One-time conversion OUTSIDE the jitted forward:
      * conv weights (O,C,KH,KW) -> (KH*KW*C, O), matching NHWC im2col order;
      * fc1 rows permuted from torch's (C,H,W) flatten order to (H,W,C);
      * everything zero-padded to MXU-friendly shapes (K mult of 128 / FC
        tile, N mult of 128) and cast to bf16; biases to (1, Np) f32.
    The jitted forward therefore does NO weight padding / casting."""

    def conv_w(w):
        o = w.shape[0]
        m = jnp.transpose(w, (2, 3, 1, 0)).reshape(-1, o)
        return _pad2d(m, _round_up(m.shape[0], 128),
                      _round_up(o, 128)).astype(MXU_DTYPE)

    def bias(b):
        return _pad2d(b.reshape(1, -1), 1,
                      _round_up(b.shape[0], 128)).astype(jnp.float32)

    f1 = (params["fc1_w"].reshape(64, 9, 9, 512)
          .transpose(1, 2, 0, 3).reshape(64 * 9 * 9, 512))
    f1 = _pad2d(f1, _round_up(f1.shape[0], FC_K_TILE), 512).astype(MXU_DTYPE)
    f2 = _pad2d(params["fc2_w"], 512,
                _round_up(params["fc2_w"].shape[1], 128)).astype(MXU_DTYPE)

    return {
        "conv1_w": conv_w(params["conv1_w"]), "conv1_b": bias(params["conv1_b"]),
        "conv2_w": conv_w(params["conv2_w"]), "conv2_b": bias(params["conv2_b"]),
        "fc1_w": f1, "fc1_b": bias(params["fc1_b"]),
        "fc2_w": f2, "fc2_b": bias(params["fc2_b"]),
    }


@functools.partial(jax.jit, static_argnames=("n_actions",))
def dqn_forward(tparams, x, *, n_actions):
    """x: (B, 1, 84, 84) NCHW float32 -> Q-values (B, n_actions) float32."""
    b = x.shape[0]
    x = jnp.transpose(x, (0, 2, 3, 1))                    # NHWC (free: C == 1)
    h = conv2d_relu_nhwc(x, tparams["conv1_w"], tparams["conv1_b"], 8, 8, 4, 32)
    h = conv2d_relu_nhwc(h, tparams["conv2_w"], tparams["conv2_b"], 4, 4, 2, 64)
    h = h.reshape(b, -1)                                  # (B, 9*9*64), (H,W,C)
    q = fused_fc(h, tparams["fc1_w"], tparams["fc1_b"],
                 tparams["fc2_w"], tparams["fc2_b"])
    return q[:, :n_actions]


# ---------------------------------------------------------------------------
# Pure-JAX f32 reference (PyTorch semantics) for validation.
# ---------------------------------------------------------------------------
def dqn_reference(params, x):
    hi = lax.Precision.HIGHEST
    y = lax.conv_general_dilated(x, params["conv1_w"], (4, 4), "VALID",
                                 dimension_numbers=("NCHW", "OIHW", "NCHW"),
                                 precision=hi)
    y = jnp.maximum(y + params["conv1_b"].reshape(1, -1, 1, 1), 0.0)
    y = lax.conv_general_dilated(y, params["conv2_w"], (2, 2), "VALID",
                                 dimension_numbers=("NCHW", "OIHW", "NCHW"),
                                 precision=hi)
    y = jnp.maximum(y + params["conv2_b"].reshape(1, -1, 1, 1), 0.0)
    y = y.reshape(y.shape[0], -1)                         # torch (C,H,W) flatten
    y = jnp.maximum(jnp.dot(y, params["fc1_w"], precision=hi)
                    + params["fc1_b"], 0.0)
    return jnp.dot(y, params["fc2_w"], precision=hi) + params["fc2_b"]


if __name__ == "__main__":
    key = jax.random.PRNGKey(0)
    k_param, k_x = jax.random.split(key)

    n_actions = 4
    batch = 2
    params = dqn_init(k_param, n_actions)
    tparams = prepare_params(params)       # one-time layout / pad / bf16 prep
    x = jax.random.normal(k_x, (batch, 1, 84, 84), jnp.float32)

    q = dqn_forward(tparams, x, n_actions=n_actions)
    q = jax.block_until_ready(q)
    assert q.shape == (batch, n_actions), q.shape
    assert bool(jnp.all(jnp.isfinite(q)))

    # Validate against the pure-JAX f32 reference: catches im2col ordering and
    # fc1 row-permutation bugs that an isfinite check would miss.
    q_ref = jax.block_until_ready(jax.jit(dqn_reference)(params, x))
    err = float(jnp.max(jnp.abs(q - q_ref)))
    scale = float(jnp.max(jnp.abs(q_ref))) + 1e-6
    assert err <= 0.1 * scale + 1e-3, (err, scale)

    print("KERNEL_OK")
</pallas_src>

<mosaic_0001>
module attributes {stable_mosaic.version = 11 : i64} {
  func.func @_matmul_bias_act_kernel(%arg0: i32, %arg1: i32, %arg2: memref<400x128xbf16, #tpu.memory_space<vmem>>, %arg3: memref<128x128xbf16, #tpu.memory_space<vmem>>, %arg4: memref<1x128xf32, #tpu.memory_space<vmem>>, %arg5: memref<400x128xbf16, #tpu.memory_space<vmem>>, %arg6: memref<400x128xf32, #tpu.memory_space<vmem>>) attributes {dimension_semantics = [#tpu.dimension_semantics<parallel>, #tpu.dimension_semantics<arbitrary>], iteration_bounds = array<i64: 2, 1>, scalar_prefetch = 0 : i64, scratch_operands = 1 : i64, tpu.core_type = #tpu.core_type<tc>, window_params = [{transform_indices = @transform_0, window_bounds = array<i64: 400, 128>}, {transform_indices = @transform_1, window_bounds = array<i64: 128, 128>}, {pipeline_mode = #tpu.pipeline_mode<synchronous>, transform_indices = @transform_2, window_bounds = array<i64: 1, 128>}, {transform_indices = @transform_3, window_bounds = array<i64: 400, 128>}]} {
    %c0_i32 = arith.constant 0 : i32
    %0 = arith.cmpi eq, %arg1, %c0_i32 : i32
    %1 = arith.extui %0 : i1 to i32
    %c0_i32_0 = arith.constant 0 : i32
    %2 = arith.cmpi ne, %1, %c0_i32_0 : i32
    scf.if %2 {
      %c0_10 = arith.constant 0 : index
      %c0_11 = arith.constant 0 : index
      %12 = vector.load %arg4[%c0_10, %c0_11] : memref<1x128xf32, #tpu.memory_space<vmem>>, vector<1x128xf32>
      %13 = vector.shape_cast %12 : vector<1x128xf32> to vector<1x128xf32>
      %14 = vector.broadcast %13 : vector<1x128xf32> to vector<400x128xf32>
      %c0_12 = arith.constant 0 : index
      %c0_13 = arith.constant 0 : index
      %15 = vector.load %arg6[%c0_12, %c0_13] : memref<400x128xf32, #tpu.memory_space<vmem>>, vector<400x128xf32>
      tpu.vector_store %arg6[%c0_12, %c0_13], %14 {strides = array<i32>} : memref<400x128xf32, #tpu.memory_space<vmem>>, vector<400x128xf32>,
    } else {
    }
    %c0 = arith.constant 0 : index
    %c0_1 = arith.constant 0 : index
    %3 = vector.load %arg6[%c0, %c0_1] : memref<400x128xf32, #tpu.memory_space<vmem>>, vector<400x128xf32>
    %c0_2 = arith.constant 0 : index
    %c0_3 = arith.constant 0 : index
    %4 = vector.load %arg2[%c0_2, %c0_3] : memref<400x128xbf16, #tpu.memory_space<vmem>>, vector<400x128xbf16>
    %c0_4 = arith.constant 0 : index
    %c0_5 = arith.constant 0 : index
    %5 = vector.load %arg3[%c0_4, %c0_5] : memref<128x128xbf16, #tpu.memory_space<vmem>>, vector<128x128xbf16>
    %cst = arith.constant dense<0.000000e+00> : vector<400x128xf32>
    %6 = tpu.matmul %4, %5, %cst {dimension_numbers = #tpu.dot_dimension_numbers<[1], [0], [0], [1], [0, 0, 1, 1], [], []>} : vector<400x128xbf16>, vector<128x128xbf16>, vector<400x128xf32> -> vector<400x128xf32>
    %7 = arith.addf %3, %6 : vector<400x128xf32>
    %c0_6 = arith.constant 0 : index
    %c0_7 = arith.constant 0 : index
    %8 = vector.load %arg6[%c0_6, %c0_7] : memref<400x128xf32, #tpu.memory_space<vmem>>, vector<400x128xf32>
    tpu.vector_store %arg6[%c0_6, %c0_7], %7 {strides = array<i32>} : memref<400x128xf32, #tpu.memory_space<vmem>>, vector<400x128xf32>,
    %c0_i32_8 = arith.constant 0 : i32
    %9 = arith.cmpi eq, %arg1, %c0_i32_8 : i32
    %10 = arith.extui %9 : i1 to i32
    %c0_i32_9 = arith.constant 0 : i32
    %11 = arith.cmpi ne, %10, %c0_i32_9 : i32
    scf.if %11 {
      %c0_10 = arith.constant 0 : index
      %c0_11 = arith.constant 0 : index
      %12 = vector.load %arg6[%c0_10, %c0_11] : memref<400x128xf32, #tpu.memory_space<vmem>>, vector<400x128xf32>
      %cst_12 = arith.constant 0.000000e+00 : f32
      %13 = vector.broadcast %cst_12 : f32 to vector<400x128xf32>
      %14 = arith.maximumf %12, %13 : vector<400x128xf32>
      %15 = arith.truncf %14 : vector<400x128xf32> to vector<400x128xbf16>
      %c0_13 = arith.constant 0 : index
      %c0_14 = arith.constant 0 : index
      %16 = vector.load %arg5[%c0_13, %c0_14] : memref<400x128xbf16, #tpu.memory_space<vmem>>, vector<400x128xbf16>
      tpu.vector_store %arg5[%c0_13, %c0_14], %15 {strides = array<i32>} : memref<400x128xbf16, #tpu.memory_space<vmem>>, vector<400x128xbf16>,
    } else {
    }
    return
  }
  func.func @transform_0(%arg0: i32, %arg1: i32) -> (i32, i32) {
    %c0_i32 = arith.constant 0 : i32
    return %arg0, %arg1 : i32, i32
  }
  func.func @transform_1(%arg0: i32, %arg1: i32) -> (i32, i32) {
    %c0_i32 = arith.constant 0 : i32
    %c0_i32_0 = arith.constant 0 : i32
    return %arg1, %c0_i32 : i32, i32
  }
  func.func @transform_2(%arg0: i32, %arg1: i32) -> (i32, i32) {
    %c0_i32 = arith.constant 0 : i32
    %c0_i32_0 = arith.constant 0 : i32
    %c0_i32_1 = arith.constant 0 : i32
    return %c0_i32, %c0_i32_0 : i32, i32
  }
  func.func @transform_3(%arg0: i32, %arg1: i32) -> (i32, i32) {
    %c0_i32 = arith.constant 0 : i32
    %c0_i32_0 = arith.constant 0 : i32
    return %arg0, %c0_i32 : i32, i32
  }
}

module attributes {stable_mosaic.version = 11 : i64} {
  func.func @_matmul_bias_act_kernel(%arg0: i32, %arg1: i32, %arg2: memref<96x512xbf16, #tpu.memory_space<vmem>>, %arg3: memref<512x128xbf16, #tpu.memory_space<vmem>>, %arg4: memref<1x128xf32, #tpu.memory_space<vmem>>, %arg5: memref<96x128xbf16, #tpu.memory_space<vmem>>, %arg6: memref<96x128xf32, #tpu.memory_space<vmem>>) attributes {dimension_semantics = [#tpu.dimension_semantics<parallel>, #tpu.dimension_semantics<arbitrary>], iteration_bounds = array<i64: 2, 1>, scalar_prefetch = 0 : i64, scratch_operands = 1 : i64, tpu.core_type = #tpu.core_type<tc>, window_params = [{transform_indices = @transform_0, window_bounds = array<i64: 96, 512>}, {transform_indices = @transform_1, window_bounds = array<i64: 512, 128>}, {pipeline_mode = #tpu.pipeline_mode<synchronous>, transform_indices = @transform_2, window_bounds = array<i64: 1, 128>}, {transform_indices = @transform_3, window_bounds = array<i64: 96, 128>}]} {
    %c0_i32 = arith.constant 0 : i32
    %0 = arith.cmpi eq, %arg1, %c0_i32 : i32
    %1 = arith.extui %0 : i1 to i32
    %c0_i32_0 = arith.constant 0 : i32
    %2 = arith.cmpi ne, %1, %c0_i32_0 : i32
    scf.if %2 {
      %c0_10 = arith.constant 0 : index
      %c0_11 = arith.constant 0 : index
      %12 = vector.load %arg4[%c0_10, %c0_11] : memref<1x128xf32, #tpu.memory_space<vmem>>, vector<1x128xf32>
      %13 = vector.shape_cast %12 : vector<1x128xf32> to vector<1x128xf32>
      %14 = vector.broadcast %13 : vector<1x128xf32> to vector<96x128xf32>
      %c0_12 = arith.constant 0 : index
      %c0_13 = arith.constant 0 : index
      %15 = vector.load %arg6[%c0_12, %c0_13] : memref<96x128xf32, #tpu.memory_space<vmem>>, vector<96x128xf32>
      tpu.vector_store %arg6[%c0_12, %c0_13], %14 {strides = array<i32>} : memref<96x128xf32, #tpu.memory_space<vmem>>, vector<96x128xf32>,
    } else {
    }
    %c0 = arith.constant 0 : index
    %c0_1 = arith.constant 0 : index
    %3 = vector.load %arg6[%c0, %c0_1] : memref<96x128xf32, #tpu.memory_space<vmem>>, vector<96x128xf32>
    %c0_2 = arith.constant 0 : index
    %c0_3 = arith.constant 0 : index
    %4 = vector.load %arg2[%c0_2, %c0_3] : memref<96x512xbf16, #tpu.memory_space<vmem>>, vector<96x512xbf16>
    %c0_4 = arith.constant 0 : index
    %c0_5 = arith.constant 0 : index
    %5 = vector.load %arg3[%c0_4, %c0_5] : memref<512x128xbf16, #tpu.memory_space<vmem>>, vector<512x128xbf16>
    %cst = arith.constant dense<0.000000e+00> : vector<96x128xf32>
    %6 = tpu.matmul %4, %5, %cst {dimension_numbers = #tpu.dot_dimension_numbers<[1], [0], [0], [1], [0, 0, 1, 1], [], []>} : vector<96x512xbf16>, vector<512x128xbf16>, vector<96x128xf32> -> vector<96x128xf32>
    %7 = arith.addf %3, %6 : vector<96x128xf32>
    %c0_6 = arith.constant 0 : index
    %c0_7 = arith.constant 0 : index
    %8 = vector.load %arg6[%c0_6, %c0_7] : memref<96x128xf32, #tpu.memory_space<vmem>>, vector<96x128xf32>
    tpu.vector_store %arg6[%c0_6, %c0_7], %7 {strides = array<i32>} : memref<96x128xf32, #tpu.memory_space<vmem>>, vector<96x128xf32>,
    %c0_i32_8 = arith.constant 0 : i32
    %9 = arith.cmpi eq, %arg1, %c0_i32_8 : i32
    %10 = arith.extui %9 : i1 to i32
    %c0_i32_9 = arith.constant 0 : i32
    %11 = arith.cmpi ne, %10, %c0_i32_9 : i32
    scf.if %11 {
      %c0_10 = arith.constant 0 : index
      %c0_11 = arith.constant 0 : index
      %12 = vector.load %arg6[%c0_10, %c0_11] : memref<96x128xf32, #tpu.memory_space<vmem>>, vector<96x128xf32>
      %cst_12 = arith.constant 0.000000e+00 : f32
      %13 = vector.broadcast %cst_12 : f32 to vector<96x128xf32>
      %14 = arith.maximumf %12, %13 : vector<96x128xf32>
      %15 = arith.truncf %14 : vector<96x128xf32> to vector<96x128xbf16>
      %c0_13 = arith.constant 0 : index
      %c0_14 = arith.constant 0 : index
      %16 = vector.load %arg5[%c0_13, %c0_14] : memref<96x128xbf16, #tpu.memory_space<vmem>>, vector<96x128xbf16>
      tpu.vector_store %arg5[%c0_13, %c0_14], %15 {strides = array<i32>} : memref<96x128xbf16, #tpu.memory_space<vmem>>, vector<96x128xbf16>,
    } else {
    }
    return
  }
  func.func @transform_0(%arg0: i32, %arg1: i32) -> (i32, i32) {
    %c0_i32 = arith.constant 0 : i32
    return %arg0, %arg1 : i32, i32
  }
  func.func @transform_1(%arg0: i32, %arg1: i32) -> (i32, i32) {
    %c0_i32 = arith.constant 0 : i32
    %c0_i32_0 = arith.constant 0 : i32
    return %arg1, %c0_i32 : i32, i32
  }
  func.func @transform_2(%arg0: i32, %arg1: i32) -> (i32, i32) {
    %c0_i32 = arith.constant 0 : i32
    %c0_i32_0 = arith.constant 0 : i32
    %c0_i32_1 = arith.constant 0 : i32
    return %c0_i32, %c0_i32_0 : i32, i32
  }
  func.func @transform_3(%arg0: i32, %arg1: i32) -> (i32, i32) {
    %c0_i32 = arith.constant 0 : i32
    %c0_i32_0 = arith.constant 0 : i32
    return %arg0, %c0_i32 : i32, i32
  }
}

module attributes {stable_mosaic.version = 11 : i64} {
  func.func @_fused_fc_kernel(%arg0: i32, %arg1: i32, %arg2: memref<16x2688xbf16, #tpu.memory_space<vmem>>, %arg3: memref<2688x512xbf16, #tpu.memory_space<vmem>>, %arg4: memref<1x512xf32, #tpu.memory_space<vmem>>, %arg5: memref<512x128xbf16, #tpu.memory_space<vmem>>, %arg6: memref<1x128xf32, #tpu.memory_space<vmem>>, %arg7: memref<16x128xf32, #tpu.memory_space<vmem>>, %arg8: memref<16x512xf32, #tpu.memory_space<vmem>>) attributes {dimension_semantics = [#tpu.dimension_semantics<parallel>, #tpu.dimension_semantics<arbitrary>], iteration_bounds = array<i64: 1, 2>, scalar_prefetch = 0 : i64, scratch_operands = 1 : i64, tpu.core_type = #tpu.core_type<tc>, window_params = [{transform_indices = @transform_0, window_bounds = array<i64: 16, 2688>}, {transform_indices = @transform_1, window_bounds = array<i64: 2688, 512>}, {pipeline_mode = #tpu.pipeline_mode<synchronous>, transform_indices = @transform_2, window_bounds = array<i64: 1, 512>}, {pipeline_mode = #tpu.pipeline_mode<synchronous>, transform_indices = @transform_3, window_bounds = array<i64: 512, 128>}, {pipeline_mode = #tpu.pipeline_mode<synchronous>, transform_indices = @transform_4, window_bounds = array<i64: 1, 128>}, {transform_indices = @transform_5, window_bounds = array<i64: 16, 128>}]} {
    %c0_i32 = arith.constant 0 : i32
    %0 = arith.cmpi eq, %arg1, %c0_i32 : i32
    %1 = arith.extui %0 : i1 to i32
    %c0_i32_0 = arith.constant 0 : i32
    %2 = arith.cmpi ne, %1, %c0_i32_0 : i32
    scf.if %2 {
      %c0_9 = arith.constant 0 : index
      %c0_10 = arith.constant 0 : index
      %12 = vector.load %arg4[%c0_9, %c0_10] : memref<1x512xf32, #tpu.memory_space<vmem>>, vector<1x512xf32>
      %13 = vector.shape_cast %12 : vector<1x512xf32> to vector<1x512xf32>
      %14 = vector.broadcast %13 : vector<1x512xf32> to vector<16x512xf32>
      %c0_11 = arith.constant 0 : index
      %c0_12 = arith.constant 0 : index
      %15 = vector.load %arg8[%c0_11, %c0_12] : memref<16x512xf32, #tpu.memory_space<vmem>>, vector<16x512xf32>
      tpu.vector_store %arg8[%c0_11, %c0_12], %14 {strides = array<i32>} : memref<16x512xf32, #tpu.memory_space<vmem>>, vector<16x512xf32>,
    } else {
    }
    %c0 = arith.constant 0 : index
    %c0_1 = arith.constant 0 : index
    %3 = vector.load %arg8[%c0, %c0_1] : memref<16x512xf32, #tpu.memory_space<vmem>>, vector<16x512xf32>
    %c0_2 = arith.constant 0 : index
    %c0_3 = arith.constant 0 : index
    %4 = vector.load %arg2[%c0_2, %c0_3] : memref<16x2688xbf16, #tpu.memory_space<vmem>>, vector<16x2688xbf16>
    %c0_4 = arith.constant 0 : index
    %c0_5 = arith.constant 0 : index
    %5 = vector.load %arg3[%c0_4, %c0_5] : memref<2688x512xbf16, #tpu.memory_space<vmem>>, vector<2688x512xbf16>
    %cst = arith.constant dense<0.000000e+00> : vector<16x512xf32>
    %6 = tpu.matmul %4, %5, %cst {dimension_numbers = #tpu.dot_dimension_numbers<[1], [0], [0], [1], [0, 0, 1, 1], [], []>} : vector<16x2688xbf16>, vector<2688x512xbf16>, vector<16x512xf32> -> vector<16x512xf32>
    %7 = arith.addf %3, %6 : vector<16x512xf32>
    %c0_6 = arith.constant 0 : index
    %c0_7 = arith.constant 0 : index
    %8 = vector.load %arg8[%c0_6, %c0_7] : memref<16x512xf32, #tpu.memory_space<vmem>>, vector<16x512xf32>
    tpu.vector_store %arg8[%c0_6, %c0_7], %7 {strides = array<i32>} : memref<16x512xf32, #tpu.memory_space<vmem>>, vector<16x512xf32>,
    %c1_i32 = arith.constant 1 : i32
    %9 = arith.cmpi eq, %arg1, %c1_i32 : i32
    %10 = arith.extui %9 : i1 to i32
    %c0_i32_8 = arith.constant 0 : i32
    %11 = arith.cmpi ne, %10, %c0_i32_8 : i32
    scf.if %11 {
      %c0_9 = arith.constant 0 : index
      %c0_10 = arith.constant 0 : index
      %12 = vector.load %arg8[%c0_9, %c0_10] : memref<16x512xf32, #tpu.memory_space<vmem>>, vector<16x512xf32>
      %cst_11 = arith.constant 0.000000e+00 : f32
      %13 = vector.broadcast %cst_11 : f32 to vector<16x512xf32>
      %14 = arith.maximumf %12, %13 : vector<16x512xf32>
      %15 = arith.truncf %14 : vector<16x512xf32> to vector<16x512xbf16>
      %c0_12 = arith.constant 0 : index
      %c0_13 = arith.constant 0 : index
      %16 = vector.load %arg5[%c0_12, %c0_13] : memref<512x128xbf16, #tpu.memory_space<vmem>>, vector<512x128xbf16>
      %cst_14 = arith.constant dense<0.000000e+00> : vector<16x128xf32>
      %17 = tpu.matmul %15, %16, %cst_14 {dimension_numbers = #tpu.dot_dimension_numbers<[1], [0], [0], [1], [0, 0, 1, 1], [], []>} : vector<16x512xbf16>, vector<512x128xbf16>, vector<16x128xf32> -> vector<16x128xf32>
      %c0_15 = arith.constant 0 : index
      %c0_16 = arith.constant 0 : index
      %18 = vector.load %arg6[%c0_15, %c0_16] : memref<1x128xf32, #tpu.memory_space<vmem>>, vector<1x128xf32>
      %19 = vector.broadcast %18 : vector<1x128xf32> to vector<16x128xf32>
      %20 = arith.addf %17, %19 : vector<16x128xf32>
      %c0_17 = arith.constant 0 : index
      %c0_18 = arith.constant 0 : index
      %21 = vector.load %arg7[%c0_17, %c0_18] : memref<16x128xf32, #tpu.memory_space<vmem>>, vector<16x128xf32>
      tpu.vector_store %arg7[%c0_17, %c0_18], %20 {strides = array<i32>} : memref<16x128xf32, #tpu.memory_space<vmem>>, vector<16x128xf32>,
    } else {
    }
    return
  }
  func.func @transform_0(%arg0: i32, %arg1: i32) -> (i32, i32) {
    %c0_i32 = arith.constant 0 : i32
    return %arg0, %arg1 : i32, i32
  }
  func.func @transform_1(%arg0: i32, %arg1: i32) -> (i32, i32) {
    %c0_i32 = arith.constant 0 : i32
    %c0_i32_0 = arith.constant 0 : i32
    return %arg1, %c0_i32 : i32, i32
  }
  func.func @transform_2(%arg0: i32, %arg1: i32) -> (i32, i32) {
    %c0_i32 = arith.constant 0 : i32
    %c0_i32_0 = arith.constant 0 : i32
    %c0_i32_1 = arith.constant 0 : i32
    return %c0_i32, %c0_i32_0 : i32, i32
  }
  func.func @transform_3(%arg0: i32, %arg1: i32) -> (i32, i32) {
    %c0_i32 = arith.constant 0 : i32
    %c0_i32_0 = arith.constant 0 : i32
    %c0_i32_1 = arith.constant 0 : i32
    return %c0_i32, %c0_i32_0 : i32, i32
  }
  func.func @transform_4(%arg0: i32, %arg1: i32) -> (i32, i32) {
    %c0_i32 = arith.constant 0 : i32
    %c0_i32_0 = arith.constant 0 : i32
    %c0_i32_1 = arith.constant 0 : i32
    return %c0_i32, %c0_i32_0 : i32, i32
  }
  func.func @transform_5(%arg0: i32, %arg1: i32) -> (i32, i32) {
    %c0_i32 = arith.constant 0 : i32
    %c0_i32_0 = arith.constant 0 : i32
    return %arg0, %c0_i32 : i32, i32
  }
}

</mosaic_0001>

<bundles_post_ra>
// kernel: dqn_forward.3
= control target key start
LH: loop header
LB: loop body
LE: loop exit
PB: predicated region body
PF: predicated region fallthrough
CT: control target
= control target key end

     0   :  { %s1927_s12 = smov 0   ;;  %s1929_s13 = smov 0   ;;  %s2166_s0 = inlined_call_operand.vmem [shape: bf16[800,128], index: 0, kind: input, shape index: {}]   ;;  %s2167_s1 = inlined_call_operand.vmem [shape: bf16[128,128], index: 1, kind: input, shape index: {}]   ;;  %s2168_s2 = inlined_call_operand.vmem [shape: f32[1,128], index: 2, kind: input, shape index: {}]   ;;  %s2169_s3 = inlined_call_operand.vmem [shape: bf16[800,128], index: 3, kind: output, shape index: {}]  }
   0x1   :  { %s1931_s14 = smov 0  }
   0x2 LB: > { %s25_s15 = sadd.s32 1, %s1899_s13  ;;  %p1369_p0 = scmp.ge.s32.totalorder %s1903_s14, 1  ;;  %s1903_s14 = sphi %s1931_s14, %s13_s14   ;;  %s1899_s13 = sphi %s1929_s13, %s2171_s13   ;;  %s1895_s12 = sphi %s1927_s12, %s2170_s12  }
   0x3   : > { %p27_p1 = scmp.ge.s32.totalorder %s25_s15, 2  ;;  %p166_p2 = scmp.lt.s32.totalorder %s1903_s14, 3 }
   0x5   : > { %s2173_s15 = smov (%p27_p1, %s25_s15), 0  ;;  %p167_p3 = pnand %p1369_p0, %p166_p2 }
   0x6   : > { %s198_s20 = smul.u32 (!%p167_p3), 50, %s1895_s12 }
   0x7   : > { %170 = sbr.rel (%p167_p3) target bundleno = 345 (0x159), region = 32 }
   0x8   : > { %p199_p4 = scmp.lt.s32.totalorder (!%p167_p3), %s198_s20, 99 }
   0xc   : > { %v1848_v0 = vld [vmem:[%s2167_s1 + $0x38] sm:$0xff]   ;;  %v1905_v1 = vmov 0.0   ;;  %v1849_v2 = vld [vmem:[%s2167_s1 + $0x30] sm:$0xff]   ;;  %vm1906_vm0 = vmmov 0   ;;  %v1850_v3 = vld [vmem:[%s2167_s1 + $0x28] sm:$0xff]   ;;  %s2175_s20 = smov (!%p199_p4, %s198_s20), 99 }
   0xd   : > { %1690 = vmatprep.subr.bf16.mxu0 %v1905_v1  ;;  %1806 = vmatprep.subr.bf16.mxu1 %v1905_v1  ;;  %s1370_s23 = sshll.u32 %s2175_s20, 2  ;;  %v1851_v4 = vld [vmem:[%s2167_s1 + $0x20] sm:$0xff]   ;;  %v1852_v5 = vld [vmem:[%s2167_s1 + $0x18] sm:$0xff]   ;;  %v1853_v6 = vld [vmem:[%s2167_s1 + $0x10] sm:$0xff]  }
   0xe   : > { %1691 = vmatpush3.bf16.msra.mxu0 %v1848_v0  ;;  %1814 = vmatpush3.bf16.msra.mxu1 %v1848_v0  ;;  %s1972_s26 = scalar_lea.vmem %s2166_s0, %s1370_s23  ;;  %v1854_v7 = vld [vmem:[%s2167_s1 + $0x8] sm:$0xff]   ;;  %v1855_v8 = vld [vmem:[%s2167_s1] sm:$0xff]   ;;  %s2084_s17 = scalar_lea.vmem %s2169_s3, %s1370_s23 }
   0xf   : > { %1692 = vmatprep.subr.bf16.mxu0 %v1905_v1  ;;  %1807 = vmatprep.subr.bf16.mxu1 %v1905_v1  ;;  %v1856_v9 = vld [vmem:[%s1972_s26] sm:$0xff]   ;;  %v1857_v10 = vld [vmem:[%s1972_s26 + $0x68] sm:$0xff]   ;;  %v1859_v12 = vld [vmem:[%s1972_s26 + $0x70] sm:$0xff]  }
  0x10   : > { %1706 = vmatprep.mubr.msk.bf16.mxu0 %vm1906_vm0, %v1905_v1  ;;  %1758 = vmatprep.mubr.msk.bf16.mxu1 %vm1906_vm0, %v1905_v1  ;;  %v1858_v11 = vld [vmem:[%s1972_s26 + $0x8] sm:$0xff]   ;;  %v1860_v13 = vld [vmem:[%s1972_s26 + $0x10] sm:$0xff]   ;;  %v1861_v14 = vld [vmem:[%s1972_s26 + $0x78] sm:$0xff]  }
  0x11   : > { %v1862_v15 = vld [vmem:[%s1972_s26 + $0x18] sm:$0xff]   ;;  %v1863_v16 = vld [vmem:[%s1972_s26 + $0x80] sm:$0xff]   ;;  %v1865_v18 = vld [vmem:[%s1972_s26 + $0x88] sm:$0xff]  }
  0x12   : > { %1693 = vmatpush3.bf16.msra.mxu0 %v1849_v2  ;;  %1815 = vmatpush3.bf16.msra.mxu1 %v1849_v2  ;;  %v1864_v17 = vld [vmem:[%s1972_s26 + $0x20] sm:$0xff]   ;;  %v1866_v19 = vld [vmem:[%s1972_s26 + $0x28] sm:$0xff]   ;;  %v1867_v20 = vld [vmem:[%s1972_s26 + $0x90] sm:$0xff]  }
  0x13   : > { %1694 = vmatprep.subr.bf16.mxu0 %v1905_v1  ;;  %1808 = vmatprep.subr.bf16.mxu1 %v1905_v1  ;;  %v1868_v21 = vld [vmem:[%s1972_s26 + $0x30] sm:$0xff]   ;;  %v1869_v22 = vld [vmem:[%s1972_s26 + $0x98] sm:$0xff]   ;;  %v1871_v24 = vld [vmem:[%s1972_s26 + $0xa0] sm:$0xff]  }
  0x14   : > { %v1870_v23 = vld [vmem:[%s1972_s26 + $0x38] sm:$0xff]   ;;  %v1872_v25 = vld [vmem:[%s1972_s26 + $0x40] sm:$0xff]   ;;  %v1873_v26 = vld [vmem:[%s1972_s26 + $0xa8] sm:$0xff]  }
  0x15   : > { %v1874_v27 = vld [vmem:[%s1972_s26 + $0x48] sm:$0xff]   ;;  %v1875_v28 = vld [vmem:[%s1972_s26 + $0xb0] sm:$0xff]   ;;  %v1877_v30 = vld [vmem:[%s1972_s26 + $0xb8] sm:$0xff]  }
  0x16   : > { %1695 = vmatpush3.bf16.msra.mxu0 %v1850_v3  ;;  %1816 = vmatpush3.bf16.msra.mxu1 %v1850_v3  ;;  %v1876_v29 = vld [vmem:[%s1972_s26 + $0x50] sm:$0xff]   ;;  %v1878_v31 = vld [vmem:[%s1972_s26 + $0x58] sm:$0xff]   ;;  %v1879_v32 = vld [vmem:[%s1972_s26 + $0xc0] sm:$0xff]  }
  0x17   : > { %1696 = vmatprep.subr.bf16.mxu0 %v1905_v1  ;;  %1809 = vmatprep.subr.bf16.mxu1 %v1905_v1  ;;  %v1880_v33 = vld [vmem:[%s1972_s26 + $0x60] sm:$0xff]  }
  0x18   : > { %v2073_v34 = vld [vmem:[%s2168_s2] ss:$0 sm:$0xff] }
  0x1a   : > { %1697 = vmatpush3.bf16.msra.mxu0 %v1851_v4  ;;  %1817 = vmatpush3.bf16.msra.mxu1 %v1851_v4 }
  0x1b   : > { %1698 = vmatprep.subr.bf16.mxu0 %v1905_v1  ;;  %1810 = vmatprep.subr.bf16.mxu1 %v1905_v1 }
  0x1e   : > { %1699 = vmatpush3.bf16.msra.mxu0 %v1852_v5  ;;  %1818 = vmatpush3.bf16.msra.mxu1 %v1852_v5 }
  0x1f   : > { %1700 = vmatprep.subr.bf16.mxu0 %v1905_v1  ;;  %1811 = vmatprep.subr.bf16.mxu1 %v1905_v1 }
  0x22   : > { %1701 = vmatpush3.bf16.msra.mxu0 %v1853_v6  ;;  %1819 = vmatpush3.bf16.msra.mxu1 %v1853_v6 }
  0x23   : > { %1702 = vmatprep.subr.bf16.mxu0 %v1905_v1  ;;  %1812 = vmatprep.subr.bf16.mxu1 %v1905_v1 }
  0x26   : > { %1703 = vmatpush3.bf16.msra.mxu0 %v1854_v7  ;;  %1820 = vmatpush3.bf16.msra.mxu1 %v1854_v7 }
  0x27   : > { %1704 = vmatprep.subr.bf16.mxu0 %v1905_v1  ;;  %1813 = vmatprep.subr.bf16.mxu1 %v1905_v1 }
  0x2a   : > { %1705 = vmatpush3.bf16.msra.mxu0 %v1855_v8  ;;  %1821 = vmatpush3.bf16.msra.mxu1 %v1855_v8 }
  0x2d   : > { %1707 = vmatmul.mubr.bf16.vlgmr.msra.gmra.mxu0 %v1856_v9  ;;  %1759 = vmatmul.mubr.bf16.vlgmr.msra.gmra.mxu1 %v1857_v10 }
  0x2e   : > { %1710 = vmatprep.mubr.msk.bf16.mxu0 %vm1906_vm0, %v1905_v1  ;;  %1762 = vmatprep.mubr.msk.bf16.mxu1 %vm1906_vm0, %v1905_v1 }
  0x35   : > { %1711 = vmatmul.mubr.bf16.gmra.mxu0 %v1858_v11  ;;  %1763 = vmatmul.mubr.bf16.gmra.mxu1 %v1859_v12 }
  0x36   : > { %1714 = vmatprep.mubr.msk.bf16.mxu0 %vm1906_vm0, %v1905_v1  ;;  %1766 = vmatprep.mubr.msk.bf16.mxu1 %vm1906_vm0, %v1905_v1 }
  0x3d   : > { %1715 = vmatmul.mubr.bf16.gmra.mxu0 %v1860_v13  ;;  %1767 = vmatmul.mubr.bf16.gmra.mxu1 %v1861_v14 }
  0x3e   : > { %1718 = vmatprep.mubr.msk.bf16.mxu0 %vm1906_vm0, %v1905_v1  ;;  %1770 = vmatprep.mubr.msk.bf16.mxu1 %vm1906_vm0, %v1905_v1 }
  0x45   : > { %1719 = vmatmul.mubr.bf16.gmra.mxu0 %v1862_v15  ;;  %1771 = vmatmul.mubr.bf16.gmra.mxu1 %v1863_v16 }
  0x46   : > { %1722 = vmatprep.mubr.msk.bf16.mxu0 %vm1906_vm0, %v1905_v1  ;;  %1774 = vmatprep.mubr.msk.bf16.mxu1 %vm1906_vm0, %v1905_v1 }
  0x4d   : > { %1723 = vmatmul.mubr.bf16.gmra.mxu0 %v1864_v17  ;;  %1775 = vmatmul.mubr.bf16.gmra.mxu1 %v1865_v18 }
  0x4e   : > { %1726 = vmatprep.mubr.msk.bf16.mxu0 %vm1906_vm0, %v1905_v1  ;;  %1778 = vmatprep.mubr.msk.bf16.mxu1 %vm1906_vm0, %v1905_v1 }
  0x55   : > { %1727 = vmatmul.mubr.bf16.gmra.mxu0 %v1866_v19  ;;  %1779 = vmatmul.mubr.bf16.gmra.mxu1 %v1867_v20 }
  0x56   : > { %1730 = vmatprep.mubr.msk.bf16.mxu0 %vm1906_vm0, %v1905_v1  ;;  %1782 = vmatprep.mubr.msk.bf16.mxu1 %vm1906_vm0, %v1905_v1 }
  0x5d   : > { %1731 = vmatmul.mubr.bf16.gmra.mxu0 %v1868_v21  ;;  %1783 = vmatmul.mubr.bf16.gmra.mxu1 %v1869_v22 }
  0x5e   : > { %1734 = vmatprep.mubr.msk.bf16.mxu0 %vm1906_vm0, %v1905_v1  ;;  %1786 = vmatprep.mubr.msk.bf16.mxu1 %vm1906_vm0, %v1905_v1 }
  0x65   : > { %1735 = vmatmul.mubr.bf16.gmra.mxu0 %v1870_v23  ;;  %1787 = vmatmul.mubr.bf16.gmra.mxu1 %v1871_v24 }
  0x66   : > { %1738 = vmatprep.mubr.msk.bf16.mxu0 %vm1906_vm0, %v1905_v1  ;;  %1790 = vmatprep.mubr.msk.bf16.mxu1 %vm1906_vm0, %v1905_v1 }
  0x6d   : > { %1739 = vmatmul.mubr.bf16.gmra.mxu0 %v1872_v25  ;;  %1791 = vmatmul.mubr.bf16.gmra.mxu1 %v1873_v26 }
  0x6e   : > { %1742 = vmatprep.mubr.msk.bf16.mxu0 %vm1906_vm0, %v1905_v1  ;;  %1794 = vmatprep.mubr.msk.bf16.mxu1 %vm1906_vm0, %v1905_v1 }
  0x75   : > { %1743 = vmatmul.mubr.bf16.gmra.mxu0 %v1874_v27  ;;  %1795 = vmatmul.mubr.bf16.gmra.mxu1 %v1875_v28 }
  0x76   : > { %1746 = vmatprep.mubr.msk.bf16.mxu0 %vm1906_vm0, %v1905_v1  ;;  %1798 = vmatprep.mubr.msk.bf16.mxu1 %vm1906_vm0, %v1905_v1 }
  0x7d   : > { %1747 = vmatmul.mubr.bf16.gmra.mxu0 %v1876_v29  ;;  %1799 = vmatmul.mubr.bf16.gmra.mxu1 %v1877_v30 }
  0x7e   : > { %1750 = vmatprep.mubr.msk.bf16.mxu0 %vm1906_vm0, %v1905_v1  ;;  %1802 = vmatprep.mubr.msk.bf16.mxu1 %vm1906_vm0, %v1905_v1 }
  0x85   : > { %1751 = vmatmul.mubr.bf16.gmra.mxu0 %v1878_v31  ;;  %1803 = vmatmul.mubr.bf16.gmra.mxu1 %v1879_v32 }
  0x86   : > { %1754 = vmatprep.mubr.msk.bf16.mxu0 %vm1906_vm0, %v1905_v1 }
  0x8d   : > { %1755 = vmatmul.mubr.bf16.gmra.mxu0 %v1880_v33 }
  0xed   : > { %v629_v35 = vpop.f32.mrf.mxu0  ;;  %v733_v36 = vpop.f32.mrf.mxu1 }
  0xee   : > { %v854_v37 = vadd.f32 %v2073_v34, %v733_v36  ;;  %v828_v40 = vadd.f32 %v2073_v34, %v629_v35 }
  0xef   : > { %v1708_v38 = vpop.f32.mrf.mxu0  ;;  %v1760_v39 = vpop.f32.mrf.mxu1 }
  0xf0   : > { %v1007_v43 = vmax.f32 %v854_v37, 0.0  ;;  %v981_v48 = vmax.f32 %v828_v40, 0.0 }
  0xf1   : > { %v632_v41 = vpop.f32.mrf.mxu0  ;;  %v736_v42 = vpop.f32.mrf.mxu1 }
  0xf2   : > { %v829_v44 = vadd.f32 %v2073_v34, %v632_v41  ;;  %v855_v45 = vadd.f32 %v2073_v34, %v736_v42 }
  0xf3   : > { %v1709_v46 = vpop.f32.mrf.mxu0  ;;  %v1761_v47 = vpop.f32.mrf.mxu1 }
  0xf4   : > { %v982_v49 = vmax.f32 %v829_v44, 0.0  ;;  %v1008_v50 = vmax.f32 %v855_v45, 0.0 }
  0xf5   : > { %v637_v51 = vpop.f32.mrf.mxu0  ;;  %v741_v52 = vpop.f32.mrf.mxu1 }
  0xf6   : > { %v1511_v53 = vpack.c.bf16 %v982_v49, %v981_v48  ;;  %v1576_v54 = vpack.c.bf16 %v1008_v50, %v1007_v43  ;;  %v856_v55 = vadd.f32 %v2073_v34, %v741_v52  ;;  %v830_v58 = vadd.f32 %v2073_v34, %v637_v51 }
  0xf7   : > { %v1712_v56 = vpop.f32.mrf.mxu0  ;;  %v1764_v57 = vpop.f32.mrf.mxu1 }
  0xf8   : > { %1512 = vst [vmem:[%s2084_s17] sm:$0xff] %v1511_v53   ;;  %1645 = vst [vmem:[%s2084_s17 + $0x68] sm:$0xff] %v1576_v54   ;;  %v1009_v61 = vmax.f32 %v856_v55, 0.0  ;;  %v983_v2 = vmax.f32 %v830_v58, 0.0 }
  0xf9   : > { %v640_v59 = vpop.f32.mrf.mxu0  ;;  %v744_v60 = vpop.f32.mrf.mxu1 }
  0xfa   : > { %v831_v62 = vadd.f32 %v2073_v34, %v640_v59  ;;  %v857_v63 = vadd.f32 %v2073_v34, %v744_v60 }
  0xfb   : > { %v1713_v0 = vpop.f32.mrf.mxu0  ;;  %v1765_v1 = vpop.f32.mrf.mxu1 }
  0xfc   : > { %v984_v3 = vmax.f32 %v831_v62, 0.0  ;;  %v1010_v4 = vmax.f32 %v857_v63, 0.0 }
  0xfd   : > { %v645_v5 = vpop.f32.mrf.mxu0  ;;  %v749_v6 = vpop.f32.mrf.mxu1 }
  0xfe   : > { %v1516_v7 = vpack.c.bf16 %v984_v3, %v983_v2  ;;  %v1581_v8 = vpack.c.bf16 %v1010_v4, %v1009_v61  ;;  %v858_v9 = vadd.f32 %v2073_v34, %v749_v6  ;;  %v832_v12 = vadd.f32 %v2073_v34, %v645_v5 }
  0xff   : > { %v1716_v10 = vpop.f32.mrf.mxu0  ;;  %v1768_v11 = vpop.f32.mrf.mxu1 }
 0x100   : > { %1633 = vst [vmem:[%s2084_s17 + $0x8] sm:$0xff] %v1516_v7   ;;  %1646 = vst [vmem:[%s2084_s17 + $0x70] sm:$0xff] %v1581_v8   ;;  %v1011_v15 = vmax.f32 %v858_v9, 0.0  ;;  %v985_v20 = vmax.f32 %v832_v12, 0.0 }
 0x101   : > { %v648_v13 = vpop.f32.mrf.mxu0  ;;  %v752_v14 = vpop.f32.mrf.mxu1 }
 0x102   : > { %v833_v16 = vadd.f32 %v2073_v34, %v648_v13  ;;  %v859_v17 = vadd.f32 %v2073_v34, %v752_v14 }
 0x103   : > { %v1717_v18 = vpop.f32.mrf.mxu0  ;;  %v1769_v19 = vpop.f32.mrf.mxu1 }
 0x104   : > { %v986_v21 = vmax.f32 %v833_v16, 0.0  ;;  %v1012_v22 = vmax.f32 %v859_v17, 0.0 }
 0x105   : > { %v653_v23 = vpop.f32.mrf.mxu0  ;;  %v757_v24 = vpop.f32.mrf.mxu1 }
 0x106   : > { %v1521_v25 = vpack.c.bf16 %v986_v21, %v985_v20  ;;  %v1586_v26 = vpack.c.bf16 %v1012_v22, %v1011_v15  ;;  %v860_v27 = vadd.f32 %v2073_v34, %v757_v24  ;;  %v834_v30 = vadd.f32 %v2073_v34, %v653_v23 }
 0x107   : > { %v1720_v28 = vpop.f32.mrf.mxu0  ;;  %v1772_v29 = vpop.f32.mrf.mxu1 }
 0x108   : > { %1634 = vst [vmem:[%s2084_s17 + $0x10] sm:$0xff] %v1521_v25   ;;  %1647 = vst [vmem:[%s2084_s17 + $0x78] sm:$0xff] %v1586_v26   ;;  %v1013_v33 = vmax.f32 %v860_v27, 0.0  ;;  %v987_v39 = vmax.f32 %v834_v30, 0.0 }
 0x109   : > { %v656_v31 = vpop.f32.mrf.mxu0  ;;  %v760_v32 = vpop.f32.mrf.mxu1 }
 0x10a   : > { %v835_v35 = vadd.f32 %v2073_v34, %v656_v31  ;;  %v861_v36 = vadd.f32 %v2073_v34, %v760_v32 }
 0x10b   : > { %v1721_v37 = vpop.f32.mrf.mxu0  ;;  %v1773_v38 = vpop.f32.mrf.mxu1 }
 0x10c   : > { %v988_v40 = vmax.f32 %v835_v35, 0.0  ;;  %v1014_v41 = vmax.f32 %v861_v36, 0.0 }
 0x10d   : > { %v661_v42 = vpop.f32.mrf.mxu0  ;;  %v765_v43 = vpop.f32.mrf.mxu1 }
 0x10e   : > { %v1526_v44 = vpack.c.bf16 %v988_v40, %v987_v39  ;;  %v1591_v45 = vpack.c.bf16 %v1014_v41, %v1013_v33  ;;  %v862_v46 = vadd.f32 %v2073_v34, %v765_v43  ;;  %v836_v49 = vadd.f32 %v2073_v34, %v661_v42 }
 0x10f   : > { %v1724_v47 = vpop.f32.mrf.mxu0  ;;  %v1776_v48 = vpop.f32.mrf.mxu1 }
 0x110   : > { %1635 = vst [vmem:[%s2084_s17 + $0x18] sm:$0xff] %v1526_v44   ;;  %1648 = vst [vmem:[%s2084_s17 + $0x80] sm:$0xff] %v1591_v45   ;;  %v1015_v52 = vmax.f32 %v862_v46, 0.0  ;;  %v989_v57 = vmax.f32 %v836_v49, 0.0 }
 0x111   : > { %v664_v50 = vpop.f32.mrf.mxu0  ;;  %v768_v51 = vpop.f32.mrf.mxu1 }
 0x112   : > { %v837_v53 = vadd.f32 %v2073_v34, %v664_v50  ;;  %v863_v54 = vadd.f32 %v2073_v34, %v768_v51 }
 0x113   : > { %v1725_v55 = vpop.f32.mrf.mxu0  ;;  %v1777_v56 = vpop.f32.mrf.mxu1 }
 0x114   : > { %v990_v58 = vmax.f32 %v837_v53, 0.0  ;;  %v1016_v59 = vmax.f32 %v863_v54, 0.0 }
 0x115   : > { %v669_v60 = vpop.f32.mrf.mxu0  ;;  %v773_v61 = vpop.f32.mrf.mxu1 }
 0x116   : > { %v1531_v62 = vpack.c.bf16 %v990_v58, %v989_v57  ;;  %v1596_v63 = vpack.c.bf16 %v1016_v59, %v1015_v52  ;;  %v864_v0 = vadd.f32 %v2073_v34, %v773_v61  ;;  %v838_v3 = vadd.f32 %v2073_v34, %v669_v60 }
 0x117   : > { %v1728_v1 = vpop.f32.mrf.mxu0  ;;  %v1780_v2 = vpop.f32.mrf.mxu1 }
 0x118   : > { %1636 = vst [vmem:[%s2084_s17 + $0x20] sm:$0xff] %v1531_v62   ;;  %1649 = vst [vmem:[%s2084_s17 + $0x88] sm:$0xff] %v1596_v63   ;;  %v1017_v6 = vmax.f32 %v864_v0, 0.0  ;;  %v991_v11 = vmax.f32 %v838_v3, 0.0 }
 0x119   : > { %v672_v4 = vpop.f32.mrf.mxu0  ;;  %v776_v5 = vpop.f32.mrf.mxu1 }
 0x11a   : > { %v839_v7 = vadd.f32 %v2073_v34, %v672_v4  ;;  %v865_v8 = vadd.f32 %v2073_v34, %v776_v5 }
 0x11b   : > { %v1729_v9 = vpop.f32.mrf.mxu0  ;;  %v1781_v10 = vpop.f32.mrf.mxu1 }
 0x11c   : > { %v992_v12 = vmax.f32 %v839_v7, 0.0  ;;  %v1018_v13 = vmax.f32 %v865_v8, 0.0 }
 0x11d   : > { %v677_v14 = vpop.f32.mrf.mxu0  ;;  %v781_v15 = vpop.f32.mrf.mxu1 }
 0x11e   : > { %v1536_v16 = vpack.c.bf16 %v992_v12, %v991_v11  ;;  %v1601_v17 = vpack.c.bf16 %v1018_v13, %v1017_v6  ;;  %v866_v18 = vadd.f32 %v2073_v34, %v781_v15  ;;  %v840_v21 = vadd.f32 %v2073_v34, %v677_v14 }
 0x11f   : > { %v1732_v19 = vpop.f32.mrf.mxu0  ;;  %v1784_v20 = vpop.f32.mrf.mxu1 }
 0x120   : > { %1637 = vst [vmem:[%s2084_s17 + $0x28] sm:$0xff] %v1536_v16   ;;  %1650 = vst [vmem:[%s2084_s17 + $0x90] sm:$0xff] %v1601_v17   ;;  %v1019_v24 = vmax.f32 %v866_v18, 0.0  ;;  %v993_v29 = vmax.f32 %v840_v21, 0.0 }
 0x121   : > { %v680_v22 = vpop.f32.mrf.mxu0  ;;  %v784_v23 = vpop.f32.mrf.mxu1 }
 0x122   : > { %v841_v25 = vadd.f32 %v2073_v34, %v680_v22  ;;  %v867_v26 = vadd.f32 %v2073_v34, %v784_v23 }
 0x123   : > { %v1733_v27 = vpop.f32.mrf.mxu0  ;;  %v1785_v28 = vpop.f32.mrf.mxu1 }
 0x124   : > { %v994_v30 = vmax.f32 %v841_v25, 0.0  ;;  %v1020_v31 = vmax.f32 %v867_v26, 0.0 }
 0x125   : > { %v685_v32 = vpop.f32.mrf.mxu0  ;;  %v789_v33 = vpop.f32.mrf.mxu1 }
 0x126   : > { %v1541_v35 = vpack.c.bf16 %v994_v30, %v993_v29  ;;  %v1606_v36 = vpack.c.bf16 %v1020_v31, %v1019_v24  ;;  %v868_v37 = vadd.f32 %v2073_v34, %v789_v33  ;;  %v842_v40 = vadd.f32 %v2073_v34, %v685_v32 }
 0x127   : > { %v1736_v38 = vpop.f32.mrf.mxu0  ;;  %v1788_v39 = vpop.f32.mrf.mxu1 }
 0x128   : > { %1638 = vst [vmem:[%s2084_s17 + $0x30] sm:$0xff] %v1541_v35   ;;  %1651 = vst [vmem:[%s2084_s17 + $0x98] sm:$0xff] %v1606_v36   ;;  %v1021_v43 = vmax.f32 %v868_v37, 0.0  ;;  %v995_v48 = vmax.f32 %v842_v40, 0.0 }
 0x129   : > { %v688_v41 = vpop.f32.mrf.mxu0  ;;  %v792_v42 = vpop.f32.mrf.mxu1 }
 0x12a   : > { %v843_v44 = vadd.f32 %v2073_v34, %v688_v41  ;;  %v869_v45 = vadd.f32 %v2073_v34, %v792_v42 }
 0x12b   : > { %v1737_v46 = vpop.f32.mrf.mxu0  ;;  %v1789_v47 = vpop.f32.mrf.mxu1 }
 0x12c   : > { %v996_v49 = vmax.f32 %v843_v44, 0.0  ;;  %v1022_v50 = vmax.f32 %v869_v45, 0.0 }
 0x12d   : > { %v693_v51 = vpop.f32.mrf.mxu0  ;;  %v797_v52 = vpop.f32.mrf.mxu1 }
 0x12e   : > { %v1546_v53 = vpack.c.bf16 %v996_v49, %v995_v48  ;;  %v1611_v54 = vpack.c.bf16 %v1022_v50, %v1021_v43  ;;  %v870_v55 = vadd.f32 %v2073_v34, %v797_v52  ;;  %v844_v58 = vadd.f32 %v2073_v34, %v693_v51 }
 0x12f   : > { %v1740_v56 = vpop.f32.mrf.mxu0  ;;  %v1792_v57 = vpop.f32.mrf.mxu1 }
 0x130   : > { %1639 = vst [vmem:[%s2084_s17 + $0x38] sm:$0xff] %v1546_v53   ;;  %1652 = vst [vmem:[%s2084_s17 + $0xa0] sm:$0xff] %v1611_v54   ;;  %v1023_v61 = vmax.f32 %v870_v55, 0.0  ;;  %v997_v2 = vmax.f32 %v844_v58, 0.0 }
 0x131   : > { %v696_v59 = vpop.f32.mrf.mxu0  ;;  %v800_v60 = vpop.f32.mrf.mxu1 }
 0x132   : > { %v845_v62 = vadd.f32 %v2073_v34, %v696_v59  ;;  %v871_v63 = vadd.f32 %v2073_v34, %v800_v60 }
 0x133   : > { %v1741_v0 = vpop.f32.mrf.mxu0  ;;  %v1793_v1 = vpop.f32.mrf.mxu1 }
 0x134   : > { %v998_v3 = vmax.f32 %v845_v62, 0.0  ;;  %v1024_v4 = vmax.f32 %v871_v63, 0.0 }
 0x135   : > { %v701_v5 = vpop.f32.mrf.mxu0  ;;  %v805_v6 = vpop.f32.mrf.mxu1 }
 0x136   : > { %v1551_v7 = vpack.c.bf16 %v998_v3, %v997_v2  ;;  %v1616_v8 = vpack.c.bf16 %v1024_v4, %v1023_v61  ;;  %v872_v9 = vadd.f32 %v2073_v34, %v805_v6  ;;  %v846_v12 = vadd.f32 %v2073_v34, %v701_v5 }
 0x137   : > { %v1744_v10 = vpop.f32.mrf.mxu0  ;;  %v1796_v11 = vpop.f32.mrf.mxu1 }
 0x138   : > { %1640 = vst [vmem:[%s2084_s17 + $0x40] sm:$0xff] %v1551_v7   ;;  %1653 = vst [vmem:[%s2084_s17 + $0xa8] sm:$0xff] %v1616_v8   ;;  %v1025_v15 = vmax.f32 %v872_v9, 0.0  ;;  %v999_v20 = vmax.f32 %v846_v12, 0.0 }
 0x139   : > { %v704_v13 = vpop.f32.mrf.mxu0  ;;  %v808_v14 = vpop.f32.mrf.mxu1 }
 0x13a   : > { %v847_v16 = vadd.f32 %v2073_v34, %v704_v13  ;;  %v873_v17 = vadd.f32 %v2073_v34, %v808_v14 }
 0x13b   : > { %v1745_v18 = vpop.f32.mrf.mxu0  ;;  %v1797_v19 = vpop.f32.mrf.mxu1 }
 0x13c   : > { %v1000_v21 = vmax.f32 %v847_v16, 0.0  ;;  %v1026_v22 = vmax.f32 %v873_v17, 0.0 }
 0x13d   : > { %v709_v23 = vpop.f32.mrf.mxu0  ;;  %v813_v24 = vpop.f32.mrf.mxu1 }
 0x13e   : > { %v1556_v25 = vpack.c.bf16 %v1000_v21, %v999_v20  ;;  %v1621_v26 = vpack.c.bf16 %v1026_v22, %v1025_v15  ;;  %v874_v27 = vadd.f32 %v2073_v34, %v813_v24  ;;  %v848_v30 = vadd.f32 %v2073_v34, %v709_v23 }
 0x13f   : > { %v1748_v28 = vpop.f32.mrf.mxu0  ;;  %v1800_v29 = vpop.f32.mrf.mxu1 }
 0x140   : > { %1641 = vst [vmem:[%s2084_s17 + $0x48] sm:$0xff] %v1556_v25   ;;  %1654 = vst [vmem:[%s2084_s17 + $0xb0] sm:$0xff] %v1621_v26   ;;  %v1027_v33 = vmax.f32 %v874_v27, 0.0  ;;  %v1001_v39 = vmax.f32 %v848_v30, 0.0 }
 0x141   : > { %v712_v31 = vpop.f32.mrf.mxu0  ;;  %v816_v32 = vpop.f32.mrf.mxu1 }
 0x142   : > { %v849_v35 = vadd.f32 %v2073_v34, %v712_v31  ;;  %v875_v36 = vadd.f32 %v2073_v34, %v816_v32 }
 0x143   : > { %v1749_v37 = vpop.f32.mrf.mxu0  ;;  %v1801_v38 = vpop.f32.mrf.mxu1 }
 0x144   : > { %v1002_v40 = vmax.f32 %v849_v35, 0.0  ;;  %v1028_v41 = vmax.f32 %v875_v36, 0.0 }
 0x145   : > { %v717_v42 = vpop.f32.mrf.mxu0  ;;  %v821_v43 = vpop.f32.mrf.mxu1 }
 0x146   : > { %v1561_v44 = vpack.c.bf16 %v1002_v40, %v1001_v39  ;;  %v1626_v45 = vpack.c.bf16 %v1028_v41, %v1027_v33  ;;  %v876_v46 = vadd.f32 %v2073_v34, %v821_v43  ;;  %v850_v49 = vadd.f32 %v2073_v34, %v717_v42 }
 0x147   : > { %v1752_v47 = vpop.f32.mrf.mxu0  ;;  %v1804_v48 = vpop.f32.mrf.mxu1 }
 0x148   : > { %1642 = vst [vmem:[%s2084_s17 + $0x50] sm:$0xff] %v1561_v44   ;;  %1655 = vst [vmem:[%s2084_s17 + $0xb8] sm:$0xff] %v1626_v45   ;;  %v1029_v52 = vmax.f32 %v876_v46, 0.0  ;;  %v1003_v57 = vmax.f32 %v850_v49, 0.0 }
 0x149   : > { %v720_v50 = vpop.f32.mrf.mxu0  ;;  %v824_v51 = vpop.f32.mrf.mxu1 }
 0x14a   : > { %v851_v53 = vadd.f32 %v2073_v34, %v720_v50  ;;  %v877_v54 = vadd.f32 %v2073_v34, %v824_v51 }
 0x14b   : > { %v1753_v55 = vpop.f32.mrf.mxu0  ;;  %v1805_v56 = vpop.f32.mrf.mxu1 }
 0x14c   : > { %v1004_v58 = vmax.f32 %v851_v53, 0.0  ;;  %v1030_v59 = vmax.f32 %v877_v54, 0.0 }
 0x14d   : > { %v725_v60 = vpop.f32.mrf.mxu0 }
 0x14e   : > { %v1566_v61 = vpack.c.bf16 %v1004_v58, %v1003_v57  ;;  %v1631_v62 = vpack.c.bf16 %v1030_v59, %v1029_v52  ;;  %v852_v0 = vadd.f32 %v2073_v34, %v725_v60 }
 0x14f   : > { %v1756_v63 = vpop.f32.mrf.mxu0 }
 0x150   : > { %1643 = vst [vmem:[%s2084_s17 + $0x58] sm:$0xff] %v1566_v61   ;;  %1656 = vst [vmem:[%s2084_s17 + $0xc0] sm:$0xff] %v1631_v62   ;;  %v1005_v4 = vmax.f32 %v852_v0, 0.0 }
 0x151   : > { %v728_v1 = vpop.f32.mrf.mxu0 }
 0x152   : > { %v853_v2 = vadd.f32 %v2073_v34, %v728_v1 }
 0x153   : > { %v1757_v3 = vpop.f32.mrf.mxu0 }
 0x154   : > { %v1006_v5 = vmax.f32 %v853_v2, 0.0 }
 0x156   : > { %v1571_v6 = vpack.c.bf16 %v1006_v5, %v1005_v4 }
 0x158   : > { %1644 = vst [vmem:[%s2084_s17 + $0x60] sm:$0xff] %v1571_v6  }
 0x159 PF: > { %s13_s14 = sadd.s32 1, %s1903_s14   ;;  %s2170_s12 = smov %s1899_s13 }
 0x15a   : > { %p10_p5 = scmp.ge.s32.totalorder %s13_s14, 4   ;;  %s2171_s13 = smov %s2173_s15 }
 0x15c   :  { %12 = sbr.rel (!%p10_p5) target bundleno = 2 (0x2), region = 73 }

// kernel: dqn_forward.4
= control target key start
LH: loop header
LB: loop body
LE: loop exit
PB: predicated region body
PF: predicated region fallthrough
CT: control target
= control target key end

     0   :  { %s1390_s12 = smov 0   ;;  %s1392_s13 = smov 0   ;;  %s1577_s0 = inlined_call_operand.vmem [shape: bf16[192,512], index: 0, kind: input, shape index: {}]   ;;  %s1578_s1 = inlined_call_operand.vmem [shape: bf16[512,128], index: 1, kind: input, shape index: {}]   ;;  %s1579_s2 = inlined_call_operand.vmem [shape: f32[1,128], index: 2, kind: input, shape index: {}]   ;;  %s1580_s3 = inlined_call_operand.vmem [shape: bf16[192,128], index: 3, kind: output, shape index: {}]  }
   0x1   :  { %s1394_s14 = smov 0  }
   0x2 LB: > { %s25_s15 = sadd.s32 1, %s1364_s13  ;;  %p1027_p0 = scmp.ge.s32.totalorder %s1368_s14, 1  ;;  %s1368_s14 = sphi %s1394_s14, %s13_s14   ;;  %s1364_s13 = sphi %s1392_s13, %s1582_s13   ;;  %s1360_s12 = sphi %s1390_s12, %s1581_s12  }
   0x3   : > { %p27_p1 = scmp.ge.s32.totalorder %s25_s15, 2  ;;  %p169_p2 = scmp.lt.s32.totalorder %s1368_s14, 3 }
   0x5   : > { %s1584_s15 = smov (%p27_p1, %s25_s15), 0  ;;  %p170_p3 = pnand %p1027_p0, %p169_p2 }
   0x6   : > { %s203_s23 = smul.u32 (!%p170_p3), 12, %s1360_s12 }
   0x7   : > { %173 = sbr.rel (%p170_p3) target bundleno = 297 (0x129), region = 32 }
   0x8   : > { %p205_p4 = scmp.lt.s32.totalorder (!%p170_p3), %s203_s23, 23 }
   0xc   : > { %v1278_v0 = vld [vmem:[%s1578_s1 + $0x78] sm:$0xff]   ;;  %v1282_v4 = vld [vmem:[%s1578_s1 + $0x70] sm:$0xff]   ;;  %v1286_v8 = vld [vmem:[%s1578_s1 + $0x68] sm:$0xff]   ;;  %s1586_s23 = smov (!%p205_p4, %s203_s23), 23 }
   0xd   : > { %v1279_v1 = vld [vmem:[%s1578_s1 + $0xf8] sm:$0xff]   ;;  %1150 = vmatprep.subr.bf16.mxu0 %v1278_v0  ;;  %v1283_v5 = vld [vmem:[%s1578_s1 + $0xf0] sm:$0xff]   ;;  %v1287_v9 = vld [vmem:[%s1578_s1 + $0xe8] sm:$0xff]   ;;  %s1102_s25 = sshll.u32 %s1586_s23, 4  ;;  %s1030_s17 = sshll.u32 %s1586_s23, 2 }
   0xe   : > { %v1280_v2 = vld [vmem:[%s1578_s1 + $0x38] sm:$0xff]   ;;  %1202 = vmatprep.subr.bf16.mxu1 %v1279_v1  ;;  %v1284_v6 = vld [vmem:[%s1578_s1 + $0x30] sm:$0xff]   ;;  %v1288_v10 = vld [vmem:[%s1578_s1 + $0x28] sm:$0xff]   ;;  %s1507_s6 = scalar_lea.vmem %s1577_s0, %s1102_s25  ;;  %s1550_s20 = scalar_lea.vmem %s1580_s3, %s1030_s17 }
   0xf   : > { %v1281_v3 = vld [vmem:[%s1578_s1 + $0xb8] sm:$0xff]   ;;  %1151 = vmatpush3.bf16.msra.mxu0 %v1280_v2  ;;  %v1285_v7 = vld [vmem:[%s1578_s1 + $0xb0] sm:$0xff]   ;;  %v1289_v11 = vld [vmem:[%s1578_s1 + $0xa8] sm:$0xff]  }
  0x10   : > { %1203 = vmatpush3.bf16.msra.mxu1 %v1281_v3  ;;  %1152 = vmatprep.subr.bf16.mxu0 %v1282_v4  ;;  %v1290_v12 = vld [vmem:[%s1578_s1 + $0x60] sm:$0xff]   ;;  %v1294_v16 = vld [vmem:[%s1578_s1 + $0x58] sm:$0xff]   ;;  %v1298_v20 = vld [vmem:[%s1578_s1 + $0x50] sm:$0xff]  }
  0x11   : > { %1204 = vmatprep.subr.bf16.mxu1 %v1283_v5  ;;  %v1291_v13 = vld [vmem:[%s1578_s1 + $0xe0] sm:$0xff]   ;;  %v1295_v17 = vld [vmem:[%s1578_s1 + $0xd8] sm:$0xff]   ;;  %v1299_v21 = vld [vmem:[%s1578_s1 + $0xd0] sm:$0xff]  }
  0x12   : > { %v1292_v14 = vld [vmem:[%s1578_s1 + $0x20] sm:$0xff]   ;;  %v1296_v18 = vld [vmem:[%s1578_s1 + $0x18] sm:$0xff]   ;;  %v1300_v22 = vld [vmem:[%s1578_s1 + $0x10] sm:$0xff]  }
  0x13   : > { %1153 = vmatpush3.bf16.msra.mxu0 %v1284_v6  ;;  %v1293_v15 = vld [vmem:[%s1578_s1 + $0xa0] sm:$0xff]   ;;  %v1297_v19 = vld [vmem:[%s1578_s1 + $0x98] sm:$0xff]   ;;  %v1301_v23 = vld [vmem:[%s1578_s1 + $0x90] sm:$0xff]  }
  0x14   : > { %1205 = vmatpush3.bf16.msra.mxu1 %v1285_v7  ;;  %1154 = vmatprep.subr.bf16.mxu0 %v1286_v8  ;;  %v1302_v24 = vld [vmem:[%s1578_s1 + $0x48] sm:$0xff]   ;;  %v1306_v28 = vld [vmem:[%s1578_s1 + $0x40] sm:$0xff]  }
  0x15   : > { %1206 = vmatprep.subr.bf16.mxu1 %v1287_v9  ;;  %v1303_v25 = vld [vmem:[%s1578_s1 + $0xc8] sm:$0xff]   ;;  %v1307_v29 = vld [vmem:[%s1578_s1 + $0xc0] sm:$0xff]  }
  0x16   : > { %v1304_v26 = vld [vmem:[%s1578_s1 + $0x8] sm:$0xff]   ;;  %v1308_v30 = vld [vmem:[%s1578_s1] sm:$0xff]  }
  0x17   : > { %1155 = vmatpush3.bf16.msra.mxu0 %v1288_v10  ;;  %v1305_v27 = vld [vmem:[%s1578_s1 + $0x88] sm:$0xff]   ;;  %v1309_v31 = vld [vmem:[%s1578_s1 + $0x80] sm:$0xff]  }
  0x18   : > { %1207 = vmatpush3.bf16.msra.mxu1 %v1289_v11  ;;  %1156 = vmatprep.subr.bf16.mxu0 %v1290_v12  ;;  %v1310_v32 = vld [vmem:[%s1507_s6] ss:$16 sps:$4 sm:$0xff]   ;;  %v1312_v33 = vld [vmem:[%s1507_s6 + $0x4] ss:$16 sps:$4 sm:$0xff]   ;;  %v1313_v34 = vld [vmem:[%s1507_s6 + $0x8] ss:$16 sps:$4 sm:$0xff]  }
  0x19   : > { %1208 = vmatprep.subr.bf16.mxu1 %v1291_v13  ;;  %v1315_v35 = vld [vmem:[%s1507_s6 + $0xc] ss:$16 sps:$4 sm:$0xff]   ;;  %695 = vmatprep.mubr.bf16.mxu0 %v1312_v33  ;;  %v1316_v36 = vld [vmem:[%s1507_s6 + $0x24] ss:$16 sps:$4 sm:$0xff]   ;;  %v1320_v38 = vld [vmem:[%s1507_s6 + $0x20] ss:$16 sps:$4 sm:$0xff]  }
  0x1a   : > { %776 = vmatprep.mubr.bf16.mxu1 %v1315_v35  ;;  %v1318_v37 = vld [vmem:[%s1507_s6 + $0x2c] ss:$16 sps:$4 sm:$0xff]   ;;  %v1321_v39 = vld [vmem:[%s1507_s6 + $0x28] ss:$16 sps:$4 sm:$0xff]   ;;  %v1322_v40 = vld [vmem:[%s1507_s6 + $0x44] ss:$16 sps:$4 sm:$0xff]  }
  0x1b   : > { %1157 = vmatpush3.bf16.msra.mxu0 %v1292_v14  ;;  %v1324_v41 = vld [vmem:[%s1507_s6 + $0x4c] ss:$16 sps:$4 sm:$0xff]   ;;  %v1326_v42 = vld [vmem:[%s1507_s6 + $0x40] ss:$16 sps:$4 sm:$0xff]   ;;  %v1327_v43 = vld [vmem:[%s1507_s6 + $0x48] ss:$16 sps:$4 sm:$0xff]  }
  0x1c   : > { %1209 = vmatpush3.bf16.msra.mxu1 %v1293_v15  ;;  %1158 = vmatprep.subr.bf16.mxu0 %v1294_v16  ;;  %v1328_v44 = vld [vmem:[%s1507_s6 + $0x64] ss:$16 sps:$4 sm:$0xff]   ;;  %v1330_v45 = vld [vmem:[%s1507_s6 + $0x6c] ss:$16 sps:$4 sm:$0xff]   ;;  %v1332_v46 = vld [vmem:[%s1507_s6 + $0x60] ss:$16 sps:$4 sm:$0xff]  }
  0x1d   : > { %1210 = vmatprep.subr.bf16.mxu1 %v1295_v17  ;;  %v1333_v47 = vld [vmem:[%s1507_s6 + $0x68] ss:$16 sps:$4 sm:$0xff]   ;;  %v1334_v48 = vld [vmem:[%s1507_s6 + $0x84] ss:$16 sps:$4 sm:$0xff]   ;;  %v1336_v49 = vld [vmem:[%s1507_s6 + $0x8c] ss:$16 sps:$4 sm:$0xff]  }
  0x1e   : > { %v1338_v50 = vld [vmem:[%s1507_s6 + $0x80] ss:$16 sps:$4 sm:$0xff]   ;;  %v1339_v51 = vld [vmem:[%s1507_s6 + $0x88] ss:$16 sps:$4 sm:$0xff]   ;;  %v1340_v52 = vld [vmem:[%s1507_s6 + $0xa4] ss:$16 sps:$4 sm:$0xff]  }
  0x1f   : > { %1159 = vmatpush3.bf16.msra.mxu0 %v1296_v18  ;;  %v1342_v53 = vld [vmem:[%s1507_s6 + $0xac] ss:$16 sps:$4 sm:$0xff]   ;;  %v1344_v54 = vld [vmem:[%s1507_s6 + $0xa0] ss:$16 sps:$4 sm:$0xff]   ;;  %v1345_v55 = vld [vmem:[%s1507_s6 + $0xa8] ss:$16 sps:$4 sm:$0xff]  }
  0x20   : > { %1211 = vmatpush3.bf16.msra.mxu1 %v1297_v19  ;;  %1160 = vmatprep.subr.bf16.mxu0 %v1298_v20  ;;  %v1542_v2 = vld [vmem:[%s1579_s2] ss:$0 sm:$0xff] }
  0x21   : > { %1212 = vmatprep.subr.bf16.mxu1 %v1299_v21 }
  0x23   : > { %1161 = vmatpush3.bf16.msra.mxu0 %v1300_v22 }
  0x24   : > { %1213 = vmatpush3.bf16.msra.mxu1 %v1301_v23  ;;  %1162 = vmatprep.subr.bf16.mxu0 %v1302_v24 }
  0x25   : > { %1214 = vmatprep.subr.bf16.mxu1 %v1303_v25 }
  0x27   : > { %1163 = vmatpush3.bf16.msra.mxu0 %v1304_v26 }
  0x28   : > { %1215 = vmatpush3.bf16.msra.mxu1 %v1305_v27  ;;  %1164 = vmatprep.subr.bf16.mxu0 %v1306_v28 }
  0x29   : > { %1216 = vmatprep.subr.bf16.mxu1 %v1307_v29 }
  0x2b   : > { %1165 = vmatpush3.bf16.msra.mxu0 %v1308_v30 }
  0x2c   : > { %1217 = vmatpush3.bf16.msra.mxu1 %v1309_v31 }
  0x2e   : > { %696 = vmatmul.mubr.bf16.vlgmr.msra.gmra.mxu0 %v1310_v32 }
  0x2f   : > { %777 = vmatmul.mubr.bf16.vlgmr.msra.gmra.mxu1 %v1313_v34  ;;  %703 = vmatprep.mubr.bf16.mxu0 %v1316_v36 }
  0x30   : > { %784 = vmatprep.mubr.bf16.mxu1 %v1318_v37 }
  0x36   : > { %704 = vmatmul.mubr.bf16.gmra.mxu0 %v1320_v38 }
  0x37   : > { %785 = vmatmul.mubr.bf16.gmra.mxu1 %v1321_v39  ;;  %711 = vmatprep.mubr.bf16.mxu0 %v1322_v40 }
  0x38   : > { %792 = vmatprep.mubr.bf16.mxu1 %v1324_v41 }
  0x3e   : > { %712 = vmatmul.mubr.bf16.gmra.mxu0 %v1326_v42 }
  0x3f   : > { %793 = vmatmul.mubr.bf16.gmra.mxu1 %v1327_v43  ;;  %719 = vmatprep.mubr.bf16.mxu0 %v1328_v44 }
  0x40   : > { %800 = vmatprep.mubr.bf16.mxu1 %v1330_v45 }
  0x46   : > { %720 = vmatmul.mubr.bf16.gmra.mxu0 %v1332_v46 }
  0x47   : > { %801 = vmatmul.mubr.bf16.gmra.mxu1 %v1333_v47  ;;  %727 = vmatprep.mubr.bf16.mxu0 %v1334_v48 }
  0x48   : > { %808 = vmatprep.mubr.bf16.mxu1 %v1336_v49 }
  0x4e   : > { %728 = vmatmul.mubr.bf16.gmra.mxu0 %v1338_v50 }
  0x4f   : > { %809 = vmatmul.mubr.bf16.gmra.mxu1 %v1339_v51  ;;  %735 = vmatprep.mubr.bf16.mxu0 %v1340_v52 }
  0x50   : > { %816 = vmatprep.mubr.bf16.mxu1 %v1342_v53 }
  0x56   : > { %736 = vmatmul.mubr.bf16.gmra.mxu0 %v1344_v54 }
  0x57   : > { %817 = vmatmul.mubr.bf16.gmra.mxu1 %v1345_v55 }
  0xee   : > { %v1166_v56 = vpop.f32.mrf.mxu0 }
  0xef   : > { %v1218_v57 = vpop.f32.mrf.mxu1 }
  0xf0   : > { %v1167_v58 = vpop.f32.mrf.mxu0 }
  0xf1   : > { %v1168_v59 = vadd.f32 %v1167_v58, %v1166_v56  ;;  %v1219_v60 = vpop.f32.mrf.mxu1 }
  0xf2   : > { %v1220_v61 = vadd.f32 %v1219_v60, %v1218_v57  ;;  %v1169_v62 = vpop.f32.mrf.mxu0 }
  0xf3   : > { %v1221_v63 = vpop.f32.mrf.mxu1 }
  0xf4   : > { %v779_v0 = vadd.f32 %v1220_v61, %v1168_v59  ;;  %v1170_v1 = vpop.f32.mrf.mxu0 }
  0xf5   : > { %v1171_v3 = vadd.f32 %v1170_v1, %v1169_v62  ;;  %v1222_v4 = vpop.f32.mrf.mxu1 }
  0xf6   : > { %v1223_v5 = vadd.f32 %v1222_v4, %v1221_v63  ;;  %v1172_v6 = vpop.f32.mrf.mxu0  ;;  %v825_v8 = vadd.f32 %v1542_v2, %v779_v0 }
  0xf7   : > { %v1224_v7 = vpop.f32.mrf.mxu1 }
  0xf8   : > { %v782_v9 = vadd.f32 %v1223_v5, %v1171_v3  ;;  %v1173_v10 = vpop.f32.mrf.mxu0  ;;  %v864_v17 = vmax.f32 %v825_v8, 0.0 }
  0xf9   : > { %v1174_v11 = vadd.f32 %v1173_v10, %v1172_v6  ;;  %v1225_v12 = vpop.f32.mrf.mxu1 }
  0xfa   : > { %v826_v13 = vadd.f32 %v1542_v2, %v782_v9  ;;  %v1226_v14 = vadd.f32 %v1225_v12, %v1224_v7  ;;  %v1175_v15 = vpop.f32.mrf.mxu0 }
  0xfb   : > { %v1227_v16 = vpop.f32.mrf.mxu1 }
  0xfc   : > { %v865_v18 = vmax.f32 %v826_v13, 0.0  ;;  %v787_v19 = vadd.f32 %v1226_v14, %v1174_v11  ;;  %v1176_v20 = vpop.f32.mrf.mxu0 }
  0xfd   : > { %v1177_v21 = vadd.f32 %v1176_v20, %v1175_v15  ;;  %v1228_v22 = vpop.f32.mrf.mxu1 }
  0xfe   : > { %v1118_v23 = vpack.c.bf16 %v865_v18, %v864_v17  ;;  %v1229_v24 = vadd.f32 %v1228_v22, %v1227_v16  ;;  %v1178_v25 = vpop.f32.mrf.mxu0  ;;  %v827_v27 = vadd.f32 %v1542_v2, %v787_v19 }
  0xff   : > { %v1230_v26 = vpop.f32.mrf.mxu1 }
 0x100   : > { %1119 = vst [vmem:[%s1550_s20] sm:$0xff] %v1118_v23   ;;  %v790_v28 = vadd.f32 %v1229_v24, %v1177_v21  ;;  %v1179_v29 = vpop.f32.mrf.mxu0  ;;  %v866_v36 = vmax.f32 %v827_v27, 0.0 }
 0x101   : > { %v1180_v30 = vadd.f32 %v1179_v29, %v1178_v25  ;;  %v1231_v31 = vpop.f32.mrf.mxu1 }
 0x102   : > { %v828_v32 = vadd.f32 %v1542_v2, %v790_v28  ;;  %v1232_v33 = vadd.f32 %v1231_v31, %v1230_v26  ;;  %v1181_v34 = vpop.f32.mrf.mxu0 }
 0x103   : > { %v1233_v35 = vpop.f32.mrf.mxu1 }
 0x104   : > { %v867_v37 = vmax.f32 %v828_v32, 0.0  ;;  %v795_v38 = vadd.f32 %v1232_v33, %v1180_v30  ;;  %v1182_v39 = vpop.f32.mrf.mxu0 }
 0x105   : > { %v1183_v40 = vadd.f32 %v1182_v39, %v1181_v34  ;;  %v1234_v41 = vpop.f32.mrf.mxu1 }
 0x106   : > { %v1123_v42 = vpack.c.bf16 %v867_v37, %v866_v36  ;;  %v1235_v43 = vadd.f32 %v1234_v41, %v1233_v35  ;;  %v1184_v44 = vpop.f32.mrf.mxu0  ;;  %v829_v46 = vadd.f32 %v1542_v2, %v795_v38 }
 0x107   : > { %v1236_v45 = vpop.f32.mrf.mxu1 }
 0x108   : > { %1145 = vst [vmem:[%s1550_s20 + $0x8] sm:$0xff] %v1123_v42   ;;  %v798_v47 = vadd.f32 %v1235_v43, %v1183_v40  ;;  %v1185_v48 = vpop.f32.mrf.mxu0  ;;  %v868_v55 = vmax.f32 %v829_v46, 0.0 }
 0x109   : > { %v1186_v49 = vadd.f32 %v1185_v48, %v1184_v44  ;;  %v1237_v50 = vpop.f32.mrf.mxu1 }
 0x10a   : > { %v830_v51 = vadd.f32 %v1542_v2, %v798_v47  ;;  %v1238_v52 = vadd.f32 %v1237_v50, %v1236_v45  ;;  %v1187_v53 = vpop.f32.mrf.mxu0 }
 0x10b   : > { %v1239_v54 = vpop.f32.mrf.mxu1 }
 0x10c   : > { %v869_v56 = vmax.f32 %v830_v51, 0.0  ;;  %v803_v57 = vadd.f32 %v1238_v52, %v1186_v49  ;;  %v1188_v58 = vpop.f32.mrf.mxu0 }
 0x10d   : > { %v1189_v59 = vadd.f32 %v1188_v58, %v1187_v53  ;;  %v1240_v60 = vpop.f32.mrf.mxu1 }
 0x10e   : > { %v1128_v61 = vpack.c.bf16 %v869_v56, %v868_v55  ;;  %v1241_v62 = vadd.f32 %v1240_v60, %v1239_v54  ;;  %v1190_v63 = vpop.f32.mrf.mxu0  ;;  %v831_v1 = vadd.f32 %v1542_v2, %v803_v57 }
 0x10f   : > { %v1242_v0 = vpop.f32.mrf.mxu1 }
 0x110   : > { %1146 = vst [vmem:[%s1550_s20 + $0x10] sm:$0xff] %v1128_v61   ;;  %v806_v3 = vadd.f32 %v1241_v62, %v1189_v59  ;;  %v1191_v4 = vpop.f32.mrf.mxu0  ;;  %v870_v11 = vmax.f32 %v831_v1, 0.0 }
 0x111   : > { %v1192_v5 = vadd.f32 %v1191_v4, %v1190_v63  ;;  %v1243_v6 = vpop.f32.mrf.mxu1 }
 0x112   : > { %v832_v7 = vadd.f32 %v1542_v2, %v806_v3  ;;  %v1244_v8 = vadd.f32 %v1243_v6, %v1242_v0  ;;  %v1193_v9 = vpop.f32.mrf.mxu0 }
 0x113   : > { %v1245_v10 = vpop.f32.mrf.mxu1 }
 0x114   : > { %v871_v12 = vmax.f32 %v832_v7, 0.0  ;;  %v811_v13 = vadd.f32 %v1244_v8, %v1192_v5  ;;  %v1194_v14 = vpop.f32.mrf.mxu0 }
 0x115   : > { %v1195_v15 = vadd.f32 %v1194_v14, %v1193_v9  ;;  %v1246_v16 = vpop.f32.mrf.mxu1 }
 0x116   : > { %v1133_v17 = vpack.c.bf16 %v871_v12, %v870_v11  ;;  %v1247_v18 = vadd.f32 %v1246_v16, %v1245_v10  ;;  %v1196_v19 = vpop.f32.mrf.mxu0  ;;  %v833_v21 = vadd.f32 %v1542_v2, %v811_v13 }
 0x117   : > { %v1248_v20 = vpop.f32.mrf.mxu1 }
 0x118   : > { %1147 = vst [vmem:[%s1550_s20 + $0x18] sm:$0xff] %v1133_v17   ;;  %v814_v22 = vadd.f32 %v1247_v18, %v1195_v15  ;;  %v1197_v23 = vpop.f32.mrf.mxu0  ;;  %v872_v30 = vmax.f32 %v833_v21, 0.0 }
 0x119   : > { %v1198_v24 = vadd.f32 %v1197_v23, %v1196_v19  ;;  %v1249_v25 = vpop.f32.mrf.mxu1 }
 0x11a   : > { %v834_v26 = vadd.f32 %v1542_v2, %v814_v22  ;;  %v1250_v27 = vadd.f32 %v1249_v25, %v1248_v20  ;;  %v1199_v28 = vpop.f32.mrf.mxu0 }
 0x11b   : > { %v1251_v29 = vpop.f32.mrf.mxu1 }
 0x11c   : > { %v873_v31 = vmax.f32 %v834_v26, 0.0  ;;  %v819_v32 = vadd.f32 %v1250_v27, %v1198_v24  ;;  %v1200_v33 = vpop.f32.mrf.mxu0 }
 0x11d   : > { %v1201_v34 = vadd.f32 %v1200_v33, %v1199_v28  ;;  %v1252_v35 = vpop.f32.mrf.mxu1 }
 0x11e   : > { %v1138_v36 = vpack.c.bf16 %v873_v31, %v872_v30  ;;  %v1253_v37 = vadd.f32 %v1252_v35, %v1251_v29  ;;  %v835_v38 = vadd.f32 %v1542_v2, %v819_v32 }
 0x120   : > { %1148 = vst [vmem:[%s1550_s20 + $0x20] sm:$0xff] %v1138_v36   ;;  %v822_v39 = vadd.f32 %v1253_v37, %v1201_v34  ;;  %v874_v41 = vmax.f32 %v835_v38, 0.0 }
 0x122   : > { %v836_v40 = vadd.f32 %v1542_v2, %v822_v39 }
 0x124   : > { %v875_v42 = vmax.f32 %v836_v40, 0.0 }
 0x126   : > { %v1143_v43 = vpack.c.bf16 %v875_v42, %v874_v41 }
 0x128   : > { %1149 = vst [vmem:[%s1550_s20 + $0x28] sm:$0xff] %v1143_v43  }
 0x129 PF: > { %s13_s14 = sadd.s32 1, %s1368_s14   ;;  %s1581_s12 = smov %s1364_s13 }
 0x12a   : > { %p10_p5 = scmp.ge.s32.totalorder %s13_s14, 4   ;;  %s1582_s13 = smov %s1584_s15 }
 0x12c   :  { %12 = sbr.rel (!%p10_p5) target bundleno = 2 (0x2), region = 73 }

// kernel: dqn_forward.5
= control target key start
LH: loop header
LB: loop body
LE: loop exit
PB: predicated region body
PF: predicated region fallthrough
CT: control target
= control target key end

     0   :  { %s7960_s18 = smov 0   ;;  %s7962_s19 = smov 0   ;;  %s8975_s0 = inlined_call_operand.vmem [shape: bf16[16,5376], index: 0, kind: input, shape index: {}]   ;;  %s8976_s1 = inlined_call_operand.vmem [shape: bf16[5376,512], index: 1, kind: input, shape index: {}]   ;;  %s8977_s2 = inlined_call_operand.vmem [shape: f32[1,512], index: 2, kind: input, shape index: {}]   ;;  %s8978_s3 = inlined_call_operand.vmem [shape: bf16[512,128], index: 3, kind: input, shape index: {}]   ;;  %s8979_s4 = inlined_call_operand.vmem [shape: f32[1,128], index: 4, kind: input, shape index: {}]   ;;  %s8980_s5 = inlined_call_operand.vmem [shape: f32[16,128], index: 5, kind: output, shape index: {}]  }
   0x1   :  { %s7964_s20 = smov 0   ;;  %s7966_s21 = smov 0  }
   0x2   :  { %s7968_s22 = smov 0  }
   0x3 LB: > { %s24_s23 = sadd.s32 1, %s7923_s21  ;;  %p43_p1 = scmp.ne.s32.totalorder %s7915_s19, %s7911_s18  ;;  %s7927_s22 = sphi %s7968_s22, %s15_s22   ;;  %s7923_s21 = sphi %s7966_s21, %s8984_s21   ;;  %s7919_s20 = sphi %s7964_s20, %s8983_s20   ;;  %s7915_s19 = sphi %s7962_s19, %s8982_s19   ;;  %s7911_s18 = sphi %s7960_s18, %s8981_s18  }
   0x4   : > { %p25_p0 = scmp.ge.s32.totalorder %s24_s23, 2  ;;  %p44_p2 = scmp.eq.s32.totalorder %s7927_s22, 0 }
   0x5   : > { %s36_s25 = sadd.s32 1, %s7915_s19  ;;  %p5967_p5 = scmp.ge.s32.totalorder %s7927_s22, 2 }
   0x6   : > { %s8986_s23 = smov (%p25_p0, %s24_s23), 0  ;;  %p45_p3 = por %p44_p2, %p43_p1 }
   0x7   : > { %s32_s24 = ssub.s32 %s7923_s21, %s8986_s23  ;;  %193 = sbr.rel (%p5967_p5) target bundleno = 28 (0x1c), region = 28 }
   0x8   : > { %p34_p4 = scmp.eq.s32.totalorder %s32_s24, 0 }
   0xa   : > { %s7995_s26 = scalar_select %p34_p4, %s7915_s19, %s36_s25  }
   0xc   : > { %196 = sbr.rel (!%p45_p3) target bundleno = 28 (0x1c), region = 32  ;;  %s198_s27 = sand.u32 (%p45_p3), 1, %s7915_s19  }
   0xd   : > { %s6708_s28 = smul.u32 (%p45_p3), 84, %s7923_s21 }
   0xe   : > { %s6754_s29 = smul.u32 (%p45_p3), 168, %s198_s27 }
   0xf   : > { %s8003_s7 = scalar_lea.vmem (%p45_p3), %s8975_s0, %s6708_s28 }
  0x10   : > { %v221_v0 = vld [vmem:[%s8003_s7] sm:$0xff] (%p45_p3)  ;;  %v223_v1 = vld [vmem:[%s8003_s7 + $0x8] sm:$0xff] (%p45_p3)  ;;  %v225_v2 = vld [vmem:[%s8003_s7 + $0x10] sm:$0xff] (%p45_p3)  ;;  %s8008_s8 = scalar_lea.vmem (%p45_p3), [#allocation3], %s6754_s29 }
  0x11   : > { %222 = vst [vmem:[%s8008_s8] sm:$0xff] %v221_v0  ;;  %224 = vst [vmem:[%s8008_s8 + $0x8] sm:$0xff] %v223_v1  ;;  %v227_v3 = vld [vmem:[%s8003_s7 + $0x18] sm:$0xff]  ;;  %v229_v4 = vld [vmem:[%s8003_s7 + $0x20] sm:$0xff] }
  0x12   : > { %226 = vst [vmem:[%s8008_s8 + $0x10] sm:$0xff] %v225_v2  ;;  %v231_v5 = vld [vmem:[%s8003_s7 + $0x28] sm:$0xff]  ;;  %228 = vst [vmem:[%s8008_s8 + $0x18] sm:$0xff] %v227_v3  ;;  %v233_v6 = vld [vmem:[%s8003_s7 + $0x30] sm:$0xff] }
  0x13   : > { %230 = vst [vmem:[%s8008_s8 + $0x20] sm:$0xff] %v229_v4  ;;  %232 = vst [vmem:[%s8008_s8 + $0x28] sm:$0xff] %v231_v5  ;;  %v235_v7 = vld [vmem:[%s8003_s7 + $0x38] sm:$0xff]  ;;  %v237_v8 = vld [vmem:[%s8003_s7 + $0x40] sm:$0xff] }
  0x14   : > { %234 = vst [vmem:[%s8008_s8 + $0x30] sm:$0xff] %v233_v6  ;;  %236 = vst [vmem:[%s8008_s8 + $0x38] sm:$0xff] %v235_v7  ;;  %v239_v9 = vld [vmem:[%s8003_s7 + $0x48] sm:$0xff]  ;;  %v243_v11 = vld [vmem:[%s8003_s7 + $0xb0] sm:$0xff] }
  0x15   : > { %238 = vst [vmem:[%s8008_s8 + $0x40] sm:$0xff] %v237_v8  ;;  %v241_v10 = vld [vmem:[%s8003_s7 + $0xa8] sm:$0xff]  ;;  %240 = vst [vmem:[%s8008_s8 + $0x48] sm:$0xff] %v239_v9  ;;  %v245_v12 = vld [vmem:[%s8003_s7 + $0xb8] sm:$0xff] }
  0x16   : > { %242 = vst [vmem:[%s8008_s8 + $0x54] sm:$0xff] %v241_v10  ;;  %244 = vst [vmem:[%s8008_s8 + $0x5c] sm:$0xff] %v243_v11  ;;  %v247_v13 = vld [vmem:[%s8003_s7 + $0xc0] sm:$0xff]  ;;  %v249_v14 = vld [vmem:[%s8003_s7 + $0xc8] sm:$0xff] }
  0x17   : > { %246 = vst [vmem:[%s8008_s8 + $0x64] sm:$0xff] %v245_v12  ;;  %248 = vst [vmem:[%s8008_s8 + $0x6c] sm:$0xff] %v247_v13  ;;  %v251_v15 = vld [vmem:[%s8003_s7 + $0xd0] sm:$0xff]  ;;  %v253_v16 = vld [vmem:[%s8003_s7 + $0xd8] sm:$0xff] }
  0x18   : > { %250 = vst [vmem:[%s8008_s8 + $0x74] sm:$0xff] %v249_v14  ;;  %v255_v17 = vld [vmem:[%s8003_s7 + $0xe0] sm:$0xff]  ;;  %252 = vst [vmem:[%s8008_s8 + $0x7c] sm:$0xff] %v251_v15  ;;  %v257_v18 = vld [vmem:[%s8003_s7 + $0xe8] sm:$0xff] }
  0x19   : > { %254 = vst [vmem:[%s8008_s8 + $0x84] sm:$0xff] %v253_v16  ;;  %256 = vst [vmem:[%s8008_s8 + $0x8c] sm:$0xff] %v255_v17  ;;  %v259_v19 = vld [vmem:[%s8003_s7 + $0xf0] sm:$0xff]  ;;  %v5971_v21 = vld [vmem:[%s8003_s7 + $0xf8] sm:$0xf] }
  0x1a   : > { %v5969_v20 = vld [vmem:[%s8003_s7 + $0x50] sm:$0xf]  ;;  %258 = vst [vmem:[%s8008_s8 + $0x94] sm:$0xff] %v257_v18  ;;  %260 = vst [vmem:[%s8008_s8 + $0x9c] sm:$0xff] %v259_v19 }
  0x1b   : > { %5970 = vst [vmem:[%s8008_s8 + $0x50] sm:$0xf] %v5969_v20  ;;  %5972 = vst [vmem:[%s8008_s8 + $0xa4] sm:$0xf] %v5971_v21 }
  0x1c PF: > { %p5973_p6 = scmp.ge.s32.totalorder %s7927_s22, 1  ;;  %p287_p7 = scmp.lt.s32.totalorder %s7927_s22, 3 }
  0x1e   : > { %p288_p8 = pnand %p5973_p6, %p287_p7 }
  0x1f   : > { %s294_s9 = sand.u32 (!%p288_p8), 1, %s7911_s18   ;;  %s329_s10 = smul.u32 (!%p288_p8), 336, %s7919_s20 }
  0x20   : > { %291 = sbr.rel (%p288_p8) target bundleno = 1173 (0x495), region = 62  ;;  %p5976_p10 = scmp.ne.s32.totalorder (!%p288_p8), %s7919_s20, 0 }
  0x21   : > { %s6755_s11 = smul.u32 (!%p288_p8), 168, %s294_s9  ;;  %p330_p9 = scmp.lt.s32.totalorder (!%p288_p8), %s329_s10, 671 }
  0x23   : > { %s8060_s16 = scalar_lea.vmem (!%p288_p8), [#allocation3], %s6755_s11 }
  0x25   : > { %s8988_s10 = smov (!%p330_p9, %s329_s10), 671  ;;  %346 = sbr.rel (%p5976_p10) target bundleno = 54 (0x36), region = 70 }
  0x26   : > { %s6709_s12 = sshll.u32 %s8988_s10, 4 }
  0x27   : > { %s8058_s15 = scalar_lea.vmem %s8976_s1, %s6709_s12 }
  0x2a   : > { %v349_v22 = vlaneseq  ;;  %v347_v24 = vld [vmem:[%s8977_s2] sm:$0xf] }
  0x2c   : > { %v350_v23 = vshrl.u32 %v349_v22, 7 }
  0x2e   : > { %v351_v25 = vsub.s32 0, %v350_v23  ;;  %v355_v26 = vsub.s32 1, %v350_v23  ;;  %v359_v27 = vsub.s32 2, %v350_v23  ;;  %v363_v28 = vsub.s32 3, %v350_v23 }
  0x30   : > { %v352_v29 = vrot.slane %v347_v24, %v351_v25  ;;  %v356_v30 = vrot.slane %v347_v24, %v355_v26  ;;  %v360_v31 = vrot.slane %v347_v24, %v359_v27  ;;  %v364_v32 = vrot.slane %v347_v24, %v363_v28 }
  0x32   : > { %369 = vst [vmem:[#allocation2 + $0x30] sm:$0xff] %v352_v29  ;;  %373 = vst [vmem:[#allocation2 + $0x8] sm:$0xff] %v352_v29 }
  0x33   : > { %370 = vst [vmem:[#allocation2] sm:$0xff] %v356_v30  ;;  %374 = vst [vmem:[#allocation2 + $0x20] sm:$0xff] %v356_v30 }
  0x34   : > { %371 = vst [vmem:[#allocation2 + $0x18] sm:$0xff] %v360_v31  ;;  %375 = vst [vmem:[#allocation2 + $0x28] sm:$0xff] %v360_v31 }
  0x35   : > { %372 = vst [vmem:[#allocation2 + $0x10] sm:$0xff] %v364_v32  ;;  %376 = vst [vmem:[#allocation2 + $0x38] sm:$0xff] %v364_v32 }
  0x36 PF: > { %v6797_v33 = vld [vmem:[%s8058_s15 + $0xe4] ss:$16 sps:$4 sm:$0xff]   ;;  %v6801_v35 = vld [vmem:[%s8058_s15 + $0xe0] ss:$16 sps:$4 sm:$0xff]   ;;  %p6670_p11 = scmp.ne.s32.totalorder %s7919_s20, 1 }
  0x37   : > { %v6799_v34 = vld [vmem:[%s8058_s15 + $0x2e4] ss:$16 sps:$4 sm:$0xff]   ;;  %4545 = vmatprep.subr.bf16.mxu0 %v6797_v33  ;;  %v6802_v36 = vld [vmem:[%s8058_s15 + $0x2e0] ss:$16 sps:$4 sm:$0xff]  }
  0x38   : > { %4588 = vmatprep.subr.bf16.mxu1 %v6799_v34  ;;  %v6803_v37 = vld [vmem:[%s8058_s15 + $0xc4] ss:$16 sps:$4 sm:$0xff]   ;;  %4546 = vmatpush1.bf16.msra.mxu0 %v6801_v35  ;;  %v6807_v39 = vld [vmem:[%s8058_s15 + $0xc0] ss:$16 sps:$4 sm:$0xff]  }
  0x39   : > { %4589 = vmatpush1.bf16.msra.mxu1 %v6802_v36  ;;  %v6805_v38 = vld [vmem:[%s8058_s15 + $0x2c4] ss:$16 sps:$4 sm:$0xff]   ;;  %4547 = vmatprep.subr.bf16.mxu0 %v6803_v37  ;;  %v6808_v40 = vld [vmem:[%s8058_s15 + $0x2c0] ss:$16 sps:$4 sm:$0xff]  }
  0x3a   : > { %4590 = vmatprep.subr.bf16.mxu1 %v6805_v38  ;;  %v6809_v41 = vld [vmem:[%s8058_s15 + $0xa4] ss:$16 sps:$4 sm:$0xff]   ;;  %v6813_v43 = vld [vmem:[%s8058_s15 + $0xa0] ss:$16 sps:$4 sm:$0xff]  }
  0x3b   : > { %v6811_v42 = vld [vmem:[%s8058_s15 + $0x2a4] ss:$16 sps:$4 sm:$0xff]   ;;  %v6814_v44 = vld [vmem:[%s8058_s15 + $0x2a0] ss:$16 sps:$4 sm:$0xff]  }
  0x3c   : > { %4548 = vmatpush1.bf16.msra.mxu0 %v6807_v39  ;;  %v6815_v45 = vld [vmem:[%s8058_s15 + $0x84] ss:$16 sps:$4 sm:$0xff]   ;;  %v6819_v47 = vld [vmem:[%s8058_s15 + $0x80] ss:$16 sps:$4 sm:$0xff]  }
  0x3d   : > { %4591 = vmatpush1.bf16.msra.mxu1 %v6808_v40  ;;  %4549 = vmatprep.subr.bf16.mxu0 %v6809_v41  ;;  %v6817_v46 = vld [vmem:[%s8058_s15 + $0x284] ss:$16 sps:$4 sm:$0xff]   ;;  %v6820_v48 = vld [vmem:[%s8058_s15 + $0x280] ss:$16 sps:$4 sm:$0xff]  }
  0x3e   : > { %4592 = vmatprep.subr.bf16.mxu1 %v6811_v42  ;;  %v6821_v49 = vld [vmem:[%s8058_s15 + $0x64] ss:$16 sps:$4 sm:$0xff]   ;;  %v6825_v51 = vld [vmem:[%s8058_s15 + $0x60] ss:$16 sps:$4 sm:$0xff]  }
  0x3f   : > { %v6823_v50 = vld [vmem:[%s8058_s15 + $0x264] ss:$16 sps:$4 sm:$0xff]   ;;  %v6826_v52 = vld [vmem:[%s8058_s15 + $0x260] ss:$16 sps:$4 sm:$0xff]  }
  0x40   : > { %4550 = vmatpush1.bf16.msra.mxu0 %v6813_v43  ;;  %v6827_v53 = vld [vmem:[%s8058_s15 + $0x44] ss:$16 sps:$4 sm:$0xff]   ;;  %v6831_v55 = vld [vmem:[%s8058_s15 + $0x40] ss:$16 sps:$4 sm:$0xff]  }
  0x41   : > { %4593 = vmatpush1.bf16.msra.mxu1 %v6814_v44  ;;  %4551 = vmatprep.subr.bf16.mxu0 %v6815_v45  ;;  %v6829_v54 = vld [vmem:[%s8058_s15 + $0x244] ss:$16 sps:$4 sm:$0xff]   ;;  %v6832_v56 = vld [vmem:[%s8058_s15 + $0x240] ss:$16 sps:$4 sm:$0xff]  }
  0x42   : > { %4594 = vmatprep.subr.bf16.mxu1 %v6817_v46  ;;  %v6833_v57 = vld [vmem:[%s8058_s15 + $0x24] ss:$16 sps:$4 sm:$0xff]   ;;  %v6837_v59 = vld [vmem:[%s8058_s15 + $0x20] ss:$16 sps:$4 sm:$0xff]  }
  0x43   : > { %v6835_v58 = vld [vmem:[%s8058_s15 + $0x224] ss:$16 sps:$4 sm:$0xff]   ;;  %v6838_v60 = vld [vmem:[%s8058_s15 + $0x220] ss:$16 sps:$4 sm:$0xff]  }
  0x44   : > { %4552 = vmatpush1.bf16.msra.mxu0 %v6819_v47  ;;  %v6839_v61 = vld [vmem:[%s8058_s15 + $0x4] ss:$16 sps:$4 sm:$0xff]   ;;  %v6843_v63 = vld [vmem:[%s8058_s15] ss:$16 sps:$4 sm:$0xff]  }
  0x45   : > { %4595 = vmatpush1.bf16.msra.mxu1 %v6820_v48  ;;  %4553 = vmatprep.subr.bf16.mxu0 %v6821_v49  ;;  %v6841_v62 = vld [vmem:[%s8058_s15 + $0x204] ss:$16 sps:$4 sm:$0xff]   ;;  %v6844_v0 = vld [vmem:[%s8058_s15 + $0x200] ss:$16 sps:$4 sm:$0xff]  }
  0x46   : > { %4596 = vmatprep.subr.bf16.mxu1 %v6823_v50  ;;  %v6845_v1 = vld [vmem:[%s8058_s15 + $0x1e4] ss:$16 sps:$4 sm:$0xff]   ;;  %v6849_v3 = vld [vmem:[%s8058_s15 + $0x1e0] ss:$16 sps:$4 sm:$0xff]  }
  0x47   : > { %v6847_v2 = vld [vmem:[%s8058_s15 + $0x3e4] ss:$16 sps:$4 sm:$0xff]   ;;  %v6850_v4 = vld [vmem:[%s8058_s15 + $0x3e0] ss:$16 sps:$4 sm:$0xff]  }
  0x48   : > { %4554 = vmatpush1.bf16.msra.mxu0 %v6825_v51  ;;  %v6851_v5 = vld [vmem:[%s8058_s15 + $0x1c4] ss:$16 sps:$4 sm:$0xff]   ;;  %v6855_v7 = vld [vmem:[%s8058_s15 + $0x1c0] ss:$16 sps:$4 sm:$0xff]  }
  0x49   : > { %4597 = vmatpush1.bf16.msra.mxu1 %v6826_v52  ;;  %4555 = vmatprep.subr.bf16.mxu0 %v6827_v53  ;;  %v6853_v6 = vld [vmem:[%s8058_s15 + $0x3c4] ss:$16 sps:$4 sm:$0xff]   ;;  %v6856_v8 = vld [vmem:[%s8058_s15 + $0x3c0] ss:$16 sps:$4 sm:$0xff]  }
  0x4a   : > { %4598 = vmatprep.subr.bf16.mxu1 %v6829_v54  ;;  %v6857_v9 = vld [vmem:[%s8058_s15 + $0x1a4] ss:$16 sps:$4 sm:$0xff]   ;;  %v6861_v11 = vld [vmem:[%s8058_s15 + $0x1a0] ss:$16 sps:$4 sm:$0xff]  }
  0x4b   : > { %v6859_v10 = vld [vmem:[%s8058_s15 + $0x3a4] ss:$16 sps:$4 sm:$0xff]   ;;  %v6862_v12 = vld [vmem:[%s8058_s15 + $0x3a0] ss:$16 sps:$4 sm:$0xff]  }
  0x4c   : > { %4556 = vmatpush1.bf16.msra.mxu0 %v6831_v55  ;;  %v6863_v13 = vld [vmem:[%s8058_s15 + $0x184] ss:$16 sps:$4 sm:$0xff]   ;;  %v6867_v15 = vld [vmem:[%s8058_s15 + $0x180] ss:$16 sps:$4 sm:$0xff]  }
  0x4d   : > { %4599 = vmatpush1.bf16.msra.mxu1 %v6832_v56  ;;  %4557 = vmatprep.subr.bf16.mxu0 %v6833_v57  ;;  %v6865_v14 = vld [vmem:[%s8058_s15 + $0x384] ss:$16 sps:$4 sm:$0xff]   ;;  %v6868_v16 = vld [vmem:[%s8058_s15 + $0x380] ss:$16 sps:$4 sm:$0xff]  }
  0x4e   : > { %4600 = vmatprep.subr.bf16.mxu1 %v6835_v58  ;;  %v6869_v17 = vld [vmem:[%s8058_s15 + $0x164] ss:$16 sps:$4 sm:$0xff]   ;;  %v6873_v21 = vld [vmem:[%s8058_s15 + $0x160] ss:$16 sps:$4 sm:$0xff]  }
  0x4f   : > { %v6895_v18 = vld [vmem:[%s8060_s16 + $0x4] ss:$84 sps:$4 sm:$0xff]   ;;  %v6898_v20 = vld [vmem:[%s8060_s16 + $0xc] ss:$84 sps:$4 sm:$0xff]   ;;  %v6896_v38 = vld [vmem:[%s8060_s16 + $0x8] ss:$84 sps:$4 sm:$0xff]  }
  0x50   : > { %4558 = vmatpush1.bf16.msra.mxu0 %v6837_v59  ;;  %v6871_v19 = vld [vmem:[%s8058_s15 + $0x364] ss:$16 sps:$4 sm:$0xff]   ;;  %4577 = vmatprep.mubr.bf16.mxu0 %v6895_v18  ;;  %v6874_v22 = vld [vmem:[%s8058_s15 + $0x360] ss:$16 sps:$4 sm:$0xff]  }
  0x51   : > { %4601 = vmatpush1.bf16.msra.mxu1 %v6838_v60  ;;  %4559 = vmatprep.subr.bf16.mxu0 %v6839_v61  ;;  %v6875_v23 = vld [vmem:[%s8058_s15 + $0x144] ss:$16 sps:$4 sm:$0xff]   ;;  %v6879_v25 = vld [vmem:[%s8058_s15 + $0x140] ss:$16 sps:$4 sm:$0xff]  }
  0x52   : > { %4602 = vmatprep.subr.bf16.mxu1 %v6841_v62  ;;  %4620 = vmatprep.mubr.bf16.mxu1 %v6898_v20  ;;  %v6877_v24 = vld [vmem:[%s8058_s15 + $0x344] ss:$16 sps:$4 sm:$0xff]   ;;  %v6880_v26 = vld [vmem:[%s8058_s15 + $0x340] ss:$16 sps:$4 sm:$0xff]  }
  0x53   : > { %v6881_v27 = vld [vmem:[%s8058_s15 + $0x124] ss:$16 sps:$4 sm:$0xff]   ;;  %v6885_v29 = vld [vmem:[%s8058_s15 + $0x120] ss:$16 sps:$4 sm:$0xff]  }
  0x54   : > { %4560 = vmatpush1.bf16.msra.mxu0 %v6843_v63  ;;  %v6883_v28 = vld [vmem:[%s8058_s15 + $0x324] ss:$16 sps:$4 sm:$0xff]   ;;  %v6886_v30 = vld [vmem:[%s8058_s15 + $0x320] ss:$16 sps:$4 sm:$0xff]  }
  0x55   : > { %4603 = vmatpush1.bf16.msra.mxu1 %v6844_v0  ;;  %4561 = vmatprep.subr.bf16.mxu0 %v6845_v1  ;;  %v6887_v31 = vld [vmem:[%s8058_s15 + $0x104] ss:$16 sps:$4 sm:$0xff]   ;;  %v6891_v33 = vld [vmem:[%s8058_s15 + $0x100] ss:$16 sps:$4 sm:$0xff]  }
  0x56   : > { %4604 = vmatprep.subr.bf16.mxu1 %v6847_v2  ;;  %v6889_v32 = vld [vmem:[%s8058_s15 + $0x304] ss:$16 sps:$4 sm:$0xff]   ;;  %v6892_v34 = vld [vmem:[%s8058_s15 + $0x300] ss:$16 sps:$4 sm:$0xff]  }
  0x57   : > { %v6901_v35 = vld [vmem:[%s8058_s15 + $0x4e4] ss:$16 sps:$4 sm:$0xff]   ;;  %v6899_v39 = vld [vmem:[%s8058_s15 + $0x4e0] ss:$16 sps:$4 sm:$0xff]  }
  0x58   : > { %4562 = vmatpush2.bf16.msra.mxu0 %v6849_v3  ;;  %v6904_v36 = vld [vmem:[%s8058_s15 + $0x6e4] ss:$16 sps:$4 sm:$0xff]   ;;  %v6902_v40 = vld [vmem:[%s8058_s15 + $0x6e0] ss:$16 sps:$4 sm:$0xff]  }
  0x59   : > { %4605 = vmatpush2.bf16.msra.mxu1 %v6850_v4  ;;  %4563 = vmatprep.subr.bf16.mxu0 %v6851_v5  ;;  %v6893_v37 = vld [vmem:[%s8060_s16] ss:$84 sps:$4 sm:$0xff]   ;;  %v7000_v4 = vld [vmem:[%s8060_s16 + $0x1c] ss:$84 sps:$4 sm:$0xff]  }
  0x5a   : > { %4606 = vmatprep.subr.bf16.mxu1 %v6853_v6  ;;  %v6907_v41 = vld [vmem:[%s8058_s15 + $0x4c4] ss:$16 sps:$4 sm:$0xff]   ;;  %v6905_v43 = vld [vmem:[%s8058_s15 + $0x4c0] ss:$16 sps:$4 sm:$0xff]  }
  0x5b   : > { %v6910_v42 = vld [vmem:[%s8058_s15 + $0x6c4] ss:$16 sps:$4 sm:$0xff]   ;;  %v6908_v44 = vld [vmem:[%s8058_s15 + $0x6c0] ss:$16 sps:$4 sm:$0xff]  }
  0x5c   : > { %4564 = vmatpush2.bf16.msra.mxu0 %v6855_v7  ;;  %v6913_v45 = vld [vmem:[%s8058_s15 + $0x4a4] ss:$16 sps:$4 sm:$0xff]   ;;  %v6911_v47 = vld [vmem:[%s8058_s15 + $0x4a0] ss:$16 sps:$4 sm:$0xff]  }
  0x5d   : > { %4607 = vmatpush2.bf16.msra.mxu1 %v6856_v8  ;;  %4565 = vmatprep.subr.bf16.mxu0 %v6857_v9  ;;  %v6916_v46 = vld [vmem:[%s8058_s15 + $0x6a4] ss:$16 sps:$4 sm:$0xff]   ;;  %v6914_v48 = vld [vmem:[%s8058_s15 + $0x6a0] ss:$16 sps:$4 sm:$0xff]  }
  0x5e   : > { %4608 = vmatprep.subr.bf16.mxu1 %v6859_v10  ;;  %v6919_v49 = vld [vmem:[%s8058_s15 + $0x484] ss:$16 sps:$4 sm:$0xff]   ;;  %v6917_v51 = vld [vmem:[%s8058_s15 + $0x480] ss:$16 sps:$4 sm:$0xff]  }
  0x5f   : > { %v6922_v50 = vld [vmem:[%s8058_s15 + $0x684] ss:$16 sps:$4 sm:$0xff]   ;;  %v6920_v52 = vld [vmem:[%s8058_s15 + $0x680] ss:$16 sps:$4 sm:$0xff]  }
  0x60   : > { %4566 = vmatpush2.bf16.msra.mxu0 %v6861_v11  ;;  %v6925_v53 = vld [vmem:[%s8058_s15 + $0x464] ss:$16 sps:$4 sm:$0xff]   ;;  %v6923_v55 = vld [vmem:[%s8058_s15 + $0x460] ss:$16 sps:$4 sm:$0xff]  }
  0x61   : > { %4609 = vmatpush2.bf16.msra.mxu1 %v6862_v12  ;;  %4567 = vmatprep.subr.bf16.mxu0 %v6863_v13  ;;  %v6928_v54 = vld [vmem:[%s8058_s15 + $0x664] ss:$16 sps:$4 sm:$0xff]   ;;  %v6926_v56 = vld [vmem:[%s8058_s15 + $0x660] ss:$16 sps:$4 sm:$0xff]  }
  0x62   : > { %4610 = vmatprep.subr.bf16.mxu1 %v6865_v14  ;;  %v6931_v57 = vld [vmem:[%s8058_s15 + $0x444] ss:$16 sps:$4 sm:$0xff]   ;;  %v6929_v59 = vld [vmem:[%s8058_s15 + $0x440] ss:$16 sps:$4 sm:$0xff]  }
  0x63   : > { %v6934_v58 = vld [vmem:[%s8058_s15 + $0x644] ss:$16 sps:$4 sm:$0xff]   ;;  %v6932_v60 = vld [vmem:[%s8058_s15 + $0x640] ss:$16 sps:$4 sm:$0xff]  }
  0x64   : > { %4568 = vmatpush2.bf16.msra.mxu0 %v6867_v15  ;;  %v6937_v61 = vld [vmem:[%s8058_s15 + $0x424] ss:$16 sps:$4 sm:$0xff]   ;;  %v6935_v63 = vld [vmem:[%s8058_s15 + $0x420] ss:$16 sps:$4 sm:$0xff]  }
  0x65   : > { %4611 = vmatpush2.bf16.msra.mxu1 %v6868_v16  ;;  %4569 = vmatprep.subr.bf16.mxu0 %v6869_v17  ;;  %v6940_v62 = vld [vmem:[%s8058_s15 + $0x624] ss:$16 sps:$4 sm:$0xff]   ;;  %v6938_v0 = vld [vmem:[%s8058_s15 + $0x620] ss:$16 sps:$4 sm:$0xff]  }
  0x66   : > { %4612 = vmatprep.subr.bf16.mxu1 %v6871_v19  ;;  %v6943_v1 = vld [vmem:[%s8058_s15 + $0x404] ss:$16 sps:$4 sm:$0xff]   ;;  %v6941_v5 = vld [vmem:[%s8058_s15 + $0x400] ss:$16 sps:$4 sm:$0xff]  }
  0x67   : > { %v6946_v2 = vld [vmem:[%s8058_s15 + $0x604] ss:$16 sps:$4 sm:$0xff]   ;;  %v6944_v6 = vld [vmem:[%s8058_s15 + $0x600] ss:$16 sps:$4 sm:$0xff]  }
  0x68   : > { %4570 = vmatpush2.bf16.msra.mxu0 %v6873_v21  ;;  %v6997_v3 = vld [vmem:[%s8060_s16 + $0x14] ss:$84 sps:$4 sm:$0xff]  }
  0x69   : > { %4613 = vmatpush2.bf16.msra.mxu1 %v6874_v22  ;;  %4571 = vmatprep.subr.bf16.mxu0 %v6875_v23  ;;  %v6949_v7 = vld [vmem:[%s8058_s15 + $0x5e4] ss:$16 sps:$4 sm:$0xff]   ;;  %v6947_v9 = vld [vmem:[%s8058_s15 + $0x5e0] ss:$16 sps:$4 sm:$0xff]  }
  0x6a   : > { %4614 = vmatprep.subr.bf16.mxu1 %v6877_v24  ;;  %v6952_v8 = vld [vmem:[%s8058_s15 + $0x7e4] ss:$16 sps:$4 sm:$0xff]   ;;  %v6950_v10 = vld [vmem:[%s8058_s15 + $0x7e0] ss:$16 sps:$4 sm:$0xff]  }
  0x6b   : > { %v6955_v11 = vld [vmem:[%s8058_s15 + $0x5c4] ss:$16 sps:$4 sm:$0xff]   ;;  %v6953_v13 = vld [vmem:[%s8058_s15 + $0x5c0] ss:$16 sps:$4 sm:$0xff]  }
  0x6c   : > { %4572 = vmatpush2.bf16.msra.mxu0 %v6879_v25  ;;  %v6958_v12 = vld [vmem:[%s8058_s15 + $0x7c4] ss:$16 sps:$4 sm:$0xff]   ;;  %v6956_v14 = vld [vmem:[%s8058_s15 + $0x7c0] ss:$16 sps:$4 sm:$0xff]  }
  0x6d   : > { %4615 = vmatpush2.bf16.msra.mxu1 %v6880_v26  ;;  %4573 = vmatprep.subr.bf16.mxu0 %v6881_v27  ;;  %v6961_v15 = vld [vmem:[%s8058_s15 + $0x5a4] ss:$16 sps:$4 sm:$0xff]   ;;  %v6959_v17 = vld [vmem:[%s8058_s15 + $0x5a0] ss:$16 sps:$4 sm:$0xff]  }
  0x6e   : > { %4616 = vmatprep.subr.bf16.mxu1 %v6883_v28  ;;  %v6964_v16 = vld [vmem:[%s8058_s15 + $0x7a4] ss:$16 sps:$4 sm:$0xff]   ;;  %v6962_v18 = vld [vmem:[%s8058_s15 + $0x7a0] ss:$16 sps:$4 sm:$0xff]  }
  0x6f   : > { %v6967_v19 = vld [vmem:[%s8058_s15 + $0x584] ss:$16 sps:$4 sm:$0xff]   ;;  %v6965_v21 = vld [vmem:[%s8058_s15 + $0x580] ss:$16 sps:$4 sm:$0xff]  }
  0x70   : > { %4574 = vmatpush2.bf16.msra.mxu0 %v6885_v29  ;;  %v6970_v20 = vld [vmem:[%s8058_s15 + $0x784] ss:$16 sps:$4 sm:$0xff]   ;;  %v6968_v22 = vld [vmem:[%s8058_s15 + $0x780] ss:$16 sps:$4 sm:$0xff]  }
  0x71   : > { %4617 = vmatpush2.bf16.msra.mxu1 %v6886_v30  ;;  %4575 = vmatprep.subr.bf16.mxu0 %v6887_v31  ;;  %v6973_v23 = vld [vmem:[%s8058_s15 + $0x564] ss:$16 sps:$4 sm:$0xff]   ;;  %v6971_v25 = vld [vmem:[%s8058_s15 + $0x560] ss:$16 sps:$4 sm:$0xff]  }
  0x72   : > { %4618 = vmatprep.subr.bf16.mxu1 %v6889_v32  ;;  %v6976_v24 = vld [vmem:[%s8058_s15 + $0x764] ss:$16 sps:$4 sm:$0xff]   ;;  %v6974_v26 = vld [vmem:[%s8058_s15 + $0x760] ss:$16 sps:$4 sm:$0xff]  }
  0x73   : > { %v6979_v27 = vld [vmem:[%s8058_s15 + $0x544] ss:$16 sps:$4 sm:$0xff]   ;;  %v6977_v29 = vld [vmem:[%s8058_s15 + $0x540] ss:$16 sps:$4 sm:$0xff]  }
  0x74   : > { %4576 = vmatpush2.bf16.msra.mxu0 %v6891_v33  ;;  %v6982_v28 = vld [vmem:[%s8058_s15 + $0x744] ss:$16 sps:$4 sm:$0xff]   ;;  %v6980_v30 = vld [vmem:[%s8058_s15 + $0x740] ss:$16 sps:$4 sm:$0xff]  }
  0x75   : > { %4619 = vmatpush2.bf16.msra.mxu1 %v6892_v34  ;;  %4631 = vmatprep.subr.bf16.mxu0 %v6901_v35  ;;  %v6985_v31 = vld [vmem:[%s8058_s15 + $0x524] ss:$16 sps:$4 sm:$0xff]   ;;  %v6983_v33 = vld [vmem:[%s8058_s15 + $0x520] ss:$16 sps:$4 sm:$0xff]  }
  0x76   : > { %4674 = vmatprep.subr.bf16.mxu1 %v6904_v36  ;;  %v6988_v32 = vld [vmem:[%s8058_s15 + $0x724] ss:$16 sps:$4 sm:$0xff]   ;;  %v6986_v34 = vld [vmem:[%s8058_s15 + $0x720] ss:$16 sps:$4 sm:$0xff]  }
  0x77   : > { %4578 = vmatmul.mubr.bf16.vlgmr.msra.gmra.mxu0 %v6893_v37  ;;  %v6991_v35 = vld [vmem:[%s8058_s15 + $0x504] ss:$16 sps:$4 sm:$0xff]   ;;  %v6989_v37 = vld [vmem:[%s8058_s15 + $0x500] ss:$16 sps:$4 sm:$0xff]  }
  0x78   : > { %4621 = vmatmul.mubr.bf16.vlgmr.msra.gmra.mxu1 %v6896_v38  ;;  %4632 = vmatpush1.bf16.msra.mxu0 %v6899_v39  ;;  %v6994_v36 = vld [vmem:[%s8058_s15 + $0x704] ss:$16 sps:$4 sm:$0xff]   ;;  %v6992_v38 = vld [vmem:[%s8058_s15 + $0x700] ss:$16 sps:$4 sm:$0xff]  }
  0x79   : > { %4675 = vmatpush1.bf16.msra.mxu1 %v6902_v40  ;;  %4633 = vmatprep.subr.bf16.mxu0 %v6907_v41  ;;  %v7003_v39 = vld [vmem:[%s8058_s15 + $0x8e4] ss:$16 sps:$4 sm:$0xff]  }
  0x7a   : > { %4676 = vmatprep.subr.bf16.mxu1 %v6910_v42  ;;  %4663 = vmatprep.mubr.bf16.mxu0 %v6997_v3  ;;  %v7006_v40 = vld [vmem:[%s8058_s15 + $0xae4] ss:$16 sps:$4 sm:$0xff]  }
  0x7b   : > { %4706 = vmatprep.mubr.bf16.mxu1 %v7000_v4  ;;  %v6995_v41 = vld [vmem:[%s8060_s16 + $0x10] ss:$84 sps:$4 sm:$0xff]   ;;  %v6998_v42 = vld [vmem:[%s8060_s16 + $0x18] ss:$84 sps:$4 sm:$0xff]  }
  0x7c   : > { %4634 = vmatpush1.bf16.msra.mxu0 %v6905_v43  ;;  %v7001_v43 = vld [vmem:[%s8058_s15 + $0x8e0] ss:$16 sps:$4 sm:$0xff]   ;;  %v7039_v3 = vld [vmem:[%s8058_s15 + $0x824] ss:$16 sps:$4 sm:$0xff]  }
  0x7d   : > { %4677 = vmatpush1.bf16.msra.mxu1 %v6908_v44  ;;  %4635 = vmatprep.subr.bf16.mxu0 %v6913_v45  ;;  %v7004_v44 = vld [vmem:[%s8058_s15 + $0xae0] ss:$16 sps:$4 sm:$0xff]   ;;  %v7009_v45 = vld [vmem:[%s8058_s15 + $0x8c4] ss:$16 sps:$4 sm:$0xff]  }
  0x7e   : > { %4678 = vmatprep.subr.bf16.mxu1 %v6916_v46  ;;  %v7012_v46 = vld [vmem:[%s8058_s15 + $0xac4] ss:$16 sps:$4 sm:$0xff]  }
  0x7f   : > { %v7042_v4 = vld [vmem:[%s8058_s15 + $0xa24] ss:$16 sps:$4 sm:$0xff]  }
  0x80   : > { %4636 = vmatpush1.bf16.msra.mxu0 %v6911_v47  ;;  %v7007_v47 = vld [vmem:[%s8058_s15 + $0x8c0] ss:$16 sps:$4 sm:$0xff]  }
  0x81   : > { %4679 = vmatpush1.bf16.msra.mxu1 %v6914_v48  ;;  %4637 = vmatprep.subr.bf16.mxu0 %v6919_v49  ;;  %v7010_v48 = vld [vmem:[%s8058_s15 + $0xac0] ss:$16 sps:$4 sm:$0xff]   ;;  %v7015_v49 = vld [vmem:[%s8058_s15 + $0x8a4] ss:$16 sps:$4 sm:$0xff]  }
  0x82   : > { %4680 = vmatprep.subr.bf16.mxu1 %v6922_v50  ;;  %v7018_v50 = vld [vmem:[%s8058_s15 + $0xaa4] ss:$16 sps:$4 sm:$0xff]  }
  0x84   : > { %4638 = vmatpush1.bf16.msra.mxu0 %v6917_v51  ;;  %v7013_v51 = vld [vmem:[%s8058_s15 + $0x8a0] ss:$16 sps:$4 sm:$0xff]  }
  0x85   : > { %4681 = vmatpush1.bf16.msra.mxu1 %v6920_v52  ;;  %4639 = vmatprep.subr.bf16.mxu0 %v6925_v53  ;;  %v7099_v52 = vld [vmem:[%s8060_s16 + $0x24] ss:$84 sps:$4 sm:$0xff]  }
  0x86   : > { %4682 = vmatprep.subr.bf16.mxu1 %v6928_v54  ;;  %v7016_v53 = vld [vmem:[%s8058_s15 + $0xaa0] ss:$16 sps:$4 sm:$0xff]  }
  0x87   : > { %v7102_v54 = vld [vmem:[%s8060_s16 + $0x2c] ss:$84 sps:$4 sm:$0xff]  }
  0x88   : > { %4640 = vmatpush1.bf16.msra.mxu0 %v6923_v55  ;;  %v7021_v55 = vld [vmem:[%s8058_s15 + $0x884] ss:$16 sps:$4 sm:$0xff]  }
  0x89   : > { %4683 = vmatpush1.bf16.msra.mxu1 %v6926_v56  ;;  %4641 = vmatprep.subr.bf16.mxu0 %v6931_v57  ;;  %v7024_v56 = vld [vmem:[%s8058_s15 + $0xa84] ss:$16 sps:$4 sm:$0xff]   ;;  %v7019_v57 = vld [vmem:[%s8058_s15 + $0x880] ss:$16 sps:$4 sm:$0xff]  }
  0x8a   : > { %4684 = vmatprep.subr.bf16.mxu1 %v6934_v58  ;;  %v7022_v58 = vld [vmem:[%s8058_s15 + $0xa80] ss:$16 sps:$4 sm:$0xff]  }
  0x8c   : > { %4642 = vmatpush1.bf16.msra.mxu0 %v6929_v59  ;;  %v7027_v59 = vld [vmem:[%s8058_s15 + $0x864] ss:$16 sps:$4 sm:$0xff]  }
  0x8d   : > { %4685 = vmatpush1.bf16.msra.mxu1 %v6932_v60  ;;  %4643 = vmatprep.subr.bf16.mxu0 %v6937_v61  ;;  %v7030_v60 = vld [vmem:[%s8058_s15 + $0xa64] ss:$16 sps:$4 sm:$0xff]   ;;  %v7025_v61 = vld [vmem:[%s8058_s15 + $0x860] ss:$16 sps:$4 sm:$0xff]  }
  0x8e   : > { %4686 = vmatprep.subr.bf16.mxu1 %v6940_v62  ;;  %v7028_v62 = vld [vmem:[%s8058_s15 + $0xa60] ss:$16 sps:$4 sm:$0xff]  }
  0x90   : > { %4644 = vmatpush1.bf16.msra.mxu0 %v6935_v63  ;;  %v7033_v63 = vld [vmem:[%s8058_s15 + $0x844] ss:$16 sps:$4 sm:$0xff]  }
  0x91   : > { %4687 = vmatpush1.bf16.msra.mxu1 %v6938_v0  ;;  %4645 = vmatprep.subr.bf16.mxu0 %v6943_v1  ;;  %v7036_v0 = vld [vmem:[%s8058_s15 + $0xa44] ss:$16 sps:$4 sm:$0xff]   ;;  %v7031_v1 = vld [vmem:[%s8058_s15 + $0x840] ss:$16 sps:$4 sm:$0xff]  }
  0x92   : > { %4688 = vmatprep.subr.bf16.mxu1 %v6946_v2  ;;  %v7034_v2 = vld [vmem:[%s8058_s15 + $0xa40] ss:$16 sps:$4 sm:$0xff]  }
  0x94   : > { %4646 = vmatpush1.bf16.msra.mxu0 %v6941_v5  ;;  %v7037_v5 = vld [vmem:[%s8058_s15 + $0x820] ss:$16 sps:$4 sm:$0xff]  }
  0x95   : > { %4689 = vmatpush1.bf16.msra.mxu1 %v6944_v6  ;;  %4647 = vmatprep.subr.bf16.mxu0 %v6949_v7  ;;  %v7040_v6 = vld [vmem:[%s8058_s15 + $0xa20] ss:$16 sps:$4 sm:$0xff]   ;;  %v7045_v7 = vld [vmem:[%s8058_s15 + $0x804] ss:$16 sps:$4 sm:$0xff]  }
  0x96   : > { %4690 = vmatprep.subr.bf16.mxu1 %v6952_v8  ;;  %v7048_v8 = vld [vmem:[%s8058_s15 + $0xa04] ss:$16 sps:$4 sm:$0xff]  }
  0x98   : > { %4648 = vmatpush2.bf16.msra.mxu0 %v6947_v9  ;;  %v7043_v9 = vld [vmem:[%s8058_s15 + $0x800] ss:$16 sps:$4 sm:$0xff]  }
  0x99   : > { %4691 = vmatpush2.bf16.msra.mxu1 %v6950_v10  ;;  %4649 = vmatprep.subr.bf16.mxu0 %v6955_v11  ;;  %v7046_v10 = vld [vmem:[%s8058_s15 + $0xa00] ss:$16 sps:$4 sm:$0xff]   ;;  %v7051_v11 = vld [vmem:[%s8058_s15 + $0x9e4] ss:$16 sps:$4 sm:$0xff]  }
  0x9a   : > { %4692 = vmatprep.subr.bf16.mxu1 %v6958_v12  ;;  %v7054_v12 = vld [vmem:[%s8058_s15 + $0xbe4] ss:$16 sps:$4 sm:$0xff]  }
  0x9c   : > { %4650 = vmatpush2.bf16.msra.mxu0 %v6953_v13  ;;  %v7049_v13 = vld [vmem:[%s8058_s15 + $0x9e0] ss:$16 sps:$4 sm:$0xff]  }
  0x9d   : > { %4693 = vmatpush2.bf16.msra.mxu1 %v6956_v14  ;;  %4651 = vmatprep.subr.bf16.mxu0 %v6961_v15  ;;  %v7052_v14 = vld [vmem:[%s8058_s15 + $0xbe0] ss:$16 sps:$4 sm:$0xff]   ;;  %v7057_v15 = vld [vmem:[%s8058_s15 + $0x9c4] ss:$16 sps:$4 sm:$0xff]  }
  0x9e   : > { %4694 = vmatprep.subr.bf16.mxu1 %v6964_v16  ;;  %v7060_v16 = vld [vmem:[%s8058_s15 + $0xbc4] ss:$16 sps:$4 sm:$0xff]  }
  0xa0   : > { %4652 = vmatpush2.bf16.msra.mxu0 %v6959_v17  ;;  %v7055_v17 = vld [vmem:[%s8058_s15 + $0x9c0] ss:$16 sps:$4 sm:$0xff]  }
  0xa1   : > { %4695 = vmatpush2.bf16.msra.mxu1 %v6962_v18  ;;  %4653 = vmatprep.subr.bf16.mxu0 %v6967_v19  ;;  %v7058_v18 = vld [vmem:[%s8058_s15 + $0xbc0] ss:$16 sps:$4 sm:$0xff]   ;;  %v7063_v19 = vld [vmem:[%s8058_s15 + $0x9a4] ss:$16 sps:$4 sm:$0xff]  }
  0xa2   : > { %4696 = vmatprep.subr.bf16.mxu1 %v6970_v20  ;;  %v7066_v20 = vld [vmem:[%s8058_s15 + $0xba4] ss:$16 sps:$4 sm:$0xff]  }
  0xa4   : > { %4654 = vmatpush2.bf16.msra.mxu0 %v6965_v21  ;;  %v7061_v21 = vld [vmem:[%s8058_s15 + $0x9a0] ss:$16 sps:$4 sm:$0xff]  }
  0xa5   : > { %4697 = vmatpush2.bf16.msra.mxu1 %v6968_v22  ;;  %4655 = vmatprep.subr.bf16.mxu0 %v6973_v23  ;;  %v7064_v22 = vld [vmem:[%s8058_s15 + $0xba0] ss:$16 sps:$4 sm:$0xff]   ;;  %v7069_v23 = vld [vmem:[%s8058_s15 + $0x984] ss:$16 sps:$4 sm:$0xff]  }
  0xa6   : > { %4698 = vmatprep.subr.bf16.mxu1 %v6976_v24  ;;  %v7072_v24 = vld [vmem:[%s8058_s15 + $0xb84] ss:$16 sps:$4 sm:$0xff]  }
  0xa8   : > { %4656 = vmatpush2.bf16.msra.mxu0 %v6971_v25  ;;  %v7067_v25 = vld [vmem:[%s8058_s15 + $0x980] ss:$16 sps:$4 sm:$0xff]  }
  0xa9   : > { %4699 = vmatpush2.bf16.msra.mxu1 %v6974_v26  ;;  %4657 = vmatprep.subr.bf16.mxu0 %v6979_v27  ;;  %v7070_v26 = vld [vmem:[%s8058_s15 + $0xb80] ss:$16 sps:$4 sm:$0xff]   ;;  %v7075_v27 = vld [vmem:[%s8058_s15 + $0x964] ss:$16 sps:$4 sm:$0xff]  }
  0xaa   : > { %4700 = vmatprep.subr.bf16.mxu1 %v6982_v28  ;;  %v7078_v28 = vld [vmem:[%s8058_s15 + $0xb64] ss:$16 sps:$4 sm:$0xff]  }
  0xac   : > { %4658 = vmatpush2.bf16.msra.mxu0 %v6977_v29  ;;  %v7073_v29 = vld [vmem:[%s8058_s15 + $0x960] ss:$16 sps:$4 sm:$0xff]  }
  0xad   : > { %4701 = vmatpush2.bf16.msra.mxu1 %v6980_v30  ;;  %4659 = vmatprep.subr.bf16.mxu0 %v6985_v31  ;;  %v7076_v30 = vld [vmem:[%s8058_s15 + $0xb60] ss:$16 sps:$4 sm:$0xff]   ;;  %v7081_v31 = vld [vmem:[%s8058_s15 + $0x944] ss:$16 sps:$4 sm:$0xff]  }
  0xae   : > { %4702 = vmatprep.subr.bf16.mxu1 %v6988_v32  ;;  %v7084_v32 = vld [vmem:[%s8058_s15 + $0xb44] ss:$16 sps:$4 sm:$0xff]  }
  0xb0   : > { %4660 = vmatpush2.bf16.msra.mxu0 %v6983_v33  ;;  %v7079_v33 = vld [vmem:[%s8058_s15 + $0x940] ss:$16 sps:$4 sm:$0xff]  }
  0xb1   : > { %4703 = vmatpush2.bf16.msra.mxu1 %v6986_v34  ;;  %4661 = vmatprep.subr.bf16.mxu0 %v6991_v35  ;;  %v7082_v34 = vld [vmem:[%s8058_s15 + $0xb40] ss:$16 sps:$4 sm:$0xff]   ;;  %v7087_v35 = vld [vmem:[%s8058_s15 + $0x924] ss:$16 sps:$4 sm:$0xff]  }
  0xb2   : > { %4704 = vmatprep.subr.bf16.mxu1 %v6994_v36  ;;  %v7090_v36 = vld [vmem:[%s8058_s15 + $0xb24] ss:$16 sps:$4 sm:$0xff]  }
  0xb4   : > { %4662 = vmatpush2.bf16.msra.mxu0 %v6989_v37  ;;  %v7085_v37 = vld [vmem:[%s8058_s15 + $0x920] ss:$16 sps:$4 sm:$0xff]  }
  0xb5   : > { %4705 = vmatpush2.bf16.msra.mxu1 %v6992_v38  ;;  %4717 = vmatprep.subr.bf16.mxu0 %v7003_v39  ;;  %v7088_v38 = vld [vmem:[%s8058_s15 + $0xb20] ss:$16 sps:$4 sm:$0xff]   ;;  %v7093_v39 = vld [vmem:[%s8058_s15 + $0x904] ss:$16 sps:$4 sm:$0xff]  }
  0xb6   : > { %4760 = vmatprep.subr.bf16.mxu1 %v7006_v40  ;;  %v7096_v40 = vld [vmem:[%s8058_s15 + $0xb04] ss:$16 sps:$4 sm:$0xff]  }
  0xb7   : > { %4664 = vmatmul.mubr.bf16.vlgmr.msra.gmra.mxu0 %v6995_v41  ;;  %v7091_v41 = vld [vmem:[%s8058_s15 + $0x900] ss:$16 sps:$4 sm:$0xff]  }
  0xb8   : > { %4707 = vmatmul.mubr.bf16.vlgmr.msra.gmra.mxu1 %v6998_v42  ;;  %4718 = vmatpush1.bf16.msra.mxu0 %v7001_v43  ;;  %v7094_v42 = vld [vmem:[%s8058_s15 + $0xb00] ss:$16 sps:$4 sm:$0xff]   ;;  %v7105_v43 = vld [vmem:[%s8058_s15 + $0xce4] ss:$16 sps:$4 sm:$0xff]  }
  0xb9   : > { %4761 = vmatpush1.bf16.msra.mxu1 %v7004_v44  ;;  %4719 = vmatprep.subr.bf16.mxu0 %v7009_v45  ;;  %v7108_v44 = vld [vmem:[%s8058_s15 + $0xee4] ss:$16 sps:$4 sm:$0xff]  }
  0xba   : > { %4762 = vmatprep.subr.bf16.mxu1 %v7012_v46  ;;  %4749 = vmatprep.mubr.bf16.mxu0 %v7099_v52  ;;  %v7097_v45 = vld [vmem:[%s8060_s16 + $0x20] ss:$84 sps:$4 sm:$0xff]   ;;  %v7100_v46 = vld [vmem:[%s8060_s16 + $0x28] ss:$84 sps:$4 sm:$0xff]  }
  0xbb   : > { %4792 = vmatprep.mubr.bf16.mxu1 %v7102_v54  ;;  %v7204_v52 = vld [vmem:[%s8060_s16 + $0x3c] ss:$84 sps:$4 sm:$0xff]  }
  0xbc   : > { %4720 = vmatpush1.bf16.msra.mxu0 %v7007_v47  ;;  %v7103_v47 = vld [vmem:[%s8058_s15 + $0xce0] ss:$16 sps:$4 sm:$0xff]  }
  0xbd   : > { %4763 = vmatpush1.bf16.msra.mxu1 %v7010_v48  ;;  %4721 = vmatprep.subr.bf16.mxu0 %v7015_v49  ;;  %v7106_v48 = vld [vmem:[%s8058_s15 + $0xee0] ss:$16 sps:$4 sm:$0xff]   ;;  %v7111_v49 = vld [vmem:[%s8058_s15 + $0xcc4] ss:$16 sps:$4 sm:$0xff]  }
  0xbe   : > { %4764 = vmatprep.subr.bf16.mxu1 %v7018_v50  ;;  %v7114_v50 = vld [vmem:[%s8058_s15 + $0xec4] ss:$16 sps:$4 sm:$0xff]   ;;  %v7112_v54 = vld [vmem:[%s8058_s15 + $0xec0] ss:$16 sps:$4 sm:$0xff]  }
  0xc0   : > { %4722 = vmatpush1.bf16.msra.mxu0 %v7013_v51  ;;  %v7201_v51 = vld [vmem:[%s8060_s16 + $0x34] ss:$84 sps:$4 sm:$0xff]  }
  0xc1   : > { %4765 = vmatpush1.bf16.msra.mxu1 %v7016_v53  ;;  %4723 = vmatprep.subr.bf16.mxu0 %v7021_v55  ;;  %v7109_v53 = vld [vmem:[%s8058_s15 + $0xcc0] ss:$16 sps:$4 sm:$0xff]   ;;  %v7117_v55 = vld [vmem:[%s8058_s15 + $0xca4] ss:$16 sps:$4 sm:$0xff]  }
  0xc2   : > { %4766 = vmatprep.subr.bf16.mxu1 %v7024_v56  ;;  %v7120_v56 = vld [vmem:[%s8058_s15 + $0xea4] ss:$16 sps:$4 sm:$0xff]  }
  0xc4   : > { %4724 = vmatpush1.bf16.msra.mxu0 %v7019_v57  ;;  %v7115_v57 = vld [vmem:[%s8058_s15 + $0xca0] ss:$16 sps:$4 sm:$0xff]  }
  0xc5   : > { %4767 = vmatpush1.bf16.msra.mxu1 %v7022_v58  ;;  %4725 = vmatprep.subr.bf16.mxu0 %v7027_v59  ;;  %v7118_v58 = vld [vmem:[%s8058_s15 + $0xea0] ss:$16 sps:$4 sm:$0xff]   ;;  %v7123_v59 = vld [vmem:[%s8058_s15 + $0xc84] ss:$16 sps:$4 sm:$0xff]  }
  0xc6   : > { %4768 = vmatprep.subr.bf16.mxu1 %v7030_v60  ;;  %v7126_v60 = vld [vmem:[%s8058_s15 + $0xe84] ss:$16 sps:$4 sm:$0xff]  }
  0xc8   : > { %4726 = vmatpush1.bf16.msra.mxu0 %v7025_v61  ;;  %v7121_v61 = vld [vmem:[%s8058_s15 + $0xc80] ss:$16 sps:$4 sm:$0xff]  }
  0xc9   : > { %4769 = vmatpush1.bf16.msra.mxu1 %v7028_v62  ;;  %4727 = vmatprep.subr.bf16.mxu0 %v7033_v63  ;;  %v7124_v62 = vld [vmem:[%s8058_s15 + $0xe80] ss:$16 sps:$4 sm:$0xff]   ;;  %v7129_v63 = vld [vmem:[%s8058_s15 + $0xc64] ss:$16 sps:$4 sm:$0xff]  }
  0xca   : > { %4770 = vmatprep.subr.bf16.mxu1 %v7036_v0  ;;  %v7132_v0 = vld [vmem:[%s8058_s15 + $0xe64] ss:$16 sps:$4 sm:$0xff]  }
  0xcc   : > { %4728 = vmatpush1.bf16.msra.mxu0 %v7031_v1  ;;  %v7127_v1 = vld [vmem:[%s8058_s15 + $0xc60] ss:$16 sps:$4 sm:$0xff]  }
  0xcd   : > { %4771 = vmatpush1.bf16.msra.mxu1 %v7034_v2  ;;  %4729 = vmatprep.subr.bf16.mxu0 %v7039_v3  ;;  %v7130_v2 = vld [vmem:[%s8058_s15 + $0xe60] ss:$16 sps:$4 sm:$0xff]   ;;  %v7135_v3 = vld [vmem:[%s8058_s15 + $0xc44] ss:$16 sps:$4 sm:$0xff]  }
  0xce   : > { %4772 = vmatprep.subr.bf16.mxu1 %v7042_v4  ;;  %v7138_v4 = vld [vmem:[%s8058_s15 + $0xe44] ss:$16 sps:$4 sm:$0xff]  }
  0xd0   : > { %4730 = vmatpush1.bf16.msra.mxu0 %v7037_v5  ;;  %v7133_v5 = vld [vmem:[%s8058_s15 + $0xc40] ss:$16 sps:$4 sm:$0xff]  }
  0xd1   : > { %4773 = vmatpush1.bf16.msra.mxu1 %v7040_v6  ;;  %4731 = vmatprep.subr.bf16.mxu0 %v7045_v7  ;;  %v7136_v6 = vld [vmem:[%s8058_s15 + $0xe40] ss:$16 sps:$4 sm:$0xff]   ;;  %v7141_v7 = vld [vmem:[%s8058_s15 + $0xc24] ss:$16 sps:$4 sm:$0xff]  }
  0xd2   : > { %4774 = vmatprep.subr.bf16.mxu1 %v7048_v8  ;;  %v7144_v8 = vld [vmem:[%s8058_s15 + $0xe24] ss:$16 sps:$4 sm:$0xff]  }
  0xd4   : > { %4732 = vmatpush1.bf16.msra.mxu0 %v7043_v9  ;;  %v7139_v9 = vld [vmem:[%s8058_s15 + $0xc20] ss:$16 sps:$4 sm:$0xff]  }
  0xd5   : > { %4775 = vmatpush1.bf16.msra.mxu1 %v7046_v10  ;;  %4733 = vmatprep.subr.bf16.mxu0 %v7051_v11  ;;  %v7142_v10 = vld [vmem:[%s8058_s15 + $0xe20] ss:$16 sps:$4 sm:$0xff]   ;;  %v7147_v11 = vld [vmem:[%s8058_s15 + $0xc04] ss:$16 sps:$4 sm:$0xff]  }
  0xd6   : > { %4776 = vmatprep.subr.bf16.mxu1 %v7054_v12  ;;  %v7150_v12 = vld [vmem:[%s8058_s15 + $0xe04] ss:$16 sps:$4 sm:$0xff]  }
  0xd8   : > { %4734 = vmatpush2.bf16.msra.mxu0 %v7049_v13  ;;  %v7145_v13 = vld [vmem:[%s8058_s15 + $0xc00] ss:$16 sps:$4 sm:$0xff]  }
  0xd9   : > { %4777 = vmatpush2.bf16.msra.mxu1 %v7052_v14  ;;  %4735 = vmatprep.subr.bf16.mxu0 %v7057_v15  ;;  %v7148_v14 = vld [vmem:[%s8058_s15 + $0xe00] ss:$16 sps:$4 sm:$0xff]   ;;  %v7153_v15 = vld [vmem:[%s8058_s15 + $0xde4] ss:$16 sps:$4 sm:$0xff]  }
  0xda   : > { %4778 = vmatprep.subr.bf16.mxu1 %v7060_v16  ;;  %v7156_v16 = vld [vmem:[%s8058_s15 + $0xfe4] ss:$16 sps:$4 sm:$0xff]  }
  0xdc   : > { %4736 = vmatpush2.bf16.msra.mxu0 %v7055_v17  ;;  %v7151_v17 = vld [vmem:[%s8058_s15 + $0xde0] ss:$16 sps:$4 sm:$0xff]  }
  0xdd   : > { %4779 = vmatpush2.bf16.msra.mxu1 %v7058_v18  ;;  %4737 = vmatprep.subr.bf16.mxu0 %v7063_v19  ;;  %v7154_v18 = vld [vmem:[%s8058_s15 + $0xfe0] ss:$16 sps:$4 sm:$0xff]   ;;  %v7159_v19 = vld [vmem:[%s8058_s15 + $0xdc4] ss:$16 sps:$4 sm:$0xff]  }
  0xde   : > { %4780 = vmatprep.subr.bf16.mxu1 %v7066_v20  ;;  %v7162_v20 = vld [vmem:[%s8058_s15 + $0xfc4] ss:$16 sps:$4 sm:$0xff]  }
  0xe0   : > { %4738 = vmatpush2.bf16.msra.mxu0 %v7061_v21  ;;  %v7157_v21 = vld [vmem:[%s8058_s15 + $0xdc0] ss:$16 sps:$4 sm:$0xff]  }
  0xe1   : > { %4781 = vmatpush2.bf16.msra.mxu1 %v7064_v22  ;;  %4739 = vmatprep.subr.bf16.mxu0 %v7069_v23  ;;  %v7160_v22 = vld [vmem:[%s8058_s15 + $0xfc0] ss:$16 sps:$4 sm:$0xff]   ;;  %v7165_v23 = vld [vmem:[%s8058_s15 + $0xda4] ss:$16 sps:$4 sm:$0xff]  }
  0xe2   : > { %4782 = vmatprep.subr.bf16.mxu1 %v7072_v24  ;;  %v7168_v24 = vld [vmem:[%s8058_s15 + $0xfa4] ss:$16 sps:$4 sm:$0xff]  }
  0xe4   : > { %4740 = vmatpush2.bf16.msra.mxu0 %v7067_v25  ;;  %v7163_v25 = vld [vmem:[%s8058_s15 + $0xda0] ss:$16 sps:$4 sm:$0xff]  }
  0xe5   : > { %4783 = vmatpush2.bf16.msra.mxu1 %v7070_v26  ;;  %4741 = vmatprep.subr.bf16.mxu0 %v7075_v27  ;;  %v7166_v26 = vld [vmem:[%s8058_s15 + $0xfa0] ss:$16 sps:$4 sm:$0xff]   ;;  %v7171_v27 = vld [vmem:[%s8058_s15 + $0xd84] ss:$16 sps:$4 sm:$0xff]  }
  0xe6   : > { %4784 = vmatprep.subr.bf16.mxu1 %v7078_v28  ;;  %v7174_v28 = vld [vmem:[%s8058_s15 + $0xf84] ss:$16 sps:$4 sm:$0xff]  }
  0xe8   : > { %4742 = vmatpush2.bf16.msra.mxu0 %v7073_v29  ;;  %v7169_v29 = vld [vmem:[%s8058_s15 + $0xd80] ss:$16 sps:$4 sm:$0xff]  }
  0xe9   : > { %4785 = vmatpush2.bf16.msra.mxu1 %v7076_v30  ;;  %4743 = vmatprep.subr.bf16.mxu0 %v7081_v31  ;;  %v7172_v30 = vld [vmem:[%s8058_s15 + $0xf80] ss:$16 sps:$4 sm:$0xff]   ;;  %v7177_v31 = vld [vmem:[%s8058_s15 + $0xd64] ss:$16 sps:$4 sm:$0xff]  }
  0xea   : > { %4786 = vmatprep.subr.bf16.mxu1 %v7084_v32  ;;  %v7180_v32 = vld [vmem:[%s8058_s15 + $0xf64] ss:$16 sps:$4 sm:$0xff]  }
  0xec   : > { %4744 = vmatpush2.bf16.msra.mxu0 %v7079_v33  ;;  %v7175_v33 = vld [vmem:[%s8058_s15 + $0xd60] ss:$16 sps:$4 sm:$0xff]  }
  0xed   : > { %4787 = vmatpush2.bf16.msra.mxu1 %v7082_v34  ;;  %4745 = vmatprep.subr.bf16.mxu0 %v7087_v35  ;;  %v7178_v34 = vld [vmem:[%s8058_s15 + $0xf60] ss:$16 sps:$4 sm:$0xff]   ;;  %v7183_v35 = vld [vmem:[%s8058_s15 + $0xd44] ss:$16 sps:$4 sm:$0xff]  }
  0xee   : > { %4788 = vmatprep.subr.bf16.mxu1 %v7090_v36  ;;  %v7186_v36 = vld [vmem:[%s8058_s15 + $0xf44] ss:$16 sps:$4 sm:$0xff]  }
  0xf0   : > { %4746 = vmatpush2.bf16.msra.mxu0 %v7085_v37  ;;  %v7181_v37 = vld [vmem:[%s8058_s15 + $0xd40] ss:$16 sps:$4 sm:$0xff]  }
  0xf1   : > { %4789 = vmatpush2.bf16.msra.mxu1 %v7088_v38  ;;  %4747 = vmatprep.subr.bf16.mxu0 %v7093_v39  ;;  %v7184_v38 = vld [vmem:[%s8058_s15 + $0xf40] ss:$16 sps:$4 sm:$0xff]   ;;  %v7189_v39 = vld [vmem:[%s8058_s15 + $0xd24] ss:$16 sps:$4 sm:$0xff]  }
  0xf2   : > { %4790 = vmatprep.subr.bf16.mxu1 %v7096_v40  ;;  %v7192_v40 = vld [vmem:[%s8058_s15 + $0xf24] ss:$16 sps:$4 sm:$0xff]  }
  0xf4   : > { %4748 = vmatpush2.bf16.msra.mxu0 %v7091_v41  ;;  %v7187_v41 = vld [vmem:[%s8058_s15 + $0xd20] ss:$16 sps:$4 sm:$0xff]  }
  0xf5   : > { %4791 = vmatpush2.bf16.msra.mxu1 %v7094_v42  ;;  %4803 = vmatprep.subr.bf16.mxu0 %v7105_v43  ;;  %v7190_v42 = vld [vmem:[%s8058_s15 + $0xf20] ss:$16 sps:$4 sm:$0xff]   ;;  %v7195_v43 = vld [vmem:[%s8058_s15 + $0xd04] ss:$16 sps:$4 sm:$0xff]  }
  0xf6   : > { %4846 = vmatprep.subr.bf16.mxu1 %v7108_v44  ;;  %v7198_v44 = vld [vmem:[%s8058_s15 + $0xf04] ss:$16 sps:$4 sm:$0xff]  }
  0xf7   : > { %4750 = vmatmul.mubr.bf16.vlgmr.msra.gmra.mxu0 %v7097_v45  ;;  %v7193_v45 = vld [vmem:[%s8058_s15 + $0xd00] ss:$16 sps:$4 sm:$0xff]  }
  0xf8   : > { %4793 = vmatmul.mubr.bf16.vlgmr.msra.gmra.mxu1 %v7100_v46  ;;  %4804 = vmatpush1.bf16.msra.mxu0 %v7103_v47  ;;  %v7196_v46 = vld [vmem:[%s8058_s15 + $0xf00] ss:$16 sps:$4 sm:$0xff]   ;;  %v7207_v47 = vld [vmem:[%s8058_s15 + $0x10e4] ss:$16 sps:$4 sm:$0xff]  }
  0xf9   : > { %4847 = vmatpush1.bf16.msra.mxu1 %v7106_v48  ;;  %4805 = vmatprep.subr.bf16.mxu0 %v7111_v49  ;;  %v7199_v48 = vld [vmem:[%s8060_s16 + $0x30] ss:$84 sps:$4 sm:$0xff]  }
  0xfa   : > { %4848 = vmatprep.subr.bf16.mxu1 %v7114_v50  ;;  %4835 = vmatprep.mubr.bf16.mxu0 %v7201_v51  ;;  %v7210_v49 = vld [vmem:[%s8058_s15 + $0x12e4] ss:$16 sps:$4 sm:$0xff]   ;;  %v7205_v51 = vld [vmem:[%s8058_s15 + $0x10e0] ss:$16 sps:$4 sm:$0xff]  }
  0xfb   : > { %4878 = vmatprep.mubr.bf16.mxu1 %v7204_v52  ;;  %v7202_v50 = vld [vmem:[%s8060_s16 + $0x38] ss:$84 sps:$4 sm:$0xff]  }
  0xfc   : > { %4806 = vmatpush1.bf16.msra.mxu0 %v7109_v53  ;;  %v7208_v52 = vld [vmem:[%s8058_s15 + $0x12e0] ss:$16 sps:$4 sm:$0xff]   ;;  %v7213_v53 = vld [vmem:[%s8058_s15 + $0x10c4] ss:$16 sps:$4 sm:$0xff]  }
  0xfd   : > { %4849 = vmatpush1.bf16.msra.mxu1 %v7112_v54  ;;  %4807 = vmatprep.subr.bf16.mxu0 %v7117_v55  ;;  %v7216_v54 = vld [vmem:[%s8058_s15 + $0x12c4] ss:$16 sps:$4 sm:$0xff]  }
  0xfe   : > { %4850 = vmatprep.subr.bf16.mxu1 %v7120_v56  ;;  %v7303_v55 = vld [vmem:[%s8060_s16 + $0x44] ss:$84 sps:$4 sm:$0xff]   ;;  %v7306_v56 = vld [vmem:[%s8060_s16 + $0x4c] ss:$84 sps:$4 sm:$0xff]  }
 0x100   : > { %4808 = vmatpush1.bf16.msra.mxu0 %v7115_v57  ;;  %v7211_v57 = vld [vmem:[%s8058_s15 + $0x10c0] ss:$16 sps:$4 sm:$0xff]  }
 0x101   : > { %4851 = vmatpush1.bf16.msra.mxu1 %v7118_v58  ;;  %4809 = vmatprep.subr.bf16.mxu0 %v7123_v59  ;;  %v7214_v58 = vld [vmem:[%s8058_s15 + $0x12c0] ss:$16 sps:$4 sm:$0xff]   ;;  %v7219_v59 = vld [vmem:[%s8058_s15 + $0x10a4] ss:$16 sps:$4 sm:$0xff]  }
 0x102   : > { %4852 = vmatprep.subr.bf16.mxu1 %v7126_v60  ;;  %v7222_v60 = vld [vmem:[%s8058_s15 + $0x12a4] ss:$16 sps:$4 sm:$0xff]  }
 0x104   : > { %4810 = vmatpush1.bf16.msra.mxu0 %v7121_v61  ;;  %v7217_v61 = vld [vmem:[%s8058_s15 + $0x10a0] ss:$16 sps:$4 sm:$0xff]  }
 0x105   : > { %4853 = vmatpush1.bf16.msra.mxu1 %v7124_v62  ;;  %4811 = vmatprep.subr.bf16.mxu0 %v7129_v63  ;;  %v7220_v62 = vld [vmem:[%s8058_s15 + $0x12a0] ss:$16 sps:$4 sm:$0xff]   ;;  %v7225_v63 = vld [vmem:[%s8058_s15 + $0x1084] ss:$16 sps:$4 sm:$0xff]  }
 0x106   : > { %4854 = vmatprep.subr.bf16.mxu1 %v7132_v0  ;;  %v7228_v0 = vld [vmem:[%s8058_s15 + $0x1284] ss:$16 sps:$4 sm:$0xff]  }
 0x108   : > { %4812 = vmatpush1.bf16.msra.mxu0 %v7127_v1  ;;  %v7223_v1 = vld [vmem:[%s8058_s15 + $0x1080] ss:$16 sps:$4 sm:$0xff]  }
 0x109   : > { %4855 = vmatpush1.bf16.msra.mxu1 %v7130_v2  ;;  %4813 = vmatprep.subr.bf16.mxu0 %v7135_v3  ;;  %v7226_v2 = vld [vmem:[%s8058_s15 + $0x1280] ss:$16 sps:$4 sm:$0xff]   ;;  %v7231_v3 = vld [vmem:[%s8058_s15 + $0x1064] ss:$16 sps:$4 sm:$0xff]  }
 0x10a   : > { %4856 = vmatprep.subr.bf16.mxu1 %v7138_v4  ;;  %v7234_v4 = vld [vmem:[%s8058_s15 + $0x1264] ss:$16 sps:$4 sm:$0xff]  }
 0x10c   : > { %4814 = vmatpush1.bf16.msra.mxu0 %v7133_v5  ;;  %v7229_v5 = vld [vmem:[%s8058_s15 + $0x1060] ss:$16 sps:$4 sm:$0xff]  }
 0x10d   : > { %4857 = vmatpush1.bf16.msra.mxu1 %v7136_v6  ;;  %4815 = vmatprep.subr.bf16.mxu0 %v7141_v7  ;;  %v7232_v6 = vld [vmem:[%s8058_s15 + $0x1260] ss:$16 sps:$4 sm:$0xff]   ;;  %v7237_v7 = vld [vmem:[%s8058_s15 + $0x1044] ss:$16 sps:$4 sm:$0xff]  }
 0x10e   : > { %4858 = vmatprep.subr.bf16.mxu1 %v7144_v8  ;;  %v7240_v8 = vld [vmem:[%s8058_s15 + $0x1244] ss:$16 sps:$4 sm:$0xff]  }
 0x110   : > { %4816 = vmatpush1.bf16.msra.mxu0 %v7139_v9  ;;  %v7235_v9 = vld [vmem:[%s8058_s15 + $0x1040] ss:$16 sps:$4 sm:$0xff]  }
 0x111   : > { %4859 = vmatpush1.bf16.msra.mxu1 %v7142_v10  ;;  %4817 = vmatprep.subr.bf16.mxu0 %v7147_v11  ;;  %v7238_v10 = vld [vmem:[%s8058_s15 + $0x1240] ss:$16 sps:$4 sm:$0xff]   ;;  %v7243_v11 = vld [vmem:[%s8058_s15 + $0x1024] ss:$16 sps:$4 sm:$0xff]  }
 0x112   : > { %4860 = vmatprep.subr.bf16.mxu1 %v7150_v12  ;;  %v7246_v12 = vld [vmem:[%s8058_s15 + $0x1224] ss:$16 sps:$4 sm:$0xff]  }
 0x114   : > { %4818 = vmatpush1.bf16.msra.mxu0 %v7145_v13  ;;  %v7241_v13 = vld [vmem:[%s8058_s15 + $0x1020] ss:$16 sps:$4 sm:$0xff]  }
 0x115   : > { %4861 = vmatpush1.bf16.msra.mxu1 %v7148_v14  ;;  %4819 = vmatprep.subr.bf16.mxu0 %v7153_v15  ;;  %v7244_v14 = vld [vmem:[%s8058_s15 + $0x1220] ss:$16 sps:$4 sm:$0xff]   ;;  %v7249_v15 = vld [vmem:[%s8058_s15 + $0x1004] ss:$16 sps:$4 sm:$0xff]  }
 0x116   : > { %4862 = vmatprep.subr.bf16.mxu1 %v7156_v16  ;;  %v7252_v16 = vld [vmem:[%s8058_s15 + $0x1204] ss:$16 sps:$4 sm:$0xff]  }
 0x118   : > { %4820 = vmatpush2.bf16.msra.mxu0 %v7151_v17  ;;  %v7247_v17 = vld [vmem:[%s8058_s15 + $0x1000] ss:$16 sps:$4 sm:$0xff]  }
 0x119   : > { %4863 = vmatpush2.bf16.msra.mxu1 %v7154_v18  ;;  %4821 = vmatprep.subr.bf16.mxu0 %v7159_v19  ;;  %v7250_v18 = vld [vmem:[%s8058_s15 + $0x1200] ss:$16 sps:$4 sm:$0xff]   ;;  %v7255_v19 = vld [vmem:[%s8058_s15 + $0x11e4] ss:$16 sps:$4 sm:$0xff]  }
 0x11a   : > { %4864 = vmatprep.subr.bf16.mxu1 %v7162_v20  ;;  %v7258_v20 = vld [vmem:[%s8058_s15 + $0x13e4] ss:$16 sps:$4 sm:$0xff]  }
 0x11c   : > { %4822 = vmatpush2.bf16.msra.mxu0 %v7157_v21  ;;  %v7253_v21 = vld [vmem:[%s8058_s15 + $0x11e0] ss:$16 sps:$4 sm:$0xff]  }
 0x11d   : > { %4865 = vmatpush2.bf16.msra.mxu1 %v7160_v22  ;;  %4823 = vmatprep.subr.bf16.mxu0 %v7165_v23  ;;  %v7256_v22 = vld [vmem:[%s8058_s15 + $0x13e0] ss:$16 sps:$4 sm:$0xff]   ;;  %v7261_v23 = vld [vmem:[%s8058_s15 + $0x11c4] ss:$16 sps:$4 sm:$0xff]  }
 0x11e   : > { %4866 = vmatprep.subr.bf16.mxu1 %v7168_v24  ;;  %v7264_v24 = vld [vmem:[%s8058_s15 + $0x13c4] ss:$16 sps:$4 sm:$0xff]  }
 0x120   : > { %4824 = vmatpush2.bf16.msra.mxu0 %v7163_v25  ;;  %v7259_v25 = vld [vmem:[%s8058_s15 + $0x11c0] ss:$16 sps:$4 sm:$0xff]  }
 0x121   : > { %4867 = vmatpush2.bf16.msra.mxu1 %v7166_v26  ;;  %4825 = vmatprep.subr.bf16.mxu0 %v7171_v27  ;;  %v7262_v26 = vld [vmem:[%s8058_s15 + $0x13c0] ss:$16 sps:$4 sm:$0xff]   ;;  %v7267_v27 = vld [vmem:[%s8058_s15 + $0x11a4] ss:$16 sps:$4 sm:$0xff]  }
 0x122   : > { %4868 = vmatprep.subr.bf16.mxu1 %v7174_v28  ;;  %v7270_v28 = vld [vmem:[%s8058_s15 + $0x13a4] ss:$16 sps:$4 sm:$0xff]  }
 0x124   : > { %4826 = vmatpush2.bf16.msra.mxu0 %v7169_v29  ;;  %v7265_v29 = vld [vmem:[%s8058_s15 + $0x11a0] ss:$16 sps:$4 sm:$0xff]  }
 0x125   : > { %4869 = vmatpush2.bf16.msra.mxu1 %v7172_v30  ;;  %4827 = vmatprep.subr.bf16.mxu0 %v7177_v31  ;;  %v7268_v30 = vld [vmem:[%s8058_s15 + $0x13a0] ss:$16 sps:$4 sm:$0xff]   ;;  %v7273_v31 = vld [vmem:[%s8058_s15 + $0x1184] ss:$16 sps:$4 sm:$0xff]  }
 0x126   : > { %4870 = vmatprep.subr.bf16.mxu1 %v7180_v32  ;;  %v7276_v32 = vld [vmem:[%s8058_s15 + $0x1384] ss:$16 sps:$4 sm:$0xff]  }
 0x128   : > { %4828 = vmatpush2.bf16.msra.mxu0 %v7175_v33  ;;  %v7271_v33 = vld [vmem:[%s8058_s15 + $0x1180] ss:$16 sps:$4 sm:$0xff]  }
 0x129   : > { %4871 = vmatpush2.bf16.msra.mxu1 %v7178_v34  ;;  %4829 = vmatprep.subr.bf16.mxu0 %v7183_v35  ;;  %v7274_v34 = vld [vmem:[%s8058_s15 + $0x1380] ss:$16 sps:$4 sm:$0xff]   ;;  %v7279_v35 = vld [vmem:[%s8058_s15 + $0x1164] ss:$16 sps:$4 sm:$0xff]  }
 0x12a   : > { %4872 = vmatprep.subr.bf16.mxu1 %v7186_v36  ;;  %v7282_v36 = vld [vmem:[%s8058_s15 + $0x1364] ss:$16 sps:$4 sm:$0xff]  }
 0x12c   : > { %4830 = vmatpush2.bf16.msra.mxu0 %v7181_v37  ;;  %v7277_v37 = vld [vmem:[%s8058_s15 + $0x1160] ss:$16 sps:$4 sm:$0xff]  }
 0x12d   : > { %4873 = vmatpush2.bf16.msra.mxu1 %v7184_v38  ;;  %4831 = vmatprep.subr.bf16.mxu0 %v7189_v39  ;;  %v7280_v38 = vld [vmem:[%s8058_s15 + $0x1360] ss:$16 sps:$4 sm:$0xff]   ;;  %v7285_v39 = vld [vmem:[%s8058_s15 + $0x1144] ss:$16 sps:$4 sm:$0xff]  }
 0x12e   : > { %4874 = vmatprep.subr.bf16.mxu1 %v7192_v40  ;;  %v7288_v40 = vld [vmem:[%s8058_s15 + $0x1344] ss:$16 sps:$4 sm:$0xff]  }
 0x130   : > { %4832 = vmatpush2.bf16.msra.mxu0 %v7187_v41  ;;  %v7283_v41 = vld [vmem:[%s8058_s15 + $0x1140] ss:$16 sps:$4 sm:$0xff]  }
 0x131   : > { %4875 = vmatpush2.bf16.msra.mxu1 %v7190_v42  ;;  %4833 = vmatprep.subr.bf16.mxu0 %v7195_v43  ;;  %v7286_v42 = vld [vmem:[%s8058_s15 + $0x1340] ss:$16 sps:$4 sm:$0xff]   ;;  %v7291_v43 = vld [vmem:[%s8058_s15 + $0x1124] ss:$16 sps:$4 sm:$0xff]  }
 0x132   : > { %4876 = vmatprep.subr.bf16.mxu1 %v7198_v44  ;;  %v7294_v44 = vld [vmem:[%s8058_s15 + $0x1324] ss:$16 sps:$4 sm:$0xff]  }
 0x134   : > { %4834 = vmatpush2.bf16.msra.mxu0 %v7193_v45  ;;  %v7289_v45 = vld [vmem:[%s8058_s15 + $0x1120] ss:$16 sps:$4 sm:$0xff]  }
 0x135   : > { %4877 = vmatpush2.bf16.msra.mxu1 %v7196_v46  ;;  %4889 = vmatprep.subr.bf16.mxu0 %v7207_v47  ;;  %v7292_v46 = vld [vmem:[%s8058_s15 + $0x1320] ss:$16 sps:$4 sm:$0xff]   ;;  %v7297_v47 = vld [vmem:[%s8058_s15 + $0x1104] ss:$16 sps:$4 sm:$0xff]  }
 0x136   : > { %4932 = vmatprep.subr.bf16.mxu1 %v7210_v49  ;;  %v7295_v49 = vld [vmem:[%s8058_s15 + $0x1100] ss:$16 sps:$4 sm:$0xff]  }
 0x137   : > { %4836 = vmatmul.mubr.bf16.vlgmr.msra.gmra.mxu0 %v7199_v48  ;;  %v7300_v48 = vld [vmem:[%s8058_s15 + $0x1304] ss:$16 sps:$4 sm:$0xff]  }
 0x138   : > { %4879 = vmatmul.mubr.bf16.vlgmr.msra.gmra.mxu1 %v7202_v50  ;;  %4890 = vmatpush1.bf16.msra.mxu0 %v7205_v51  ;;  %v7298_v50 = vld [vmem:[%s8058_s15 + $0x1300] ss:$16 sps:$4 sm:$0xff]  }
 0x139   : > { %4933 = vmatpush1.bf16.msra.mxu1 %v7208_v52  ;;  %4891 = vmatprep.subr.bf16.mxu0 %v7213_v53  ;;  %v7301_v51 = vld [vmem:[%s8060_s16 + $0x40] ss:$84 sps:$4 sm:$0xff]   ;;  %v7304_v52 = vld [vmem:[%s8060_s16 + $0x48] ss:$84 sps:$4 sm:$0xff]  }
 0x13a   : > { %4934 = vmatprep.subr.bf16.mxu1 %v7216_v54  ;;  %4921 = vmatprep.mubr.bf16.mxu0 %v7303_v55  ;;  %v7309_v53 = vld [vmem:[%s8058_s15 + $0x14e4] ss:$16 sps:$4 sm:$0xff]   ;;  %v7312_v54 = vld [vmem:[%s8058_s15 + $0xec] ss:$16 sps:$4 sm:$0xff]   ;;  %v7307_v55 = vld [vmem:[%s8058_s15 + $0x14e0] ss:$16 sps:$4 sm:$0xff]  }
 0x13b   : > { %4964 = vmatprep.mubr.bf16.mxu1 %v7306_v56  ;;  %v7310_v56 = vld [vmem:[%s8058_s15 + $0xe8] ss:$16 sps:$4 sm:$0xff]  }
 0x13c   : > { %4892 = vmatpush1.bf16.msra.mxu0 %v7211_v57  ;;  %v7315_v57 = vld [vmem:[%s8058_s15 + $0x14c4] ss:$16 sps:$4 sm:$0xff]  }
 0x13d   : > { %4935 = vmatpush1.bf16.msra.mxu1 %v7214_v58  ;;  %4893 = vmatprep.subr.bf16.mxu0 %v7219_v59  ;;  %v7318_v58 = vld [vmem:[%s8058_s15 + $0xcc] ss:$16 sps:$4 sm:$0xff]   ;;  %v7313_v59 = vld [vmem:[%s8058_s15 + $0x14c0] ss:$16 sps:$4 sm:$0xff]  }
 0x13e   : > { %4936 = vmatprep.subr.bf16.mxu1 %v7222_v60  ;;  %v7316_v60 = vld [vmem:[%s8058_s15 + $0xc8] ss:$16 sps:$4 sm:$0xff]  }
 0x140   : > { %4894 = vmatpush1.bf16.msra.mxu0 %v7217_v61  ;;  %v7321_v61 = vld [vmem:[%s8058_s15 + $0x14a4] ss:$16 sps:$4 sm:$0xff]  }
 0x141   : > { %4937 = vmatpush1.bf16.msra.mxu1 %v7220_v62  ;;  %4895 = vmatprep.subr.bf16.mxu0 %v7225_v63  ;;  %v7324_v62 = vld [vmem:[%s8058_s15 + $0xac] ss:$16 sps:$4 sm:$0xff]   ;;  %v7319_v63 = vld [vmem:[%s8058_s15 + $0x14a0] ss:$16 sps:$4 sm:$0xff]  }
 0x142   : > { %4938 = vmatprep.subr.bf16.mxu1 %v7228_v0  ;;  %v7322_v0 = vld [vmem:[%s8058_s15 + $0xa8] ss:$16 sps:$4 sm:$0xff]  }
 0x144   : > { %4896 = vmatpush1.bf16.msra.mxu0 %v7223_v1  ;;  %v7929_v1 = vmov 0  }
 0x145   : > { %4939 = vmatpush1.bf16.msra.mxu1 %v7226_v2  ;;  %4897 = vmatprep.subr.bf16.mxu0 %v7231_v3  ;;  %v7836_v2 = vld [vmem:[%s8060_s16 + $0x4] ss:$84 sps:$4 sm:$0xff]  }
 0x146   : > { %4940 = vmatprep.subr.bf16.mxu1 %v7234_v4  ;;  %v7327_v3 = vld [vmem:[%s8058_s15 + $0x1484] ss:$16 sps:$4 sm:$0xff]   ;;  %v7330_v4 = vld [vmem:[%s8058_s15 + $0x8c] ss:$16 sps:$4 sm:$0xff]  }
 0x148   : > { %4898 = vmatpush1.bf16.msra.mxu0 %v7229_v5  ;;  %v7325_v5 = vld [vmem:[%s8058_s15 + $0x1480] ss:$16 sps:$4 sm:$0xff]  }
 0x149   : > { %4941 = vmatpush1.bf16.msra.mxu1 %v7232_v6  ;;  %4899 = vmatprep.subr.bf16.mxu0 %v7237_v7  ;;  %v7328_v6 = vld [vmem:[%s8058_s15 + $0x88] ss:$16 sps:$4 sm:$0xff]   ;;  %v7333_v7 = vld [vmem:[%s8058_s15 + $0x1464] ss:$16 sps:$4 sm:$0xff]  }
 0x14a   : > { %4942 = vmatprep.subr.bf16.mxu1 %v7240_v8  ;;  %v7336_v8 = vld [vmem:[%s8058_s15 + $0x6c] ss:$16 sps:$4 sm:$0xff]  }
 0x14c   : > { %4900 = vmatpush1.bf16.msra.mxu0 %v7235_v9  ;;  %v7331_v9 = vld [vmem:[%s8058_s15 + $0x1460] ss:$16 sps:$4 sm:$0xff]  }
 0x14d   : > { %4943 = vmatpush1.bf16.msra.mxu1 %v7238_v10  ;;  %4901 = vmatprep.subr.bf16.mxu0 %v7243_v11  ;;  %v7334_v10 = vld [vmem:[%s8058_s15 + $0x68] ss:$16 sps:$4 sm:$0xff]   ;;  %v7339_v11 = vld [vmem:[%s8058_s15 + $0x1444] ss:$16 sps:$4 sm:$0xff]  }
 0x14e   : > { %4944 = vmatprep.subr.bf16.mxu1 %v7246_v12  ;;  %v7342_v12 = vld [vmem:[%s8058_s15 + $0x4c] ss:$16 sps:$4 sm:$0xff]  }
 0x150   : > { %4902 = vmatpush1.bf16.msra.mxu0 %v7241_v13  ;;  %v7337_v13 = vld [vmem:[%s8058_s15 + $0x1440] ss:$16 sps:$4 sm:$0xff]  }
 0x151   : > { %4945 = vmatpush1.bf16.msra.mxu1 %v7244_v14  ;;  %4903 = vmatprep.subr.bf16.mxu0 %v7249_v15  ;;  %v7340_v14 = vld [vmem:[%s8058_s15 + $0x48] ss:$16 sps:$4 sm:$0xff]   ;;  %v7345_v15 = vld [vmem:[%s8058_s15 + $0x1424] ss:$16 sps:$4 sm:$0xff]  }
 0x152   : > { %4946 = vmatprep.subr.bf16.mxu1 %v7252_v16  ;;  %v7348_v16 = vld [vmem:[%s8058_s15 + $0x2c] ss:$16 sps:$4 sm:$0xff]  }
 0x154   : > { %4904 = vmatpush1.bf16.msra.mxu0 %v7247_v17  ;;  %v7343_v17 = vld [vmem:[%s8058_s15 + $0x1420] ss:$16 sps:$4 sm:$0xff]  }
 0x155   : > { %4947 = vmatpush1.bf16.msra.mxu1 %v7250_v18  ;;  %4905 = vmatprep.subr.bf16.mxu0 %v7255_v19  ;;  %v7346_v18 = vld [vmem:[%s8058_s15 + $0x28] ss:$16 sps:$4 sm:$0xff]   ;;  %v7351_v19 = vld [vmem:[%s8058_s15 + $0x1404] ss:$16 sps:$4 sm:$0xff]  }
 0x156   : > { %4948 = vmatprep.subr.bf16.mxu1 %v7258_v20  ;;  %v7354_v20 = vld [vmem:[%s8058_s15 + $0xc] ss:$16 sps:$4 sm:$0xff]  }
 0x158   : > { %4906 = vmatpush2.bf16.msra.mxu0 %v7253_v21  ;;  %v7349_v21 = vld [vmem:[%s8058_s15 + $0x1400] ss:$16 sps:$4 sm:$0xff]  }
 0x159   : > { %4949 = vmatpush2.bf16.msra.mxu1 %v7256_v22  ;;  %4907 = vmatprep.subr.bf16.mxu0 %v7261_v23  ;;  %v7352_v22 = vld [vmem:[%s8058_s15 + $0x8] ss:$16 sps:$4 sm:$0xff]  }
 0x15a   : > { %4950 = vmatprep.subr.bf16.mxu1 %v7264_v24  ;;  %v7355_v23 = vld [vmem:[%s8060_s16 + $0x50] ss:$84 sps:$4 sm:$0xff]  }
 0x15b   : > { %v7358_v24 = vld [vmem:[%s8058_s15 + $0x1ec] ss:$16 sps:$4 sm:$0xff]  }
 0x15c   : > { %4908 = vmatpush2.bf16.msra.mxu0 %v7259_v25  ;;  %v7361_v25 = vld [vmem:[%s8058_s15 + $0x2ec] ss:$16 sps:$4 sm:$0xff]  }
 0x15d   : > { %4951 = vmatpush2.bf16.msra.mxu1 %v7262_v26  ;;  %4909 = vmatprep.subr.bf16.mxu0 %v7267_v27  ;;  %v7356_v26 = vld [vmem:[%s8058_s15 + $0x1e8] ss:$16 sps:$4 sm:$0xff]  }
 0x15e   : > { %4952 = vmatprep.subr.bf16.mxu1 %v7270_v28  ;;  %v7359_v27 = vld [vmem:[%s8058_s15 + $0x2e8] ss:$16 sps:$4 sm:$0xff]   ;;  %v7364_v28 = vld [vmem:[%s8058_s15 + $0x1cc] ss:$16 sps:$4 sm:$0xff]  }
 0x160   : > { %4910 = vmatpush2.bf16.msra.mxu0 %v7265_v29  ;;  %v7367_v29 = vld [vmem:[%s8058_s15 + $0x2cc] ss:$16 sps:$4 sm:$0xff]  }
 0x161   : > { %4953 = vmatpush2.bf16.msra.mxu1 %v7268_v30  ;;  %4911 = vmatprep.subr.bf16.mxu0 %v7273_v31  ;;  %v7362_v30 = vld [vmem:[%s8058_s15 + $0x1c8] ss:$16 sps:$4 sm:$0xff]  }
 0x162   : > { %4954 = vmatprep.subr.bf16.mxu1 %v7276_v32  ;;  %v7365_v31 = vld [vmem:[%s8058_s15 + $0x2c8] ss:$16 sps:$4 sm:$0xff]   ;;  %v7370_v32 = vld [vmem:[%s8058_s15 + $0x1ac] ss:$16 sps:$4 sm:$0xff]  }
 0x164   : > { %4912 = vmatpush2.bf16.msra.mxu0 %v7271_v33  ;;  %v7373_v33 = vld [vmem:[%s8058_s15 + $0x2ac] ss:$16 sps:$4 sm:$0xff]  }
 0x165   : > { %4955 = vmatpush2.bf16.msra.mxu1 %v7274_v34  ;;  %4913 = vmatprep.subr.bf16.mxu0 %v7279_v35  ;;  %v7837_v34 = vld [vmem:[%s8060_s16 + $0xc] ss:$84 sps:$4 sm:$0xff]  }
 0x166   : > { %4956 = vmatprep.subr.bf16.mxu1 %v7282_v36  ;;  %v7368_v35 = vld [vmem:[%s8058_s15 + $0x1a8] ss:$16 sps:$4 sm:$0xff]  }
 0x167   : > { %v7371_v36 = vld [vmem:[%s8058_s15 + $0x2a8] ss:$16 sps:$4 sm:$0xff]  }
 0x168   : > { %4914 = vmatpush2.bf16.msra.mxu0 %v7277_v37  ;;  %v7376_v37 = vld [vmem:[%s8058_s15 + $0x18c] ss:$16 sps:$4 sm:$0xff]  }
 0x169   : > { %4957 = vmatpush2.bf16.msra.mxu1 %v7280_v38  ;;  %4915 = vmatprep.subr.bf16.mxu0 %v7285_v39  ;;  %v7379_v38 = vld [vmem:[%s8058_s15 + $0x28c] ss:$16 sps:$4 sm:$0xff]   ;;  %v7374_v39 = vld [vmem:[%s8058_s15 + $0x188] ss:$16 sps:$4 sm:$0xff]  }
 0x16a   : > { %4958 = vmatprep.subr.bf16.mxu1 %v7288_v40  ;;  %v7377_v40 = vld [vmem:[%s8058_s15 + $0x288] ss:$16 sps:$4 sm:$0xff]  }
 0x16c   : > { %4916 = vmatpush2.bf16.msra.mxu0 %v7283_v41  ;;  %v7382_v41 = vld [vmem:[%s8058_s15 + $0x16c] ss:$16 sps:$4 sm:$0xff]  }
 0x16d   : > { %4959 = vmatpush2.bf16.msra.mxu1 %v7286_v42  ;;  %4917 = vmatprep.subr.bf16.mxu0 %v7291_v43  ;;  %v7385_v42 = vld [vmem:[%s8058_s15 + $0x26c] ss:$16 sps:$4 sm:$0xff]   ;;  %v7380_v43 = vld [vmem:[%s8058_s15 + $0x168] ss:$16 sps:$4 sm:$0xff]  }
 0x16e   : > { %4960 = vmatprep.subr.bf16.mxu1 %v7294_v44  ;;  %v7383_v44 = vld [vmem:[%s8058_s15 + $0x268] ss:$16 sps:$4 sm:$0xff]  }
 0x170   : > { %4918 = vmatpush2.bf16.msra.mxu0 %v7289_v45  ;;  %v7388_v45 = vld [vmem:[%s8058_s15 + $0x14c] ss:$16 sps:$4 sm:$0xff]  }
 0x171   : > { %4961 = vmatpush2.bf16.msra.mxu1 %v7292_v46  ;;  %4919 = vmatprep.subr.bf16.mxu0 %v7297_v47  ;;  %v7391_v46 = vld [vmem:[%s8058_s15 + $0x24c] ss:$16 sps:$4 sm:$0xff]   ;;  %v7386_v47 = vld [vmem:[%s8058_s15 + $0x148] ss:$16 sps:$4 sm:$0xff]  }
 0x172   : > { %4962 = vmatprep.subr.bf16.mxu1 %v7300_v48  ;;  %v7389_v48 = vld [vmem:[%s8058_s15 + $0x248] ss:$16 sps:$4 sm:$0xff]  }
 0x174   : > { %4920 = vmatpush2.bf16.msra.mxu0 %v7295_v49  ;;  %v7394_v49 = vld [vmem:[%s8058_s15 + $0x12c] ss:$16 sps:$4 sm:$0xff]  }
 0x175   : > { %4963 = vmatpush2.bf16.msra.mxu1 %v7298_v50  ;;  %4975 = vmatprep.subr.bf16.mxu0 %v7309_v53  ;;  %v7397_v50 = vld [vmem:[%s8058_s15 + $0x22c] ss:$16 sps:$4 sm:$0xff]  }
 0x176   : > { %5018 = vmatprep.subr.bf16.mxu1 %v7312_v54  ;;  %v7400_v53 = vld [vmem:[%s8058_s15 + $0x10c] ss:$16 sps:$4 sm:$0xff]  }
 0x177   : > { %4922 = vmatmul.mubr.bf16.vlgmr.msra.gmra.mxu0 %v7301_v51  ;;  %v7392_v51 = vld [vmem:[%s8058_s15 + $0x128] ss:$16 sps:$4 sm:$0xff]   ;;  %v7403_v54 = vld [vmem:[%s8058_s15 + $0x20c] ss:$16 sps:$4 sm:$0xff]  }
 0x178   : > { %4965 = vmatmul.mubr.bf16.vlgmr.msra.gmra.mxu1 %v7304_v52  ;;  %4976 = vmatpush1.bf16.msra.mxu0 %v7307_v55  ;;  %v7395_v52 = vld [vmem:[%s8058_s15 + $0x228] ss:$16 sps:$4 sm:$0xff]  }
 0x179   : > { %5019 = vmatpush1.bf16.msra.mxu1 %v7310_v56  ;;  %4977 = vmatprep.subr.bf16.mxu0 %v7315_v57  ;;  %v7398_v55 = vld [vmem:[%s8058_s15 + $0x108] ss:$16 sps:$4 sm:$0xff]   ;;  %v7406_v57 = vld [vmem:[%s8058_s15 + $0x3ec] ss:$16 sps:$4 sm:$0xff]  }
 0x17a   : > { %5020 = vmatprep.subr.bf16.mxu1 %v7318_v58  ;;  %5007 = vmatprep.mubr.bf16.mxu0 %v7929_v1  ;;  %v7401_v56 = vld [vmem:[%s8058_s15 + $0x208] ss:$16 sps:$4 sm:$0xff]   ;;  %v7409_v58 = vld [vmem:[%s8058_s15 + $0x4ec] ss:$16 sps:$4 sm:$0xff]  }
 0x17b   : > { %5050 = vmatprep.mubr.bf16.mxu1 %v7836_v2  ;;  %v7838_v2 = vld [vmem:[%s8060_s16] ss:$84 sps:$4 sm:$0xff]  }
 0x17c   : > { %4978 = vmatpush1.bf16.msra.mxu0 %v7313_v59  ;;  %v7404_v59 = vld [vmem:[%s8058_s15 + $0x3e8] ss:$16 sps:$4 sm:$0xff]  }
 0x17d   : > { %5021 = vmatpush1.bf16.msra.mxu1 %v7316_v60  ;;  %4979 = vmatprep.subr.bf16.mxu0 %v7321_v61  ;;  %v7407_v60 = vld [vmem:[%s8058_s15 + $0x4e8] ss:$16 sps:$4 sm:$0xff]   ;;  %v7412_v61 = vld [vmem:[%s8058_s15 + $0x3cc] ss:$16 sps:$4 sm:$0xff]  }
 0x17e   : > { %5022 = vmatprep.subr.bf16.mxu1 %v7324_v62  ;;  %v7415_v62 = vld [vmem:[%s8058_s15 + $0x4cc] ss:$16 sps:$4 sm:$0xff]  }
 0x180   : > { %4980 = vmatpush1.bf16.msra.mxu0 %v7319_v63  ;;  %v7410_v63 = vld [vmem:[%s8058_s15 + $0x3c8] ss:$16 sps:$4 sm:$0xff]  }
 0x181   : > { %5023 = vmatpush1.bf16.msra.mxu1 %v7322_v0  ;;  %4981 = vmatprep.subr.bf16.mxu0 %v7327_v3  ;;  %v7413_v0 = vld [vmem:[%s8058_s15 + $0x4c8] ss:$16 sps:$4 sm:$0xff]   ;;  %v7418_v3 = vld [vmem:[%s8058_s15 + $0x3ac] ss:$16 sps:$4 sm:$0xff]  }
 0x182   : > { %5024 = vmatprep.subr.bf16.mxu1 %v7330_v4  ;;  %v7421_v4 = vld [vmem:[%s8058_s15 + $0x4ac] ss:$16 sps:$4 sm:$0xff]  }
 0x184   : > { %4982 = vmatpush1.bf16.msra.mxu0 %v7325_v5  ;;  %v7416_v5 = vld [vmem:[%s8058_s15 + $0x3a8] ss:$16 sps:$4 sm:$0xff]  }
 0x185   : > { %5025 = vmatpush1.bf16.msra.mxu1 %v7328_v6  ;;  %4983 = vmatprep.subr.bf16.mxu0 %v7333_v7  ;;  %v7419_v6 = vld [vmem:[%s8058_s15 + $0x4a8] ss:$16 sps:$4 sm:$0xff]  }
 0x186   : > { %5026 = vmatprep.subr.bf16.mxu1 %v7336_v8  ;;  %v7839_v7 = vld [vmem:[%s8060_s16 + $0x14] ss:$84 sps:$4 sm:$0xff]  }
 0x187   : > { %v7424_v8 = vld [vmem:[%s8058_s15 + $0x38c] ss:$16 sps:$4 sm:$0xff]  }
 0x188   : > { %4984 = vmatpush1.bf16.msra.mxu0 %v7331_v9  ;;  %v7427_v9 = vld [vmem:[%s8058_s15 + $0x48c] ss:$16 sps:$4 sm:$0xff]  }
 0x189   : > { %5027 = vmatpush1.bf16.msra.mxu1 %v7334_v10  ;;  %4985 = vmatprep.subr.bf16.mxu0 %v7339_v11  ;;  %v7422_v10 = vld [vmem:[%s8058_s15 + $0x388] ss:$16 sps:$4 sm:$0xff]  }
 0x18a   : > { %5028 = vmatprep.subr.bf16.mxu1 %v7342_v12  ;;  %v7425_v11 = vld [vmem:[%s8058_s15 + $0x488] ss:$16 sps:$4 sm:$0xff]   ;;  %v7430_v12 = vld [vmem:[%s8058_s15 + $0x36c] ss:$16 sps:$4 sm:$0xff]  }
 0x18c   : > { %4986 = vmatpush1.bf16.msra.mxu0 %v7337_v13  ;;  %v7433_v13 = vld [vmem:[%s8058_s15 + $0x46c] ss:$16 sps:$4 sm:$0xff]  }
 0x18d   : > { %5029 = vmatpush1.bf16.msra.mxu1 %v7340_v14  ;;  %4987 = vmatprep.subr.bf16.mxu0 %v7345_v15  ;;  %v7428_v14 = vld [vmem:[%s8058_s15 + $0x368] ss:$16 sps:$4 sm:$0xff]  }
 0x18e   : > { %5030 = vmatprep.subr.bf16.mxu1 %v7348_v16  ;;  %v7431_v15 = vld [vmem:[%s8058_s15 + $0x468] ss:$16 sps:$4 sm:$0xff]   ;;  %v7436_v16 = vld [vmem:[%s8058_s15 + $0x34c] ss:$16 sps:$4 sm:$0xff]  }
 0x190   : > { %4988 = vmatpush1.bf16.msra.mxu0 %v7343_v17  ;;  %v7439_v17 = vld [vmem:[%s8058_s15 + $0x44c] ss:$16 sps:$4 sm:$0xff]  }
 0x191   : > { %5031 = vmatpush1.bf16.msra.mxu1 %v7346_v18  ;;  %4989 = vmatprep.subr.bf16.mxu0 %v7351_v19  ;;  %v7434_v18 = vld [vmem:[%s8058_s15 + $0x348] ss:$16 sps:$4 sm:$0xff]  }
 0x192   : > { %5032 = vmatprep.subr.bf16.mxu1 %v7354_v20  ;;  %v7437_v19 = vld [vmem:[%s8058_s15 + $0x448] ss:$16 sps:$4 sm:$0xff]   ;;  %v7442_v20 = vld [vmem:[%s8058_s15 + $0x32c] ss:$16 sps:$4 sm:$0xff]  }
 0x194   : > { %4990 = vmatpush1.bf16.msra.mxu0 %v7349_v21  ;;  %v7445_v21 = vld [vmem:[%s8058_s15 + $0x42c] ss:$16 sps:$4 sm:$0xff]  }
 0x195   : > { %5033 = vmatpush1.bf16.msra.mxu1 %v7352_v22  ;;  %5061 = vmatprep.subr.bf16.mxu0 %v7361_v25  ;;  %v7440_v22 = vld [vmem:[%s8058_s15 + $0x328] ss:$16 sps:$4 sm:$0xff]   ;;  %v7451_v25 = vld [vmem:[%s8058_s15 + $0x40c] ss:$16 sps:$4 sm:$0xff]  }
 0x196   : > { %5034 = vmatprep.subr.bf16.mxu1 %v7358_v24  ;;  %v7448_v24 = vld [vmem:[%s8058_s15 + $0x30c] ss:$16 sps:$4 sm:$0xff]  }
 0x197   : > { %5008 = vmatmul.mubr.bf16.vlgmr.msra.gmra.mxu0 %v7355_v23  ;;  %v7443_v23 = vld [vmem:[%s8058_s15 + $0x428] ss:$16 sps:$4 sm:$0xff]  }
 0x198   : > { %5062 = vmatpush1.bf16.msra.mxu0 %v7359_v27  ;;  %5093 = vmatprep.mubr.bf16.mxu0 %v7837_v34  ;;  %v7449_v27 = vld [vmem:[%s8058_s15 + $0x408] ss:$16 sps:$4 sm:$0xff]  }
 0x199   : > { %5035 = vmatpush2.bf16.msra.mxu1 %v7356_v26  ;;  %5063 = vmatprep.subr.bf16.mxu0 %v7367_v29  ;;  %v7446_v26 = vld [vmem:[%s8058_s15 + $0x308] ss:$16 sps:$4 sm:$0xff]   ;;  %v7457_v29 = vld [vmem:[%s8058_s15 + $0x6ec] ss:$16 sps:$4 sm:$0xff]  }
 0x19a   : > { %5036 = vmatprep.subr.bf16.mxu1 %v7364_v28  ;;  %v7454_v28 = vld [vmem:[%s8058_s15 + $0x5ec] ss:$16 sps:$4 sm:$0xff]   ;;  %v7458_v34 = vld [vmem:[%s8058_s15 + $0x5c8] ss:$16 sps:$4 sm:$0xff]  }
 0x19c   : > { %5064 = vmatpush1.bf16.msra.mxu0 %v7365_v31  ;;  %v7455_v31 = vld [vmem:[%s8058_s15 + $0x6e8] ss:$16 sps:$4 sm:$0xff]  }
 0x19d   : > { %5037 = vmatpush2.bf16.msra.mxu1 %v7362_v30  ;;  %5065 = vmatprep.subr.bf16.mxu0 %v7373_v33  ;;  %v7452_v30 = vld [vmem:[%s8058_s15 + $0x5e8] ss:$16 sps:$4 sm:$0xff]   ;;  %v7463_v33 = vld [vmem:[%s8058_s15 + $0x6cc] ss:$16 sps:$4 sm:$0xff]  }
 0x19e   : > { %5038 = vmatprep.subr.bf16.mxu1 %v7370_v32  ;;  %v7460_v32 = vld [vmem:[%s8058_s15 + $0x5cc] ss:$16 sps:$4 sm:$0xff]  }
 0x1a0   : > { %5066 = vmatpush1.bf16.msra.mxu0 %v7371_v36  ;;  %v7840_v36 = vld [vmem:[%s8060_s16 + $0x8] ss:$84 sps:$4 sm:$0xff]  }
 0x1a1   : > { %5039 = vmatpush2.bf16.msra.mxu1 %v7368_v35  ;;  %5067 = vmatprep.subr.bf16.mxu0 %v7379_v38  ;;  %v7461_v35 = vld [vmem:[%s8058_s15 + $0x6c8] ss:$16 sps:$4 sm:$0xff]   ;;  %v7469_v38 = vld [vmem:[%s8058_s15 + $0x6ac] ss:$16 sps:$4 sm:$0xff]  }
 0x1a2   : > { %5040 = vmatprep.subr.bf16.mxu1 %v7376_v37  ;;  %v7466_v37 = vld [vmem:[%s8058_s15 + $0x5ac] ss:$16 sps:$4 sm:$0xff]  }
 0x1a4   : > { %5068 = vmatpush1.bf16.msra.mxu0 %v7377_v40  ;;  %v7464_v40 = vld [vmem:[%s8058_s15 + $0x5a8] ss:$16 sps:$4 sm:$0xff]  }
 0x1a5   : > { %5041 = vmatpush2.bf16.msra.mxu1 %v7374_v39  ;;  %5069 = vmatprep.subr.bf16.mxu0 %v7385_v42  ;;  %v7841_v39 = vld [vmem:[%s8060_s16 + $0x1c] ss:$84 sps:$4 sm:$0xff]  }
 0x1a6   : > { %5042 = vmatprep.subr.bf16.mxu1 %v7382_v41  ;;  %v7467_v41 = vld [vmem:[%s8058_s15 + $0x6a8] ss:$16 sps:$4 sm:$0xff]   ;;  %v7472_v42 = vld [vmem:[%s8058_s15 + $0x58c] ss:$16 sps:$4 sm:$0xff]  }
 0x1a8   : > { %5070 = vmatpush1.bf16.msra.mxu0 %v7383_v44  ;;  %v7470_v44 = vld [vmem:[%s8058_s15 + $0x588] ss:$16 sps:$4 sm:$0xff]  }
 0x1a9   : > { %5043 = vmatpush2.bf16.msra.mxu1 %v7380_v43  ;;  %5071 = vmatprep.subr.bf16.mxu0 %v7391_v46  ;;  %v7475_v43 = vld [vmem:[%s8058_s15 + $0x68c] ss:$16 sps:$4 sm:$0xff]  }
 0x1aa   : > { %5044 = vmatprep.subr.bf16.mxu1 %v7388_v45  ;;  %v7473_v45 = vld [vmem:[%s8058_s15 + $0x688] ss:$16 sps:$4 sm:$0xff]   ;;  %v7478_v46 = vld [vmem:[%s8058_s15 + $0x56c] ss:$16 sps:$4 sm:$0xff]  }
 0x1ac   : > { %5072 = vmatpush1.bf16.msra.mxu0 %v7389_v48  ;;  %v7476_v48 = vld [vmem:[%s8058_s15 + $0x568] ss:$16 sps:$4 sm:$0xff]  }
 0x1ad   : > { %5045 = vmatpush2.bf16.msra.mxu1 %v7386_v47  ;;  %5073 = vmatprep.subr.bf16.mxu0 %v7397_v50  ;;  %v7481_v47 = vld [vmem:[%s8058_s15 + $0x66c] ss:$16 sps:$4 sm:$0xff]  }
 0x1ae   : > { %5046 = vmatprep.subr.bf16.mxu1 %v7394_v49  ;;  %v7479_v49 = vld [vmem:[%s8058_s15 + $0x668] ss:$16 sps:$4 sm:$0xff]   ;;  %v7484_v50 = vld [vmem:[%s8058_s15 + $0x54c] ss:$16 sps:$4 sm:$0xff]  }
 0x1b0   : > { %5074 = vmatpush1.bf16.msra.mxu0 %v7395_v52  ;;  %v7482_v52 = vld [vmem:[%s8058_s15 + $0x548] ss:$16 sps:$4 sm:$0xff]  }
 0x1b1   : > { %5047 = vmatpush2.bf16.msra.mxu1 %v7392_v51  ;;  %5075 = vmatprep.subr.bf16.mxu0 %v7403_v54  ;;  %v7487_v51 = vld [vmem:[%s8058_s15 + $0x64c] ss:$16 sps:$4 sm:$0xff]  }
 0x1b2   : > { %5048 = vmatprep.subr.bf16.mxu1 %v7400_v53  ;;  %v7485_v53 = vld [vmem:[%s8058_s15 + $0x648] ss:$16 sps:$4 sm:$0xff]   ;;  %v7490_v54 = vld [vmem:[%s8058_s15 + $0x52c] ss:$16 sps:$4 sm:$0xff]  }
 0x1b4   : > { %5076 = vmatpush1.bf16.msra.mxu0 %v7401_v56  ;;  %v7488_v56 = vld [vmem:[%s8058_s15 + $0x528] ss:$16 sps:$4 sm:$0xff]  }
 0x1b5   : > { %5049 = vmatpush2.bf16.msra.mxu1 %v7398_v55  ;;  %5077 = vmatprep.subr.bf16.mxu0 %v7406_v57  ;;  %v7493_v55 = vld [vmem:[%s8058_s15 + $0x62c] ss:$16 sps:$4 sm:$0xff]   ;;  %v7491_v57 = vld [vmem:[%s8058_s15 + $0x628] ss:$16 sps:$4 sm:$0xff]  }
 0x1b6   : > { %5104 = vmatprep.subr.bf16.mxu1 %v7409_v58  ;;  %v7496_v58 = vld [vmem:[%s8058_s15 + $0x50c] ss:$16 sps:$4 sm:$0xff]  }
 0x1b8   : > { %5051 = vmatmul.mubr.bf16.vlgmr.msra.gmra.mxu1 %v7838_v2  ;;  %5078 = vmatpush2.bf16.msra.mxu0 %v7404_v59  ;;  %v7499_v59 = vld [vmem:[%s8058_s15 + $0x60c] ss:$16 sps:$4 sm:$0xff]   ;;  %v7503_v2 = vld [vmem:[%s8058_s15 + $0x8e8] ss:$16 sps:$4 sm:$0xff]  }
 0x1b9   : > { %5105 = vmatpush1.bf16.msra.mxu1 %v7407_v60  ;;  %5079 = vmatprep.subr.bf16.mxu0 %v7412_v61  ;;  %v7494_v60 = vld [vmem:[%s8058_s15 + $0x508] ss:$16 sps:$4 sm:$0xff]  }
 0x1ba   : > { %5106 = vmatprep.subr.bf16.mxu1 %v7415_v62  ;;  %5136 = vmatprep.mubr.bf16.mxu1 %v7839_v7  ;;  %v7497_v61 = vld [vmem:[%s8058_s15 + $0x608] ss:$16 sps:$4 sm:$0xff]   ;;  %v7502_v62 = vld [vmem:[%s8058_s15 + $0x7ec] ss:$16 sps:$4 sm:$0xff]  }
 0x1bb   : > { %v7509_v7 = vld [vmem:[%s8058_s15 + $0x8c8] ss:$16 sps:$4 sm:$0xff]  }
 0x1bc   : > { %5080 = vmatpush2.bf16.msra.mxu0 %v7410_v63  ;;  %v7505_v63 = vld [vmem:[%s8058_s15 + $0x8ec] ss:$16 sps:$4 sm:$0xff]  }
 0x1bd   : > { %5107 = vmatpush1.bf16.msra.mxu1 %v7413_v0  ;;  %5081 = vmatprep.subr.bf16.mxu0 %v7418_v3  ;;  %v7500_v0 = vld [vmem:[%s8058_s15 + $0x7e8] ss:$16 sps:$4 sm:$0xff]   ;;  %v7508_v3 = vld [vmem:[%s8058_s15 + $0x7cc] ss:$16 sps:$4 sm:$0xff]  }
 0x1be   : > { %5108 = vmatprep.subr.bf16.mxu1 %v7421_v4  ;;  %v7511_v4 = vld [vmem:[%s8058_s15 + $0x8cc] ss:$16 sps:$4 sm:$0xff]  }
 0x1c0   : > { %5082 = vmatpush2.bf16.msra.mxu0 %v7416_v5  ;;  %v7842_v5 = vld [vmem:[%s8060_s16 + $0x10] ss:$84 sps:$4 sm:$0xff]  }
 0x1c1   : > { %5109 = vmatpush1.bf16.msra.mxu1 %v7419_v6  ;;  %5083 = vmatprep.subr.bf16.mxu0 %v7424_v8  ;;  %v7506_v6 = vld [vmem:[%s8058_s15 + $0x7c8] ss:$16 sps:$4 sm:$0xff]   ;;  %v7514_v8 = vld [vmem:[%s8058_s15 + $0x7ac] ss:$16 sps:$4 sm:$0xff]  }
 0x1c2   : > { %5110 = vmatprep.subr.bf16.mxu1 %v7427_v9  ;;  %v7517_v9 = vld [vmem:[%s8058_s15 + $0x8ac] ss:$16 sps:$4 sm:$0xff]  }
 0x1c4   : > { %5084 = vmatpush2.bf16.msra.mxu0 %v7422_v10  ;;  %v7843_v10 = vld [vmem:[%s8060_s16 + $0x24] ss:$84 sps:$4 sm:$0xff]  }
 0x1c5   : > { %5111 = vmatpush1.bf16.msra.mxu1 %v7425_v11  ;;  %5085 = vmatprep.subr.bf16.mxu0 %v7430_v12  ;;  %v7512_v11 = vld [vmem:[%s8058_s15 + $0x7a8] ss:$16 sps:$4 sm:$0xff]  }
 0x1c6   : > { %5112 = vmatprep.subr.bf16.mxu1 %v7433_v13  ;;  %v7515_v12 = vld [vmem:[%s8058_s15 + $0x8a8] ss:$16 sps:$4 sm:$0xff]   ;;  %v7520_v13 = vld [vmem:[%s8058_s15 + $0x78c] ss:$16 sps:$4 sm:$0xff]  }
 0x1c8   : > { %5086 = vmatpush2.bf16.msra.mxu0 %v7428_v14  ;;  %v7523_v14 = vld [vmem:[%s8058_s15 + $0x88c] ss:$16 sps:$4 sm:$0xff]  }
 0x1c9   : > { %5113 = vmatpush1.bf16.msra.mxu1 %v7431_v15  ;;  %5087 = vmatprep.subr.bf16.mxu0 %v7436_v16  ;;  %v7518_v15 = vld [vmem:[%s8058_s15 + $0x788] ss:$16 sps:$4 sm:$0xff]  }
 0x1ca   : > { %5114 = vmatprep.subr.bf16.mxu1 %v7439_v17  ;;  %v7521_v16 = vld [vmem:[%s8058_s15 + $0x888] ss:$16 sps:$4 sm:$0xff]   ;;  %v7526_v17 = vld [vmem:[%s8058_s15 + $0x76c] ss:$16 sps:$4 sm:$0xff]  }
 0x1cc   : > { %5088 = vmatpush2.bf16.msra.mxu0 %v7434_v18  ;;  %v7529_v18 = vld [vmem:[%s8058_s15 + $0x86c] ss:$16 sps:$4 sm:$0xff]  }
 0x1cd   : > { %5115 = vmatpush1.bf16.msra.mxu1 %v7437_v19  ;;  %5089 = vmatprep.subr.bf16.mxu0 %v7442_v20  ;;  %v7524_v19 = vld [vmem:[%s8058_s15 + $0x768] ss:$16 sps:$4 sm:$0xff]  }
 0x1ce   : > { %5116 = vmatprep.subr.bf16.mxu1 %v7445_v21  ;;  %v7527_v20 = vld [vmem:[%s8058_s15 + $0x868] ss:$16 sps:$4 sm:$0xff]   ;;  %v7532_v21 = vld [vmem:[%s8058_s15 + $0x74c] ss:$16 sps:$4 sm:$0xff]  }
 0x1d0   : > { %5090 = vmatpush2.bf16.msra.mxu0 %v7440_v22  ;;  %v7535_v22 = vld [vmem:[%s8058_s15 + $0x84c] ss:$16 sps:$4 sm:$0xff]  }
 0x1d1   : > { %5117 = vmatpush1.bf16.msra.mxu1 %v7443_v23  ;;  %5091 = vmatprep.subr.bf16.mxu0 %v7448_v24  ;;  %v7530_v23 = vld [vmem:[%s8058_s15 + $0x748] ss:$16 sps:$4 sm:$0xff]  }
 0x1d2   : > { %5118 = vmatprep.subr.bf16.mxu1 %v7451_v25  ;;  %v7533_v24 = vld [vmem:[%s8058_s15 + $0x848] ss:$16 sps:$4 sm:$0xff]   ;;  %v7538_v25 = vld [vmem:[%s8058_s15 + $0x72c] ss:$16 sps:$4 sm:$0xff]  }
 0x1d4   : > { %5092 = vmatpush2.bf16.msra.mxu0 %v7446_v26  ;;  %v7541_v26 = vld [vmem:[%s8058_s15 + $0x82c] ss:$16 sps:$4 sm:$0xff]  }
 0x1d5   : > { %5119 = vmatpush1.bf16.msra.mxu1 %v7449_v27  ;;  %5147 = vmatprep.subr.bf16.mxu0 %v7457_v29  ;;  %v7536_v27 = vld [vmem:[%s8058_s15 + $0x728] ss:$16 sps:$4 sm:$0xff]   ;;  %v7544_v29 = vld [vmem:[%s8058_s15 + $0x70c] ss:$16 sps:$4 sm:$0xff]  }
 0x1d6   : > { %5120 = vmatprep.subr.bf16.mxu1 %v7454_v28  ;;  %v7539_v28 = vld [vmem:[%s8058_s15 + $0x828] ss:$16 sps:$4 sm:$0xff]  }
 0x1d7   : > { %5094 = vmatmul.mubr.bf16.vlgmr.msra.gmra.mxu0 %v7840_v36  ;;  %v7548_v36 = vld [vmem:[%s8058_s15 + $0x9e8] ss:$16 sps:$4 sm:$0xff]  }
 0x1d8   : > { %5148 = vmatpush1.bf16.msra.mxu0 %v7455_v31  ;;  %5179 = vmatprep.mubr.bf16.mxu0 %v7841_v39  ;;  %v7542_v31 = vld [vmem:[%s8058_s15 + $0x708] ss:$16 sps:$4 sm:$0xff]   ;;  %v7556_v39 = vld [vmem:[%s8058_s15 + $0x9cc] ss:$16 sps:$4 sm:$0xff]  }
 0x1d9   : > { %5121 = vmatpush2.bf16.msra.mxu1 %v7452_v30  ;;  %5149 = vmatprep.subr.bf16.mxu0 %v7463_v33  ;;  %v7547_v30 = vld [vmem:[%s8058_s15 + $0x80c] ss:$16 sps:$4 sm:$0xff]   ;;  %v8576_v33 = vpop.f32.mrf.mxu0 }
 0x1da   : > { %5122 = vmatprep.subr.bf16.mxu1 %v7460_v32  ;;  %v7545_v32 = vld [vmem:[%s8058_s15 + $0x808] ss:$16 sps:$4 sm:$0xff]  }
 0x1dc   : > { %5150 = vmatpush1.bf16.msra.mxu0 %v7461_v35  ;;  %v7553_v35 = vld [vmem:[%s8058_s15 + $0xaec] ss:$16 sps:$4 sm:$0xff]  }
 0x1dd   : > { %5123 = vmatpush2.bf16.msra.mxu1 %v7458_v34  ;;  %5151 = vmatprep.subr.bf16.mxu0 %v7469_v38  ;;  %v7550_v34 = vld [vmem:[%s8058_s15 + $0x9ec] ss:$16 sps:$4 sm:$0xff]   ;;  %v8582_v38 = vpop.f32.mrf.mxu0 }
 0x1de   : > { %5124 = vmatprep.subr.bf16.mxu1 %v7466_v37  ;;  %v7551_v37 = vld [vmem:[%s8058_s15 + $0xae8] ss:$16 sps:$4 sm:$0xff]  }
 0x1e0   : > { %5152 = vmatpush1.bf16.msra.mxu0 %v7467_v41  ;;  %v8586_v41 = vpop.f32.mrf.mxu1 }
 0x1e1   : > { %5125 = vmatpush2.bf16.msra.mxu1 %v7464_v40  ;;  %5153 = vmatprep.subr.bf16.mxu0 %v7475_v43  ;;  %v7559_v40 = vld [vmem:[%s8058_s15 + $0xacc] ss:$16 sps:$4 sm:$0xff]   ;;  %v7554_v43 = vld [vmem:[%s8058_s15 + $0x9c8] ss:$16 sps:$4 sm:$0xff]  }
 0x1e2   : > { %5126 = vmatprep.subr.bf16.mxu1 %v7472_v42  ;;  %v7844_v42 = vld [vmem:[%s8060_s16 + $0x18] ss:$84 sps:$4 sm:$0xff]  }
 0x1e4   : > { %5154 = vmatpush1.bf16.msra.mxu0 %v7473_v45  ;;  %v8591_v45 = vpop.f32.mrf.mxu0 }
 0x1e5   : > { %5127 = vmatpush2.bf16.msra.mxu1 %v7470_v44  ;;  %5155 = vmatprep.subr.bf16.mxu0 %v7481_v47  ;;  %v7557_v44 = vld [vmem:[%s8058_s15 + $0xac8] ss:$16 sps:$4 sm:$0xff]   ;;  %v7565_v47 = vld [vmem:[%s8058_s15 + $0xaac] ss:$16 sps:$4 sm:$0xff]  }
 0x1e6   : > { %5128 = vmatprep.subr.bf16.mxu1 %v7478_v46  ;;  %v7562_v46 = vld [vmem:[%s8058_s15 + $0x9ac] ss:$16 sps:$4 sm:$0xff]  }
 0x1e8   : > { %5156 = vmatpush1.bf16.msra.mxu0 %v7479_v49  ;;  %v8596_v49 = vpop.f32.mrf.mxu1 }
 0x1e9   : > { %5129 = vmatpush2.bf16.msra.mxu1 %v7476_v48  ;;  %5157 = vmatprep.subr.bf16.mxu0 %v7487_v51  ;;  %v7845_v48 = vld [vmem:[%s8060_s16 + $0x2c] ss:$84 sps:$4 sm:$0xff]  }
 0x1ea   : > { %5130 = vmatprep.subr.bf16.mxu1 %v7484_v50  ;;  %v7560_v50 = vld [vmem:[%s8058_s15 + $0x9a8] ss:$16 sps:$4 sm:$0xff]  }
 0x1eb   : > { %v7563_v51 = vld [vmem:[%s8058_s15 + $0xaa8] ss:$16 sps:$4 sm:$0xff]  }
 0x1ec   : > { %5158 = vmatpush1.bf16.msra.mxu0 %v7485_v53  ;;  %v7568_v53 = vld [vmem:[%s8058_s15 + $0x98c] ss:$16 sps:$4 sm:$0xff]  }
 0x1ed   : > { %5131 = vmatpush2.bf16.msra.mxu1 %v7482_v52  ;;  %5159 = vmatprep.subr.bf16.mxu0 %v7493_v55  ;;  %v8600_v52 = vpop.f32.mrf.mxu0  ;;  %v8604_v55 = vpop.f32.mrf.mxu1 }
 0x1ee   : > { %5132 = vmatprep.subr.bf16.mxu1 %v7490_v54  ;;  %v7571_v54 = vld [vmem:[%s8058_s15 + $0xa8c] ss:$16 sps:$4 sm:$0xff]  }
 0x1f0   : > { %5160 = vmatpush1.bf16.msra.mxu0 %v7491_v57  ;;  %v7566_v57 = vld [vmem:[%s8058_s15 + $0x988] ss:$16 sps:$4 sm:$0xff]  }
 0x1f1   : > { %5133 = vmatpush2.bf16.msra.mxu1 %v7488_v56  ;;  %5161 = vmatprep.subr.bf16.mxu0 %v7499_v59  ;;  %v8606_v56 = vpop.f32.mrf.mxu0  ;;  %v7574_v59 = vld [vmem:[%s8058_s15 + $0x96c] ss:$16 sps:$4 sm:$0xff]  }
 0x1f2   : > { %5134 = vmatprep.subr.bf16.mxu1 %v7496_v58  ;;  %v7569_v58 = vld [vmem:[%s8058_s15 + $0xa88] ss:$16 sps:$4 sm:$0xff]  }
 0x1f4   : > { %5162 = vmatpush1.bf16.msra.mxu0 %v7497_v61  ;;  %v8612_v61 = vpop.f32.mrf.mxu1 }
 0x1f5   : > { %5135 = vmatpush2.bf16.msra.mxu1 %v7494_v60  ;;  %5163 = vmatprep.subr.bf16.mxu0 %v7502_v62  ;;  %v7577_v60 = vld [vmem:[%s8058_s15 + $0xa6c] ss:$16 sps:$4 sm:$0xff]   ;;  %v8614_v62 = vpop.f32.mrf.mxu0 }
 0x1f6   : > { %5190 = vmatprep.subr.bf16.mxu1 %v7505_v63  ;;  %v7572_v63 = vld [vmem:[%s8058_s15 + $0x968] ss:$16 sps:$4 sm:$0xff]  }
 0x1f8   : > { %5137 = vmatmul.mubr.bf16.vlgmr.msra.gmra.mxu1 %v7842_v5  ;;  %5164 = vmatpush2.bf16.msra.mxu0 %v7500_v0  ;;  %v7575_v0 = vld [vmem:[%s8058_s15 + $0xa68] ss:$16 sps:$4 sm:$0xff]   ;;  %v8622_v5 = vpop.f32.mrf.mxu0 }
 0x1f9   : > { %5191 = vmatpush1.bf16.msra.mxu1 %v7503_v2  ;;  %5165 = vmatprep.subr.bf16.mxu0 %v7508_v3  ;;  %v8618_v2 = vpop.f32.mrf.mxu1  ;;  %v7580_v3 = vld [vmem:[%s8058_s15 + $0x94c] ss:$16 sps:$4 sm:$0xff]  }
 0x1fa   : > { %5192 = vmatprep.subr.bf16.mxu1 %v7511_v4  ;;  %5222 = vmatprep.mubr.bf16.mxu1 %v7843_v10  ;;  %v7583_v4 = vld [vmem:[%s8058_s15 + $0xa4c] ss:$16 sps:$4 sm:$0xff]  }
 0x1fb   : > { %v7589_v10 = vld [vmem:[%s8058_s15 + $0xa2c] ss:$16 sps:$4 sm:$0xff]  }
 0x1fc   : > { %5166 = vmatpush2.bf16.msra.mxu0 %v7506_v6  ;;  %v7578_v6 = vld [vmem:[%s8058_s15 + $0x948] ss:$16 sps:$4 sm:$0xff]  }
 0x1fd   : > { %5193 = vmatpush1.bf16.msra.mxu1 %v7509_v7  ;;  %5167 = vmatprep.subr.bf16.mxu0 %v7514_v8  ;;  %v7581_v7 = vld [vmem:[%s8058_s15 + $0xa48] ss:$16 sps:$4 sm:$0xff]   ;;  %v8626_v8 = vpop.f32.mrf.mxu1 }
 0x1fe   : > { %5194 = vmatprep.subr.bf16.mxu1 %v7517_v9  ;;  %v7586_v9 = vld [vmem:[%s8058_s15 + $0x92c] ss:$16 sps:$4 sm:$0xff]  }
 0x200   : > { %5168 = vmatpush2.bf16.msra.mxu0 %v7512_v11  ;;  %v8630_v11 = vpop.f32.mrf.mxu0 }
 0x201   : > { %5195 = vmatpush1.bf16.msra.mxu1 %v7515_v12  ;;  %5169 = vmatprep.subr.bf16.mxu0 %v7520_v13  ;;  %v7584_v12 = vld [vmem:[%s8058_s15 + $0x928] ss:$16 sps:$4 sm:$0xff]  }
 0x202   : > { %5196 = vmatprep.subr.bf16.mxu1 %v7523_v14  ;;  %v7587_v13 = vld [vmem:[%s8058_s15 + $0xa28] ss:$16 sps:$4 sm:$0xff]   ;;  %v8634_v14 = vpop.f32.mrf.mxu1 }
 0x204   : > { %5170 = vmatpush2.bf16.msra.mxu0 %v7518_v15  ;;  %v8636_v15 = vpop.f32.mrf.mxu0 }
 0x205   : > { %5197 = vmatpush1.bf16.msra.mxu1 %v7521_v16  ;;  %5171 = vmatprep.subr.bf16.mxu0 %v7526_v17  ;;  %v7592_v16 = vld [vmem:[%s8058_s15 + $0x90c] ss:$16 sps:$4 sm:$0xff]  }
 0x206   : > { %5198 = vmatprep.subr.bf16.mxu1 %v7529_v18  ;;  %v7595_v17 = vld [vmem:[%s8058_s15 + $0xa0c] ss:$16 sps:$4 sm:$0xff]   ;;  %v7590_v18 = vld [vmem:[%s8058_s15 + $0x908] ss:$16 sps:$4 sm:$0xff]  }
 0x208   : > { %5172 = vmatpush2.bf16.msra.mxu0 %v7524_v19  ;;  %v7593_v19 = vld [vmem:[%s8058_s15 + $0xa08] ss:$16 sps:$4 sm:$0xff]  }
 0x209   : > { %5199 = vmatpush1.bf16.msra.mxu1 %v7527_v20  ;;  %5173 = vmatprep.subr.bf16.mxu0 %v7532_v21  ;;  %v8642_v20 = vpop.f32.mrf.mxu1  ;;  %v8644_v21 = vpop.f32.mrf.mxu0 }
 0x20a   : > { %5200 = vmatprep.subr.bf16.mxu1 %v7535_v22  ;;  %v7598_v22 = vld [vmem:[%s8058_s15 + $0xbec] ss:$16 sps:$4 sm:$0xff]  }
 0x20c   : > { %5174 = vmatpush2.bf16.msra.mxu0 %v7530_v23  ;;  %v7601_v23 = vld [vmem:[%s8058_s15 + $0xcec] ss:$16 sps:$4 sm:$0xff]  }
 0x20d   : > { %5201 = vmatpush1.bf16.msra.mxu1 %v7533_v24  ;;  %5175 = vmatprep.subr.bf16.mxu0 %v7538_v25  ;;  %v8648_v24 = vpop.f32.mrf.mxu1  ;;  %v7596_v25 = vld [vmem:[%s8058_s15 + $0xbe8] ss:$16 sps:$4 sm:$0xff]  }
 0x20e   : > { %5202 = vmatprep.subr.bf16.mxu1 %v7541_v26  ;;  %v7599_v26 = vld [vmem:[%s8058_s15 + $0xce8] ss:$16 sps:$4 sm:$0xff]  }
 0x210   : > { %5176 = vmatpush2.bf16.msra.mxu0 %v7536_v27  ;;  %v8652_v27 = vpop.f32.mrf.mxu0 }
 0x211   : > { %5203 = vmatpush1.bf16.msra.mxu1 %v7539_v28  ;;  %5177 = vmatprep.subr.bf16.mxu0 %v7544_v29  ;;  %v7604_v28 = vld [vmem:[%s8058_s15 + $0xbcc] ss:$16 sps:$4 sm:$0xff]  }
 0x212   : > { %5204 = vmatprep.subr.bf16.mxu1 %v7547_v30  ;;  %v7607_v29 = vld [vmem:[%s8058_s15 + $0xccc] ss:$16 sps:$4 sm:$0xff]   ;;  %v8656_v30 = vpop.f32.mrf.mxu1 }
 0x214   : > { %5178 = vmatpush2.bf16.msra.mxu0 %v7542_v31  ;;  %v7846_v31 = vld [vmem:[%s8060_s16 + $0x20] ss:$84 sps:$4 sm:$0xff]  }
 0x215   : > { %5205 = vmatpush1.bf16.msra.mxu1 %v7545_v32  ;;  %5233 = vmatprep.subr.bf16.mxu0 %v7553_v35  ;;  %v7602_v32 = vld [vmem:[%s8058_s15 + $0xbc8] ss:$16 sps:$4 sm:$0xff]   ;;  %v8661_v35 = vpop.f32.mrf.mxu0 }
 0x216   : > { %5206 = vmatprep.subr.bf16.mxu1 %v7550_v34  ;;  %v7605_v34 = vld [vmem:[%s8058_s15 + $0xcc8] ss:$16 sps:$4 sm:$0xff]  }
 0x217   : > { %5180 = vmatmul.mubr.bf16.vlgmr.msra.gmra.mxu0 %v7844_v42  ;;  %v4837_v42 = vpop.f32.mrf.mxu0 }
 0x218   : > { %5234 = vmatpush1.bf16.msra.mxu0 %v7551_v37  ;;  %5265 = vmatprep.mubr.bf16.mxu0 %v7845_v48  ;;  %v7613_v37 = vld [vmem:[%s8058_s15 + $0xcac] ss:$16 sps:$4 sm:$0xff]   ;;  %v4623_v48 = vadd.f32 %v8586_v41, %v8576_v33  ;;  %v4627_v41 = vadd.f32 %v8604_v55, %v8591_v45 }
 0x219   : > { %5207 = vmatpush2.bf16.msra.mxu1 %v7548_v36  ;;  %5235 = vmatprep.subr.bf16.mxu0 %v7559_v40  ;;  %v7610_v36 = vld [vmem:[%s8058_s15 + $0xbac] ss:$16 sps:$4 sm:$0xff]   ;;  %v8666_v40 = vpop.f32.mrf.mxu1 }
 0x21a   : > { %5208 = vmatprep.subr.bf16.mxu1 %v7556_v39  ;;  %v7847_v39 = vld [vmem:[%s8060_s16 + $0x34] ss:$84 sps:$4 sm:$0xff]  }
 0x21b   : > { %v7625_v33 = vld [vmem:[%s8058_s15 + $0xc6c] ss:$16 sps:$4 sm:$0xff]  }
 0x21c   : > { %5236 = vmatpush1.bf16.msra.mxu0 %v7557_v44  ;;  %v7611_v44 = vld [vmem:[%s8058_s15 + $0xca8] ss:$16 sps:$4 sm:$0xff]   ;;  %v7628_v45 = vld [vmem:[%s8058_s15 + $0xb4c] ss:$16 sps:$4 sm:$0xff]  }
 0x21d   : > { %5209 = vmatpush2.bf16.msra.mxu1 %v7554_v43  ;;  %5237 = vmatprep.subr.bf16.mxu0 %v7565_v47  ;;  %v7608_v43 = vld [vmem:[%s8058_s15 + $0xba8] ss:$16 sps:$4 sm:$0xff]   ;;  %v7619_v47 = vld [vmem:[%s8058_s15 + $0xc8c] ss:$16 sps:$4 sm:$0xff]  }
 0x21e   : > { %5210 = vmatprep.subr.bf16.mxu1 %v7562_v46  ;;  %v7616_v46 = vld [vmem:[%s8058_s15 + $0xb8c] ss:$16 sps:$4 sm:$0xff]  }
 0x21f   : > { %v7631_v55 = vld [vmem:[%s8058_s15 + $0xc4c] ss:$16 sps:$4 sm:$0xff]  }
 0x220   : > { %5238 = vmatpush1.bf16.msra.mxu0 %v7563_v51  ;;  %v4839_v51 = vpop.f32.mrf.mxu0 }
 0x221   : > { %5211 = vmatpush2.bf16.msra.mxu1 %v7560_v50  ;;  %5239 = vmatprep.subr.bf16.mxu0 %v7571_v54  ;;  %v8674_v50 = vpop.f32.mrf.mxu1  ;;  %v4666_v54 = vadd.f32 %v8606_v56, %v4623_v48  ;;  %v4629_v56 = vadd.f32 %v8612_v61, %v8600_v52  ;;  %v7647_v48 = vld [vmem:[%s8058_s15 + $0xee8] ss:$16 sps:$4 sm:$0xff]  }
 0x222   : > { %5212 = vmatprep.subr.bf16.mxu1 %v7568_v53  ;;  %v4625_v53 = vadd.f32 %v8596_v49, %v8582_v38  ;;  %v4841_v49 = vpop.f32.mrf.mxu0 }
 0x223   : > { %v4672_v52 = vadd.f32 %v8630_v11, %v4629_v56  ;;  %v7637_v11 = vld [vmem:[%s8058_s15 + $0xc2c] ss:$16 sps:$4 sm:$0xff]  }
 0x224   : > { %5240 = vmatpush1.bf16.msra.mxu0 %v7569_v58  ;;  %v7617_v58 = vld [vmem:[%s8058_s15 + $0xc88] ss:$16 sps:$4 sm:$0xff]   ;;  %v4668_v38 = vadd.f32 %v8614_v62, %v4625_v53  ;;  %v7655_v53 = vld [vmem:[%s8058_s15 + $0xecc] ss:$16 sps:$4 sm:$0xff]  }
 0x225   : > { %5213 = vmatpush2.bf16.msra.mxu1 %v7566_v57  ;;  %5241 = vmatprep.subr.bf16.mxu0 %v7577_v60  ;;  %v7614_v57 = vld [vmem:[%s8058_s15 + $0xb88] ss:$16 sps:$4 sm:$0xff]   ;;  %v7622_v60 = vld [vmem:[%s8058_s15 + $0xb6c] ss:$16 sps:$4 sm:$0xff]  }
 0x226   : > { %5214 = vmatprep.subr.bf16.mxu1 %v7574_v59  ;;  %v4880_v59 = vpop.f32.mrf.mxu1  ;;  %v4711_v62 = vadd.f32 %v8626_v8, %v4668_v38  ;;  %v7634_v8 = vld [vmem:[%s8058_s15 + $0xb2c] ss:$16 sps:$4 sm:$0xff]  }
 0x228   : > { %5242 = vmatpush1.bf16.msra.mxu0 %v7575_v0  ;;  %v4670_v0 = vadd.f32 %v8622_v5, %v4627_v41  ;;  %v7848_v41 = vld [vmem:[%s8060_s16 + $0x28] ss:$84 sps:$4 sm:$0xff]  }
 0x229   : > { %5215 = vmatpush2.bf16.msra.mxu1 %v7572_v63  ;;  %5243 = vmatprep.subr.bf16.mxu0 %v7583_v4  ;;  %v4709_v63 = vadd.f32 %v8618_v2, %v4666_v54  ;;  %v7623_v4 = vld [vmem:[%s8058_s15 + $0xc68] ss:$16 sps:$4 sm:$0xff]   ;;  %v4843_v2 = vpop.f32.mrf.mxu0 }
 0x22a   : > { %5216 = vmatprep.subr.bf16.mxu1 %v7580_v3  ;;  %v7620_v3 = vld [vmem:[%s8058_s15 + $0xb68] ss:$16 sps:$4 sm:$0xff]   ;;  %v4713_v5 = vadd.f32 %v8634_v14, %v4670_v0 }
 0x22b   : > { %v4752_v61 = vadd.f32 %v8636_v15, %v4709_v63  ;;  %v4715_v15 = vadd.f32 %v8642_v20, %v4672_v52  ;;  %v7640_v20 = vld [vmem:[%s8058_s15 + $0xb0c] ss:$16 sps:$4 sm:$0xff]   ;;  %v7650_v63 = vld [vmem:[%s8058_s15 + $0xdc8] ss:$16 sps:$4 sm:$0xff]  }
 0x22c   : > { %5244 = vmatpush1.bf16.msra.mxu0 %v7581_v7  ;;  %v4754_v7 = vadd.f32 %v8644_v21, %v4711_v62  ;;  %v7632_v21 = vld [vmem:[%s8058_s15 + $0xb28] ss:$16 sps:$4 sm:$0xff]  }
 0x22d   : > { %5217 = vmatpush2.bf16.msra.mxu1 %v7578_v6  ;;  %5245 = vmatprep.subr.bf16.mxu0 %v7589_v10  ;;  %v4882_v6 = vpop.f32.mrf.mxu1  ;;  %v7629_v10 = vld [vmem:[%s8058_s15 + $0xc48] ss:$16 sps:$4 sm:$0xff]   ;;  %v4795_v14 = vadd.f32 %v8648_v24, %v4752_v61  ;;  %v7643_v24 = vld [vmem:[%s8058_s15 + $0xc0c] ss:$16 sps:$4 sm:$0xff]  }
 0x22e   : > { %5218 = vmatprep.subr.bf16.mxu1 %v7586_v9  ;;  %v7626_v9 = vld [vmem:[%s8058_s15 + $0xb48] ss:$16 sps:$4 sm:$0xff]  }
 0x22f   : > { %v7653_v0 = vld [vmem:[%s8058_s15 + $0xec8] ss:$16 sps:$4 sm:$0xff]  }
 0x230   : > { %5246 = vmatpush1.bf16.msra.mxu0 %v7587_v13  ;;  %v7849_v61 = vld [vmem:[%s8060_s16 + $0x3c] ss:$84 sps:$4 sm:$0xff]  }
 0x231   : > { %5219 = vmatpush2.bf16.msra.mxu1 %v7584_v12  ;;  %5247 = vmatprep.subr.bf16.mxu0 %v7595_v17  ;;  %v4884_v12 = vpop.f32.mrf.mxu1  ;;  %v4797_v17 = vadd.f32 %v8656_v30, %v4754_v7 }
 0x232   : > { %5220 = vmatprep.subr.bf16.mxu1 %v7592_v16  ;;  %v4756_v16 = vadd.f32 %v8652_v27, %v4713_v5  ;;  %v381_v5 = vld [vmem:[#allocation2 + $0x8] sm:$0xff] }
 0x233   : > { %v4840_v27 = vadd.f32 %v4839_v51, %v4797_v17  ;;  %v7652_v51 = vld [vmem:[%s8058_s15 + $0xdcc] ss:$16 sps:$4 sm:$0xff]  }
 0x234   : > { %5248 = vmatpush1.bf16.msra.mxu0 %v7593_v19  ;;  %v4838_v19 = vadd.f32 %v4837_v42, %v4795_v14  ;;  %v7664_v14 = vld [vmem:[%s8058_s15 + $0xd8c] ss:$16 sps:$4 sm:$0xff]  }
 0x235   : > { %5221 = vmatpush2.bf16.msra.mxu1 %v7590_v18  ;;  %5249 = vmatprep.subr.bf16.mxu0 %v7598_v22  ;;  %v4758_v18 = vadd.f32 %v8661_v35, %v4715_v15  ;;  %v7635_v22 = vld [vmem:[%s8058_s15 + $0xc28] ss:$16 sps:$4 sm:$0xff]  }
 0x236   : > { %5276 = vmatprep.subr.bf16.mxu1 %v7601_v23  ;;  %v4886_v23 = vpop.f32.mrf.mxu1  ;;  %v4881_v30 = vadd.f32 %v4880_v59, %v4838_v19 }
 0x237   : > { %v4923_v13 = vpop.f32.mrf.mxu0 }
 0x238   : > { %5223 = vmatmul.mubr.bf16.vlgmr.msra.gmra.mxu1 %v7846_v31  ;;  %5250 = vmatpush2.bf16.msra.mxu0 %v7596_v25  ;;  %v4924_v42 = vadd.f32 %v4923_v13, %v4881_v30  ;;  %v7656_v13 = vld [vmem:[%s8058_s15 + $0xda8] ss:$16 sps:$4 sm:$0xff]   ;;  %v7682_v30 = vld [vmem:[%s8058_s15 + $0xd2c] ss:$16 sps:$4 sm:$0xff]  }
 0x239   : > { %5277 = vmatpush1.bf16.msra.mxu1 %v7599_v26  ;;  %5251 = vmatprep.subr.bf16.mxu0 %v7604_v28  ;;  %v4925_v25 = vpop.f32.mrf.mxu0  ;;  %v4799_v26 = vadd.f32 %v8666_v40, %v4756_v16  ;;  %v4966_v28 = vpop.f32.mrf.mxu1  ;;  %v7667_v16 = vld [vmem:[%s8058_s15 + $0xe8c] ss:$16 sps:$4 sm:$0xff]  }
 0x23a   : > { %5278 = vmatprep.subr.bf16.mxu1 %v7607_v29  ;;  %5308 = vmatprep.mubr.bf16.mxu1 %v7847_v39  ;;  %v4801_v29 = vadd.f32 %v8674_v50, %v4758_v18  ;;  %v4883_v39 = vadd.f32 %v4882_v6, %v4840_v27  ;;  %v7658_v6 = vld [vmem:[%s8058_s15 + $0xdac] ss:$16 sps:$4 sm:$0xff]  }
 0x23b   : > { %v4842_v31 = vadd.f32 %v4841_v49, %v4799_v26  ;;  %v4927_v35 = vpop.f32.mrf.mxu0  ;;  %v7676_v26 = vld [vmem:[%s8058_s15 + $0xd4c] ss:$16 sps:$4 sm:$0xff]  }
 0x23c   : > { %5252 = vmatpush2.bf16.msra.mxu0 %v7602_v32  ;;  %v7638_v32 = vld [vmem:[%s8058_s15 + $0xb08] ss:$16 sps:$4 sm:$0xff]   ;;  %v4844_v40 = vadd.f32 %v4843_v2, %v4801_v29  ;;  %v7679_v27 = vld [vmem:[%s8058_s15 + $0xe4c] ss:$16 sps:$4 sm:$0xff]  }
 0x23d   : > { %5279 = vmatpush1.bf16.msra.mxu1 %v7605_v34  ;;  %5253 = vmatprep.subr.bf16.mxu0 %v7610_v36  ;;  %v7641_v34 = vld [vmem:[%s8058_s15 + $0xc08] ss:$16 sps:$4 sm:$0xff]   ;;  %v7646_v36 = vld [vmem:[%s8058_s15 + $0xdec] ss:$16 sps:$4 sm:$0xff]   ;;  %v4929_v50 = vpop.f32.mrf.mxu0 }
 0x23e   : > { %5280 = vmatprep.subr.bf16.mxu1 %v7613_v37  ;;  %v7649_v37 = vld [vmem:[%s8058_s15 + $0xeec] ss:$16 sps:$4 sm:$0xff]   ;;  %v4887_v54 = vadd.f32 %v4886_v23, %v4844_v40  ;;  %v7677_v29 = vld [vmem:[%s8058_s15 + $0xe48] ss:$16 sps:$4 sm:$0xff]  }
 0x23f   : > { %v7670_v23 = vld [vmem:[%s8058_s15 + $0xd6c] ss:$16 sps:$4 sm:$0xff]  }
 0x240   : > { %5254 = vmatpush2.bf16.msra.mxu0 %v7608_v43  ;;  %v4968_v43 = vpop.f32.mrf.mxu1  ;;  %v4930_v49 = vadd.f32 %v4929_v50, %v4887_v54  ;;  %v7694_v40 = vld [vmem:[%s8058_s15 + $0xfec] ss:$16 sps:$4 sm:$0xff]   ;;  %v7698_v50 = vld [vmem:[%s8058_s15 + $0xfc8] ss:$16 sps:$4 sm:$0xff]  }
 0x241   : > { %5281 = vmatpush1.bf16.msra.mxu1 %v7611_v44  ;;  %5255 = vmatprep.subr.bf16.mxu0 %v7616_v46  ;;  %v4885_v44 = vadd.f32 %v4884_v12, %v4842_v31  ;;  %v4926_v46 = vadd.f32 %v4925_v25, %v4883_v39  ;;  %v7673_v25 = vld [vmem:[%s8058_s15 + $0xe6c] ss:$16 sps:$4 sm:$0xff]   ;;  %v7689_v39 = vld [vmem:[%s8058_s15 + $0xe08] ss:$16 sps:$4 sm:$0xff]  }
 0x242   : > { %5282 = vmatprep.subr.bf16.mxu1 %v7619_v47  ;;  %v7644_v47 = vld [vmem:[%s8058_s15 + $0xde8] ss:$16 sps:$4 sm:$0xff]   ;;  %v4970_v59 = vpop.f32.mrf.mxu1  ;;  %v7685_v31 = vld [vmem:[%s8058_s15 + $0xe2c] ss:$16 sps:$4 sm:$0xff]  }
 0x243   : > { %v4969_v38 = vadd.f32 %v4968_v43, %v4926_v46  ;;  %v7692_v43 = vld [vmem:[%s8058_s15 + $0xfe8] ss:$16 sps:$4 sm:$0xff]   ;;  %v7700_v46 = vld [vmem:[%s8058_s15 + $0xfcc] ss:$16 sps:$4 sm:$0xff]  }
 0x244   : > { %5256 = vmatpush2.bf16.msra.mxu0 %v7614_v57  ;;  %v4967_v57 = vadd.f32 %v4966_v28, %v4924_v42  ;;  %v4972_v2 = vpop.f32.mrf.mxu1  ;;  %v7674_v28 = vld [vmem:[%s8058_s15 + $0xd48] ss:$16 sps:$4 sm:$0xff]   ;;  %v7697_v42 = vld [vmem:[%s8058_s15 + $0x10ec] ss:$16 sps:$4 sm:$0xff]  }
 0x245   : > { %5283 = vmatpush1.bf16.msra.mxu1 %v7617_v58  ;;  %5257 = vmatprep.subr.bf16.mxu0 %v7622_v60  ;;  %v4928_v58 = vadd.f32 %v4927_v35, %v4885_v44  ;;  %v377_v60 = vld [vmem:[#allocation2 + $0x30] sm:$0xff]  ;;  %v7688_v35 = vld [vmem:[%s8058_s15 + $0xd0c] ss:$16 sps:$4 sm:$0xff]   ;;  %v7695_v44 = vld [vmem:[%s8058_s15 + $0x10e8] ss:$16 sps:$4 sm:$0xff]  }
 0x246   : > { %5284 = vmatprep.subr.bf16.mxu1 %v7625_v33  ;;  %v7709_v54 = vld [vmem:[%s8058_s15 + $0x10ac] ss:$16 sps:$4 sm:$0xff]  }
 0x248   : > { %5258 = vmatpush2.bf16.msra.mxu0 %v7620_v3  ;;  %v378_v3 = vld [vmem:[#allocation2] sm:$0xff] }
 0x249   : > { %5285 = vmatpush1.bf16.msra.mxu1 %v7623_v4  ;;  %5259 = vmatprep.subr.bf16.mxu0 %v7628_v45  ;;  %v7661_v45 = vld [vmem:[%s8058_s15 + $0xeac] ss:$16 sps:$4 sm:$0xff]  }
 0x24a   : > { %5286 = vmatprep.subr.bf16.mxu1 %v7631_v55  ;;  %v4971_v55 = vadd.f32 %v4970_v59, %v4928_v58  ;;  %v7704_v58 = vld [vmem:[%s8058_s15 + $0xfa8] ss:$16 sps:$4 sm:$0xff]  }
 0x24b   : > { %v7707_v59 = vld [vmem:[%s8058_s15 + $0x10a8] ss:$16 sps:$4 sm:$0xff]  }
 0x24c   : > { %5260 = vmatpush2.bf16.msra.mxu0 %v7626_v9  ;;  %v4973_v9 = vadd.f32 %v4972_v2, %v4930_v49  ;;  %v7718_v49 = vld [vmem:[%s8058_s15 + $0xf6c] ss:$16 sps:$4 sm:$0xff]  }
 0x24d   : > { %5287 = vmatpush1.bf16.msra.mxu1 %v7629_v10  ;;  %5261 = vmatprep.subr.bf16.mxu0 %v7634_v8  ;;  %v7659_v8 = vld [vmem:[%s8058_s15 + $0xea8] ss:$16 sps:$4 sm:$0xff]   ;;  %v7736_v2 = vld [vmem:[%s8058_s15 + $0xf0c] ss:$16 sps:$4 sm:$0xff]  }
 0x24e   : > { %5288 = vmatprep.subr.bf16.mxu1 %v7637_v11  ;;  %v382_v11 = vld [vmem:[#allocation2 + $0x20] sm:$0xff] }
 0x250   : > { %5262 = vmatpush2.bf16.msra.mxu0 %v7632_v21  ;;  %v7662_v21 = vld [vmem:[%s8058_s15 + $0xd88] ss:$16 sps:$4 sm:$0xff]  }
 0x251   : > { %5289 = vmatpush1.bf16.msra.mxu1 %v7635_v22  ;;  %5263 = vmatprep.subr.bf16.mxu0 %v7640_v20  ;;  %v7665_v22 = vld [vmem:[%s8058_s15 + $0xe88] ss:$16 sps:$4 sm:$0xff]  }
 0x252   : > { %5290 = vmatprep.subr.bf16.mxu1 %v7643_v24  ;;  %v7668_v20 = vld [vmem:[%s8058_s15 + $0xd68] ss:$16 sps:$4 sm:$0xff]  }
 0x253   : > { %v7671_v24 = vld [vmem:[%s8058_s15 + $0xe68] ss:$16 sps:$4 sm:$0xff]  }
 0x254   : > { %5264 = vmatpush2.bf16.msra.mxu0 %v7638_v32  ;;  %v7680_v32 = vld [vmem:[%s8058_s15 + $0xd28] ss:$16 sps:$4 sm:$0xff]  }
 0x255   : > { %5291 = vmatpush1.bf16.msra.mxu1 %v7641_v34  ;;  %5319 = vmatprep.subr.bf16.mxu0 %v7649_v37  ;;  %v7683_v34 = vld [vmem:[%s8058_s15 + $0xe28] ss:$16 sps:$4 sm:$0xff]  }
 0x256   : > { %5292 = vmatprep.subr.bf16.mxu1 %v7646_v36  ;;  %v7691_v36 = vld [vmem:[%s8058_s15 + $0xe0c] ss:$16 sps:$4 sm:$0xff]   ;;  %v7686_v37 = vld [vmem:[%s8058_s15 + $0xd08] ss:$16 sps:$4 sm:$0xff]  }
 0x257   : > { %v5009_v33 = vpop.f32.mrf.mxu0  ;;  %5266 = vmatmul.mubr.bf16.vlgmr.msra.gmra.mxu0 %v7848_v41  ;;  %v7710_v41 = vld [vmem:[%s8058_s15 + $0xf88] ss:$16 sps:$4 sm:$0xff]  }
 0x258   : > { %v5010_v56 = vadd.f32 %v5009_v33, %v4967_v57  ;;  %5320 = vmatpush1.bf16.msra.mxu0 %v7647_v48  ;;  %5351 = vmatprep.mubr.bf16.mxu0 %v7849_v61  ;;  %v7850_v48 = vld [vmem:[%s8060_s16 + $0x30] ss:$84 sps:$4 sm:$0xff]  }
 0x259   : > { %5293 = vmatpush2.bf16.msra.mxu1 %v7644_v47  ;;  %v5011_v4 = vpop.f32.mrf.mxu0  ;;  %5321 = vmatprep.subr.bf16.mxu0 %v7655_v53  ;;  %v7703_v47 = vld [vmem:[%s8058_s15 + $0x10cc] ss:$16 sps:$4 sm:$0xff]   ;;  %v7731_v61 = vld [vmem:[%s8058_s15 + $0x1028] ss:$16 sps:$4 sm:$0xff]  }
 0x25a   : > { %5294 = vmatprep.subr.bf16.mxu1 %v7652_v51  ;;  %v5491_v62 = vadd.f32 %v5010_v56, %v377_v60  ;;  %v5012_v52 = vadd.f32 %v5011_v4, %v4969_v38  ;;  %v7701_v51 = vld [vmem:[%s8058_s15 + $0x10c8] ss:$16 sps:$4 sm:$0xff]   ;;  %v7706_v53 = vld [vmem:[%s8058_s15 + $0xfac] ss:$16 sps:$4 sm:$0xff]  }
 0x25b   : > { %v5013_v7 = vpop.f32.mrf.mxu0  ;;  %v7851_v57 = vld [vmem:[%s8060_s16 + $0x44] ss:$84 sps:$4 sm:$0xff]  }
 0x25c   : > { %5499 = vst [vmem:[#allocation2 + $0x30] sm:$0xff] %v5491_v62  ;;  %v5492_v10 = vadd.f32 %v5012_v52, %v378_v3  ;;  %v5014_v12 = vadd.f32 %v5013_v7, %v4971_v55  ;;  %5322 = vmatpush1.bf16.msra.mxu0 %v7653_v0  ;;  %v7712_v60 = vld [vmem:[%s8058_s15 + $0xf8c] ss:$16 sps:$4 sm:$0xff]   ;;  %v7713_v38 = vld [vmem:[%s8058_s15 + $0x1088] ss:$16 sps:$4 sm:$0xff]  }
 0x25d   : > { %5295 = vmatpush2.bf16.msra.mxu1 %v7650_v63  ;;  %v5015_v15 = vpop.f32.mrf.mxu0  ;;  %5323 = vmatprep.subr.bf16.mxu0 %v7661_v45  ;;  %v7715_v33 = vld [vmem:[%s8058_s15 + $0x108c] ss:$16 sps:$4 sm:$0xff]   ;;  %v7716_v63 = vld [vmem:[%s8058_s15 + $0xf68] ss:$16 sps:$4 sm:$0xff]  }
 0x25e   : > { %5296 = vmatprep.subr.bf16.mxu1 %v7658_v6  ;;  %5500 = vst [vmem:[#allocation2] sm:$0xff] %v5492_v10  ;;  %v5495_v17 = vadd.f32 %v5014_v12, %v381_v5  ;;  %v5016_v18 = vadd.f32 %v5015_v15, %v4973_v9  ;;  %v7721_v56 = vld [vmem:[%s8058_s15 + $0x106c] ss:$16 sps:$4 sm:$0xff]   ;;  %v7719_v0 = vld [vmem:[%s8058_s15 + $0x1068] ss:$16 sps:$4 sm:$0xff]  }
 0x25f   : > { %v7724_v3 = vld [vmem:[%s8058_s15 + $0xf4c] ss:$16 sps:$4 sm:$0xff]   ;;  %v7722_v6 = vld [vmem:[%s8058_s15 + $0xf48] ss:$16 sps:$4 sm:$0xff]  }
 0x260   : > { %5503 = vst [vmem:[#allocation2 + $0x8] sm:$0xff] %v5495_v17  ;;  %v5496_v19 = vadd.f32 %v5016_v18, %v382_v11  ;;  %5324 = vmatpush1.bf16.msra.mxu0 %v7659_v8  ;;  %v7727_v4 = vld [vmem:[%s8058_s15 + $0x104c] ss:$16 sps:$4 sm:$0xff]   ;;  %v7725_v45 = vld [vmem:[%s8058_s15 + $0x1048] ss:$16 sps:$4 sm:$0xff]  }
 0x261   : > { %5297 = vmatpush2.bf16.msra.mxu1 %v7656_v13  ;;  %5325 = vmatprep.subr.bf16.mxu0 %v7667_v16  ;;  %v7730_v55 = vld [vmem:[%s8058_s15 + $0xf2c] ss:$16 sps:$4 sm:$0xff]   ;;  %v7728_v52 = vld [vmem:[%s8058_s15 + $0xf28] ss:$16 sps:$4 sm:$0xff]  }
 0x262   : > { %5298 = vmatprep.subr.bf16.mxu1 %v7664_v14  ;;  %5504 = vst [vmem:[#allocation2 + $0x20] sm:$0xff] %v5496_v19  ;;  %v7733_v62 = vld [vmem:[%s8058_s15 + $0x102c] ss:$16 sps:$4 sm:$0xff]   ;;  %v7734_v7 = vld [vmem:[%s8058_s15 + $0xf08] ss:$16 sps:$4 sm:$0xff]  }
 0x263   : > { %v7739_v5 = vld [vmem:[%s8058_s15 + $0x100c] ss:$16 sps:$4 sm:$0xff]   ;;  %v7737_v9 = vld [vmem:[%s8058_s15 + $0x1008] ss:$16 sps:$4 sm:$0xff]  }
 0x264   : > { %5326 = vmatpush1.bf16.msra.mxu0 %v7665_v22  ;;  %v7742_v10 = vld [vmem:[%s8058_s15 + $0x11ec] ss:$16 sps:$4 sm:$0xff]   ;;  %v7740_v13 = vld [vmem:[%s8058_s15 + $0x11e8] ss:$16 sps:$4 sm:$0xff]  }
 0x265   : > { %5299 = vmatpush2.bf16.msra.mxu1 %v7662_v21  ;;  %5327 = vmatprep.subr.bf16.mxu0 %v7673_v25  ;;  %v7745_v12 = vld [vmem:[%s8058_s15 + $0x12ec] ss:$16 sps:$4 sm:$0xff]   ;;  %v7743_v8 = vld [vmem:[%s8058_s15 + $0x12e8] ss:$16 sps:$4 sm:$0xff]  }
 0x266   : > { %5300 = vmatprep.subr.bf16.mxu1 %v7670_v23  ;;  %v7748_v11 = vld [vmem:[%s8058_s15 + $0x11cc] ss:$16 sps:$4 sm:$0xff]   ;;  %v7746_v16 = vld [vmem:[%s8058_s15 + $0x11c8] ss:$16 sps:$4 sm:$0xff]  }
 0x267   : > { %v7751_v15 = vld [vmem:[%s8058_s15 + $0x12cc] ss:$16 sps:$4 sm:$0xff]   ;;  %v7749_v17 = vld [vmem:[%s8058_s15 + $0x12c8] ss:$16 sps:$4 sm:$0xff]  }
 0x268   : > { %5328 = vmatpush1.bf16.msra.mxu0 %v7671_v24  ;;  %v7852_v14 = vld [vmem:[%s8060_s16 + $0x38] ss:$84 sps:$4 sm:$0xff]  }
 0x269   : > { %5301 = vmatpush2.bf16.msra.mxu1 %v7668_v20  ;;  %5329 = vmatprep.subr.bf16.mxu0 %v7679_v27  ;;  %v7754_v18 = vld [vmem:[%s8058_s15 + $0x11ac] ss:$16 sps:$4 sm:$0xff]   ;;  %v7752_v22 = vld [vmem:[%s8058_s15 + $0x11a8] ss:$16 sps:$4 sm:$0xff]  }
 0x26a   : > { %5302 = vmatprep.subr.bf16.mxu1 %v7676_v26  ;;  %v7757_v19 = vld [vmem:[%s8058_s15 + $0x12ac] ss:$16 sps:$4 sm:$0xff]   ;;  %v7755_v23 = vld [vmem:[%s8058_s15 + $0x12a8] ss:$16 sps:$4 sm:$0xff]  }
 0x26b   : > { %v7853_v21 = vld [vmem:[%s8060_s16 + $0x4c] ss:$84 sps:$4 sm:$0xff]  }
 0x26c   : > { %5330 = vmatpush1.bf16.msra.mxu0 %v7677_v29  ;;  %v7760_v25 = vld [vmem:[%s8058_s15 + $0x118c] ss:$16 sps:$4 sm:$0xff]   ;;  %v7758_v24 = vld [vmem:[%s8058_s15 + $0x1188] ss:$16 sps:$4 sm:$0xff]  }
 0x26d   : > { %5303 = vmatpush2.bf16.msra.mxu1 %v7674_v28  ;;  %5331 = vmatprep.subr.bf16.mxu0 %v7685_v31  ;;  %v7763_v20 = vld [vmem:[%s8058_s15 + $0x128c] ss:$16 sps:$4 sm:$0xff]   ;;  %v7761_v26 = vld [vmem:[%s8058_s15 + $0x1288] ss:$16 sps:$4 sm:$0xff]  }
 0x26e   : > { %5304 = vmatprep.subr.bf16.mxu1 %v7682_v30  ;;  %v7766_v27 = vld [vmem:[%s8058_s15 + $0x116c] ss:$16 sps:$4 sm:$0xff]   ;;  %v7764_v29 = vld [vmem:[%s8058_s15 + $0x1168] ss:$16 sps:$4 sm:$0xff]  }
 0x26f   : > { %v7769_v28 = vld [vmem:[%s8058_s15 + $0x126c] ss:$16 sps:$4 sm:$0xff]   ;;  %v7767_v30 = vld [vmem:[%s8058_s15 + $0x1268] ss:$16 sps:$4 sm:$0xff]  }
 0x270   : > { %5332 = vmatpush1.bf16.msra.mxu0 %v7683_v34  ;;  %v7772_v31 = vld [vmem:[%s8058_s15 + $0x114c] ss:$16 sps:$4 sm:$0xff]   ;;  %v7770_v34 = vld [vmem:[%s8058_s15 + $0x1148] ss:$16 sps:$4 sm:$0xff]  }
 0x271   : > { %5305 = vmatpush2.bf16.msra.mxu1 %v7680_v32  ;;  %5333 = vmatprep.subr.bf16.mxu0 %v7691_v36  ;;  %v7775_v32 = vld [vmem:[%s8058_s15 + $0x124c] ss:$16 sps:$4 sm:$0xff]  }
 0x272   : > { %5306 = vmatprep.subr.bf16.mxu1 %v7688_v35  ;;  %v7773_v35 = vld [vmem:[%s8058_s15 + $0x1248] ss:$16 sps:$4 sm:$0xff]   ;;  %v7778_v36 = vld [vmem:[%s8058_s15 + $0x112c] ss:$16 sps:$4 sm:$0xff]  }
 0x274   : > { %5334 = vmatpush1.bf16.msra.mxu0 %v7689_v39  ;;  %v7776_v39 = vld [vmem:[%s8058_s15 + $0x1128] ss:$16 sps:$4 sm:$0xff]  }
 0x275   : > { %5307 = vmatpush2.bf16.msra.mxu1 %v7686_v37  ;;  %5335 = vmatprep.subr.bf16.mxu0 %v7694_v40  ;;  %v7781_v37 = vld [vmem:[%s8058_s15 + $0x122c] ss:$16 sps:$4 sm:$0xff]   ;;  %v7779_v40 = vld [vmem:[%s8058_s15 + $0x1228] ss:$16 sps:$4 sm:$0xff]  }
 0x276   : > { %5362 = vmatprep.subr.bf16.mxu1 %v7697_v42  ;;  %v7784_v42 = vld [vmem:[%s8058_s15 + $0x110c] ss:$16 sps:$4 sm:$0xff]  }
 0x278   : > { %5309 = vmatmul.mubr.bf16.vlgmr.msra.gmra.mxu1 %v7850_v48  ;;  %5336 = vmatpush2.bf16.msra.mxu0 %v7692_v43  ;;  %v7787_v43 = vld [vmem:[%s8058_s15 + $0x120c] ss:$16 sps:$4 sm:$0xff]  }
 0x279   : > { %5363 = vmatpush1.bf16.msra.mxu1 %v7695_v44  ;;  %5337 = vmatprep.subr.bf16.mxu0 %v7700_v46  ;;  %v7782_v44 = vld [vmem:[%s8058_s15 + $0x1108] ss:$16 sps:$4 sm:$0xff]   ;;  %v7793_v48 = vld [vmem:[%s8058_s15 + $0x14ec] ss:$16 sps:$4 sm:$0xff]  }
 0x27a   : > { %5364 = vmatprep.subr.bf16.mxu1 %v7703_v47  ;;  %5394 = vmatprep.mubr.bf16.mxu1 %v7851_v57  ;;  %v7785_v46 = vld [vmem:[%s8058_s15 + $0x1208] ss:$16 sps:$4 sm:$0xff]   ;;  %v7790_v47 = vld [vmem:[%s8058_s15 + $0x13ec] ss:$16 sps:$4 sm:$0xff]  }
 0x27b   : > { %v7854_v57 = vld [vmem:[%s8060_s16 + $0x40] ss:$84 sps:$4 sm:$0xff]  }
 0x27c   : > { %5338 = vmatpush2.bf16.msra.mxu0 %v7698_v50  ;;  %v7788_v50 = vld [vmem:[%s8058_s15 + $0x13e8] ss:$16 sps:$4 sm:$0xff]  }
 0x27d   : > { %5365 = vmatpush1.bf16.msra.mxu1 %v7701_v51  ;;  %5339 = vmatprep.subr.bf16.mxu0 %v7706_v53  ;;  %v7791_v51 = vld [vmem:[%s8058_s15 + $0x14e8] ss:$16 sps:$4 sm:$0xff]   ;;  %v7796_v53 = vld [vmem:[%s8058_s15 + $0x13cc] ss:$16 sps:$4 sm:$0xff]  }
 0x27e   : > { %5366 = vmatprep.subr.bf16.mxu1 %v7709_v54  ;;  %v7799_v54 = vld [vmem:[%s8058_s15 + $0x14cc] ss:$16 sps:$4 sm:$0xff]  }
 0x280   : > { %5340 = vmatpush2.bf16.msra.mxu0 %v7704_v58  ;;  %v7794_v58 = vld [vmem:[%s8058_s15 + $0x13c8] ss:$16 sps:$4 sm:$0xff]  }
 0x281   : > { %5367 = vmatpush1.bf16.msra.mxu1 %v7707_v59  ;;  %5341 = vmatprep.subr.bf16.mxu0 %v7712_v60  ;;  %v7797_v59 = vld [vmem:[%s8058_s15 + $0x14c8] ss:$16 sps:$4 sm:$0xff]   ;;  %v7802_v60 = vld [vmem:[%s8058_s15 + $0x13ac] ss:$16 sps:$4 sm:$0xff]  }
 0x282   : > { %5368 = vmatprep.subr.bf16.mxu1 %v7715_v33  ;;  %v7805_v33 = vld [vmem:[%s8058_s15 + $0x14ac] ss:$16 sps:$4 sm:$0xff]  }
 0x284   : > { %5342 = vmatpush2.bf16.msra.mxu0 %v7710_v41  ;;  %v7800_v41 = vld [vmem:[%s8058_s15 + $0x13a8] ss:$16 sps:$4 sm:$0xff]  }
 0x285   : > { %5369 = vmatpush1.bf16.msra.mxu1 %v7713_v38  ;;  %5343 = vmatprep.subr.bf16.mxu0 %v7718_v49  ;;  %v7803_v38 = vld [vmem:[%s8058_s15 + $0x14a8] ss:$16 sps:$4 sm:$0xff]   ;;  %v7808_v49 = vld [vmem:[%s8058_s15 + $0x138c] ss:$16 sps:$4 sm:$0xff]  }
 0x286   : > { %5370 = vmatprep.subr.bf16.mxu1 %v7721_v56  ;;  %v7811_v56 = vld [vmem:[%s8058_s15 + $0x148c] ss:$16 sps:$4 sm:$0xff]  }
 0x288   : > { %5344 = vmatpush2.bf16.msra.mxu0 %v7716_v63  ;;  %v7806_v63 = vld [vmem:[%s8058_s15 + $0x1388] ss:$16 sps:$4 sm:$0xff]  }
 0x289   : > { %5371 = vmatpush1.bf16.msra.mxu1 %v7719_v0  ;;  %5345 = vmatprep.subr.bf16.mxu0 %v7724_v3  ;;  %v7809_v0 = vld [vmem:[%s8058_s15 + $0x1488] ss:$16 sps:$4 sm:$0xff]   ;;  %v7817_v3 = vld [vmem:[%s8058_s15 + $0x146c] ss:$16 sps:$4 sm:$0xff]  }
 0x28a   : > { %5372 = vmatprep.subr.bf16.mxu1 %v7727_v4  ;;  %v7812_v4 = vld [vmem:[%s8058_s15 + $0x1368] ss:$16 sps:$4 sm:$0xff]  }
 0x28c   : > { %5346 = vmatpush2.bf16.msra.mxu0 %v7722_v6  ;;  %v7815_v6 = vld [vmem:[%s8058_s15 + $0x1468] ss:$16 sps:$4 sm:$0xff]  }
 0x28d   : > { %5373 = vmatpush1.bf16.msra.mxu1 %v7725_v45  ;;  %5347 = vmatprep.subr.bf16.mxu0 %v7730_v55  ;;  %v7820_v45 = vld [vmem:[%s8058_s15 + $0x134c] ss:$16 sps:$4 sm:$0xff]  }
 0x28e   : > { %5374 = vmatprep.subr.bf16.mxu1 %v7733_v62  ;;  %v7823_v55 = vld [vmem:[%s8058_s15 + $0x144c] ss:$16 sps:$4 sm:$0xff]   ;;  %v7818_v62 = vld [vmem:[%s8058_s15 + $0x1348] ss:$16 sps:$4 sm:$0xff]  }
 0x290   : > { %5348 = vmatpush2.bf16.msra.mxu0 %v7728_v52  ;;  %v7821_v52 = vld [vmem:[%s8058_s15 + $0x1448] ss:$16 sps:$4 sm:$0xff]  }
 0x291   : > { %5375 = vmatpush1.bf16.msra.mxu1 %v7731_v61  ;;  %5349 = vmatprep.subr.bf16.mxu0 %v7736_v2  ;;  %v7826_v61 = vld [vmem:[%s8058_s15 + $0x132c] ss:$16 sps:$4 sm:$0xff]  }
 0x292   : > { %5376 = vmatprep.subr.bf16.mxu1 %v7739_v5  ;;  %v7829_v2 = vld [vmem:[%s8058_s15 + $0x142c] ss:$16 sps:$4 sm:$0xff]   ;;  %v7824_v5 = vld [vmem:[%s8058_s15 + $0x1328] ss:$16 sps:$4 sm:$0xff]  }
 0x294   : > { %5350 = vmatpush2.bf16.msra.mxu0 %v7734_v7  ;;  %v7827_v7 = vld [vmem:[%s8058_s15 + $0x1428] ss:$16 sps:$4 sm:$0xff]  }
 0x295   : > { %5377 = vmatpush1.bf16.msra.mxu1 %v7737_v9  ;;  %5405 = vmatprep.subr.bf16.mxu0 %v7745_v12  ;;  %v7832_v9 = vld [vmem:[%s8058_s15 + $0x130c] ss:$16 sps:$4 sm:$0xff]   ;;  %v7830_v12 = vld [vmem:[%s8058_s15 + $0x1308] ss:$16 sps:$4 sm:$0xff]  }
 0x296   : > { %5378 = vmatprep.subr.bf16.mxu1 %v7742_v10  ;;  %v7835_v10 = vld [vmem:[%s8058_s15 + $0x140c] ss:$16 sps:$4 sm:$0xff]  }
 0x297   : > { %5352 = vmatmul.mubr.bf16.vlgmr.msra.gmra.mxu0 %v7852_v14 }
 0x298   : > { %5406 = vmatpush1.bf16.msra.mxu0 %v7743_v8  ;;  %5437 = vmatprep.mubr.bf16.mxu0 %v7853_v21  ;;  %v7855_v8 = vld [vmem:[%s8060_s16 + $0x48] ss:$84 sps:$4 sm:$0xff]  }
 0x299   : > { %5379 = vmatpush2.bf16.msra.mxu1 %v7740_v13  ;;  %5407 = vmatprep.subr.bf16.mxu0 %v7751_v15  ;;  %v7833_v13 = vld [vmem:[%s8058_s15 + $0x1408] ss:$16 sps:$4 sm:$0xff]   ;;  %v5052_v15 = vpop.f32.mrf.mxu1 }
 0x29a   : > { %5380 = vmatprep.subr.bf16.mxu1 %v7748_v11  ;;  %v7856_v11 = vld [vmem:[%s8060_s16 + $0x50] ss:$84 sps:$4 sm:$0xff]  }
 0x29b   : > { %v5054_v14 = vpop.f32.mrf.mxu1 }
 0x29c   : > { %5408 = vmatpush1.bf16.msra.mxu0 %v7749_v17 }
 0x29d   : > { %5381 = vmatpush2.bf16.msra.mxu1 %v7746_v16  ;;  %5409 = vmatprep.subr.bf16.mxu0 %v7757_v19  ;;  %v5056_v16 = vpop.f32.mrf.mxu1 }
 0x29e   : > { %5382 = vmatprep.subr.bf16.mxu1 %v7754_v18  ;;  %v5095_v18 = vpop.f32.mrf.mxu0 }
 0x29f   : > { %v5058_v17 = vpop.f32.mrf.mxu1 }
 0x2a0   : > { %5410 = vmatpush1.bf16.msra.mxu0 %v7755_v23  ;;  %v5097_v21 = vpop.f32.mrf.mxu0 }
 0x2a1   : > { %5383 = vmatpush2.bf16.msra.mxu1 %v7752_v22  ;;  %5411 = vmatprep.subr.bf16.mxu0 %v7763_v20 }
 0x2a2   : > { %5384 = vmatprep.subr.bf16.mxu1 %v7760_v25  ;;  %v5099_v23 = vpop.f32.mrf.mxu0 }
 0x2a4   : > { %5412 = vmatpush1.bf16.msra.mxu0 %v7761_v26  ;;  %v5101_v20 = vpop.f32.mrf.mxu0 }
 0x2a5   : > { %5385 = vmatpush2.bf16.msra.mxu1 %v7758_v24  ;;  %5413 = vmatprep.subr.bf16.mxu0 %v7769_v28 }
 0x2a6   : > { %5386 = vmatprep.subr.bf16.mxu1 %v7766_v27 }
 0x2a8   : > { %5414 = vmatpush1.bf16.msra.mxu0 %v7767_v30 }
 0x2a9   : > { %5387 = vmatpush2.bf16.msra.mxu1 %v7764_v29  ;;  %5415 = vmatprep.subr.bf16.mxu0 %v7775_v32 }
 0x2aa   : > { %5388 = vmatprep.subr.bf16.mxu1 %v7772_v31 }
 0x2ac   : > { %5416 = vmatpush1.bf16.msra.mxu0 %v7773_v35 }
 0x2ad   : > { %5389 = vmatpush2.bf16.msra.mxu1 %v7770_v34  ;;  %5417 = vmatprep.subr.bf16.mxu0 %v7781_v37 }
 0x2ae   : > { %5390 = vmatprep.subr.bf16.mxu1 %v7778_v36 }
 0x2b0   : > { %5418 = vmatpush1.bf16.msra.mxu0 %v7779_v40 }
 0x2b1   : > { %5391 = vmatpush2.bf16.msra.mxu1 %v7776_v39  ;;  %5419 = vmatprep.subr.bf16.mxu0 %v7787_v43 }
 0x2b2   : > { %5392 = vmatprep.subr.bf16.mxu1 %v7784_v42 }
 0x2b4   : > { %5420 = vmatpush1.bf16.msra.mxu0 %v7785_v46  ;;  %v5096_v46 = vadd.f32 %v5095_v18, %v5052_v15  ;;  %v379_v18 = vld [vmem:[#allocation2 + $0x18] sm:$0xff] }
 0x2b5   : > { %5393 = vmatpush2.bf16.msra.mxu1 %v7782_v44  ;;  %5421 = vmatprep.subr.bf16.mxu0 %v7790_v47 }
 0x2b6   : > { %5448 = vmatprep.subr.bf16.mxu1 %v7793_v48 }
 0x2b8   : > { %5395 = vmatmul.mubr.bf16.vlgmr.msra.gmra.mxu1 %v7854_v57  ;;  %5422 = vmatpush2.bf16.msra.mxu0 %v7788_v50  ;;  %v5138_v19 = vpop.f32.mrf.mxu1  ;;  %v5098_v50 = vadd.f32 %v5097_v21, %v5054_v14 }
 0x2b9   : > { %5449 = vmatpush1.bf16.msra.mxu1 %v7791_v51  ;;  %5423 = vmatprep.subr.bf16.mxu0 %v7796_v53  ;;  %v5139_v51 = vadd.f32 %v5138_v19, %v5096_v46  ;;  %v5100_v53 = vadd.f32 %v5099_v23, %v5056_v16 }
 0x2ba   : > { %5450 = vmatprep.subr.bf16.mxu1 %v7799_v54  ;;  %5480 = vmatprep.mubr.bf16.mxu1 %v7929_v1  ;;  %v7814_v1 = vld [vmem:[%s8058_s15 + $0x136c] ss:$16 sps:$4 sm:$0xff]   ;;  %v5140_v22 = vpop.f32.mrf.mxu1 }
 0x2bb   : > { %v5141_v54 = vadd.f32 %v5140_v22, %v5098_v50 }
 0x2bc   : > { %5424 = vmatpush2.bf16.msra.mxu0 %v7794_v58  ;;  %v5142_v25 = vpop.f32.mrf.mxu1 }
 0x2bd   : > { %5451 = vmatpush1.bf16.msra.mxu1 %v7797_v59  ;;  %5425 = vmatprep.subr.bf16.mxu0 %v7802_v60  ;;  %v5102_v60 = vadd.f32 %v5101_v20, %v5058_v17 }
 0x2be   : > { %5452 = vmatprep.subr.bf16.mxu1 %v7805_v33  ;;  %v5144_v24 = vpop.f32.mrf.mxu1  ;;  %v5143_v33 = vadd.f32 %v5142_v25, %v5100_v53 }
 0x2c0   : > { %5426 = vmatpush2.bf16.msra.mxu0 %v7800_v41 }
 0x2c1   : > { %5453 = vmatpush1.bf16.msra.mxu1 %v7803_v38  ;;  %5427 = vmatprep.subr.bf16.mxu0 %v7808_v49  ;;  %v5145_v49 = vadd.f32 %v5144_v24, %v5102_v60  ;;  %v380_v24 = vld [vmem:[#allocation2 + $0x10] sm:$0xff] }
 0x2c2   : > { %5454 = vmatprep.subr.bf16.mxu1 %v7811_v56 }
 0x2c4   : > { %5428 = vmatpush2.bf16.msra.mxu0 %v7806_v63 }
 0x2c5   : > { %5455 = vmatpush1.bf16.msra.mxu1 %v7809_v0  ;;  %5429 = vmatprep.subr.bf16.mxu0 %v7814_v1 }
 0x2c6   : > { %5456 = vmatprep.subr.bf16.mxu1 %v7817_v3 }
 0x2c8   : > { %5430 = vmatpush2.bf16.msra.mxu0 %v7812_v4 }
 0x2c9   : > { %5457 = vmatpush1.bf16.msra.mxu1 %v7815_v6  ;;  %5431 = vmatprep.subr.bf16.mxu0 %v7820_v45 }
 0x2ca   : > { %5458 = vmatprep.subr.bf16.mxu1 %v7823_v55 }
 0x2cc   : > { %5432 = vmatpush2.bf16.msra.mxu0 %v7818_v62 }
 0x2cd   : > { %5459 = vmatpush1.bf16.msra.mxu1 %v7821_v52  ;;  %5433 = vmatprep.subr.bf16.mxu0 %v7826_v61 }
 0x2ce   : > { %5460 = vmatprep.subr.bf16.mxu1 %v7829_v2 }
 0x2d0   : > { %5434 = vmatpush2.bf16.msra.mxu0 %v7824_v5 }
 0x2d1   : > { %5461 = vmatpush1.bf16.msra.mxu1 %v7827_v7  ;;  %5435 = vmatprep.subr.bf16.mxu0 %v7832_v9 }
 0x2d2   : > { %5462 = vmatprep.subr.bf16.mxu1 %v7835_v10 }
 0x2d4   : > { %5436 = vmatpush2.bf16.msra.mxu0 %v7830_v12 }
 0x2d5   : > { %5463 = vmatpush1.bf16.msra.mxu1 %v7833_v13 }
 0x2d7   : > { %5438 = vmatmul.mubr.bf16.vlgmr.msra.gmra.mxu0 %v7855_v8  ;;  %v5181_v26 = vpop.f32.mrf.mxu0 }
 0x2d8   : > { %5481 = vmatmul.mubr.bf16.vlgmr.msra.gmra.mxu1 %v7856_v11  ;;  %v5182_v57 = vadd.f32 %v5181_v26, %v5139_v51 }
 0x2d9   : > { %v5183_v28 = vpop.f32.mrf.mxu0 }
 0x2da   : > { %v5184_v41 = vadd.f32 %v5183_v28, %v5141_v54 }
 0x2db   : > { %v5185_v30 = vpop.f32.mrf.mxu0 }
 0x2dc   : > { %v5186_v56 = vadd.f32 %v5185_v30, %v5143_v33 }
 0x2dd   : > { %v5187_v32 = vpop.f32.mrf.mxu0 }
 0x2de   : > { %v5188_v4 = vadd.f32 %v5187_v32, %v5145_v49  ;;  %v383_v32 = vld [vmem:[#allocation2 + $0x28] sm:$0xff] }
 0x2f8   : > { %v5224_v27 = vpop.f32.mrf.mxu1 }
 0x2f9   : > { %v5225_v38 = vadd.f32 %v5224_v27, %v5182_v57 }
 0x2fa   : > { %v5226_v29 = vpop.f32.mrf.mxu1 }
 0x2fb   : > { %v5227_v63 = vadd.f32 %v5226_v29, %v5184_v41 }
 0x2fc   : > { %v5228_v31 = vpop.f32.mrf.mxu1 }
 0x2fd   : > { %v5229_v6 = vadd.f32 %v5228_v31, %v5186_v56 }
 0x2fe   : > { %v5230_v34 = vpop.f32.mrf.mxu1 }
 0x2ff   : > { %v5231_v62 = vadd.f32 %v5230_v34, %v5188_v4 }
 0x317   : > { %v5267_v35 = vpop.f32.mrf.mxu0 }
 0x318   : > { %v5268_v0 = vadd.f32 %v5267_v35, %v5225_v38 }
 0x319   : > { %v5269_v37 = vpop.f32.mrf.mxu0 }
 0x31a   : > { %v5270_v45 = vadd.f32 %v5269_v37, %v5227_v63 }
 0x31b   : > { %v5271_v40 = vpop.f32.mrf.mxu0 }
 0x31c   : > { %v5272_v52 = vadd.f32 %v5271_v40, %v5229_v6 }
 0x31d   : > { %v5273_v43 = vpop.f32.mrf.mxu0 }
 0x31e   : > { %v5274_v9 = vadd.f32 %v5273_v43, %v5231_v62 }
 0x338   : > { %v5310_v36 = vpop.f32.mrf.mxu1 }
 0x339   : > { %v5311_v55 = vadd.f32 %v5310_v36, %v5268_v0 }
 0x33a   : > { %v5312_v39 = vpop.f32.mrf.mxu1 }
 0x33b   : > { %v5313_v61 = vadd.f32 %v5312_v39, %v5270_v45  ;;  %v384_v39 = vld [vmem:[#allocation2 + $0x38] sm:$0xff] }
 0x33c   : > { %v5314_v42 = vpop.f32.mrf.mxu1 }
 0x33d   : > { %v5315_v10 = vadd.f32 %v5314_v42, %v5272_v52 }
 0x33e   : > { %v5316_v44 = vpop.f32.mrf.mxu1 }
 0x33f   : > { %v5317_v15 = vadd.f32 %v5316_v44, %v5274_v9 }
 0x357   : > { %v5353_v47 = vpop.f32.mrf.mxu0 }
 0x358   : > { %v5354_v2 = vadd.f32 %v5353_v47, %v5311_v55 }
 0x359   : > { %v5355_v58 = vpop.f32.mrf.mxu0 }
 0x35a   : > { %v5356_v12 = vadd.f32 %v5355_v58, %v5313_v61 }
 0x35b   : > { %v5357_v1 = vpop.f32.mrf.mxu0 }
 0x35c   : > { %v5358_v14 = vadd.f32 %v5357_v1, %v5315_v10 }
 0x35d   : > { %v5359_v5 = vpop.f32.mrf.mxu0 }
 0x35e   : > { %v5360_v22 = vadd.f32 %v5359_v5, %v5317_v15 }
 0x378   : > { %v5396_v48 = vpop.f32.mrf.mxu1 }
 0x379   : > { %v5397_v13 = vadd.f32 %v5396_v48, %v5354_v2 }
 0x37a   : > { %v5398_v59 = vpop.f32.mrf.mxu1 }
 0x37b   : > { %v5399_v16 = vadd.f32 %v5398_v59, %v5356_v12 }
 0x37c   : > { %v5400_v3 = vpop.f32.mrf.mxu1 }
 0x37d   : > { %v5401_v23 = vadd.f32 %v5400_v3, %v5358_v14 }
 0x37e   : > { %v5402_v7 = vpop.f32.mrf.mxu1 }
 0x37f   : > { %v5403_v28 = vadd.f32 %v5402_v7, %v5360_v22 }
 0x397   : > { %v5439_v8 = vpop.f32.mrf.mxu0 }
 0x398   : > { %v5482_v11 = vpop.f32.mrf.mxu1  ;;  %v5440_v17 = vadd.f32 %v5439_v8, %v5397_v13 }
 0x399   : > { %v5441_v19 = vpop.f32.mrf.mxu0 }
 0x39a   : > { %v5484_v21 = vpop.f32.mrf.mxu1  ;;  %v5483_v25 = vadd.f32 %v5482_v11, %v5440_v17  ;;  %v5442_v20 = vadd.f32 %v5441_v19, %v5399_v16 }
 0x39b   : > { %v5443_v26 = vpop.f32.mrf.mxu0 }
 0x39c   : > { %v5486_v27 = vpop.f32.mrf.mxu1  ;;  %v5493_v29 = vadd.f32 %v5483_v25, %v379_v18  ;;  %v5485_v30 = vadd.f32 %v5484_v21, %v5442_v20  ;;  %v5444_v31 = vadd.f32 %v5443_v26, %v5401_v23 }
 0x39d   : > { %v5445_v34 = vpop.f32.mrf.mxu0 }
 0x39e   : > { %5501 = vst [vmem:[#allocation2 + $0x18] sm:$0xff] %v5493_v29  ;;  %v5494_v35 = vadd.f32 %v5485_v30, %v380_v24  ;;  %v5487_v36 = vadd.f32 %v5486_v27, %v5444_v31  ;;  %v5446_v37 = vadd.f32 %v5445_v34, %v5403_v28  ;;  %v5488_v40 = vpop.f32.mrf.mxu1 }
 0x3a0   : > { %5502 = vst [vmem:[#allocation2 + $0x10] sm:$0xff] %v5494_v35  ;;  %v5497_v42 = vadd.f32 %v5487_v36, %v383_v32  ;;  %v5489_v43 = vadd.f32 %v5488_v40, %v5446_v37  ;;  %5510 = sbr.rel (%p6670_p11) target bundleno = 1173 (0x495), region = 74 }
 0x3a2   : > { %5505 = vst [vmem:[#allocation2 + $0x28] sm:$0xff] %v5497_v42  ;;  %v5498_v44 = vadd.f32 %v5489_v43, %v384_v39 }
 0x3a4   : > { %5506 = vst [vmem:[#allocation2 + $0x38] sm:$0xff] %v5498_v44 }
 0x3a5   : > { %v7857_v46 = vld [vmem:[%s8978_s3 + $0x78] sm:$0xff]   ;;  %v7861_v51 = vld [vmem:[%s8978_s3 + $0x70] sm:$0xff]   ;;  %v7865_v58 = vld [vmem:[%s8978_s3 + $0x68] sm:$0xff]  }
 0x3a6   : > { %v7858_v47 = vld [vmem:[%s8978_s3 + $0xf8] sm:$0xff]   ;;  %6710 = vmatprep.subr.bf16.mxu0 %v7857_v46  ;;  %v7862_v53 = vld [vmem:[%s8978_s3 + $0xf0] sm:$0xff]   ;;  %v7866_v59 = vld [vmem:[%s8978_s3 + $0xe8] sm:$0xff]  }
 0x3a7   : > { %v7859_v48 = vld [vmem:[%s8978_s3 + $0x38] sm:$0xff]   ;;  %6732 = vmatprep.subr.bf16.mxu1 %v7858_v47  ;;  %v7863_v54 = vld [vmem:[%s8978_s3 + $0x30] sm:$0xff]   ;;  %v7867_v60 = vld [vmem:[%s8978_s3 + $0x28] sm:$0xff]  }
 0x3a8   : > { %v7860_v50 = vld [vmem:[%s8978_s3 + $0xb8] sm:$0xff]   ;;  %6711 = vmatpush3.bf16.msra.mxu0 %v7859_v48  ;;  %v7864_v57 = vld [vmem:[%s8978_s3 + $0xb0] sm:$0xff]   ;;  %v7868_v33 = vld [vmem:[%s8978_s3 + $0xa8] sm:$0xff]  }
 0x3a9   : > { %6733 = vmatpush3.bf16.msra.mxu1 %v7860_v50  ;;  %6712 = vmatprep.subr.bf16.mxu0 %v7861_v51  ;;  %v7869_v41 = vld [vmem:[%s8978_s3 + $0x60] sm:$0xff]   ;;  %v7873_v63 = vld [vmem:[%s8978_s3 + $0x58] sm:$0xff]   ;;  %v7877_v4 = vld [vmem:[%s8978_s3 + $0x50] sm:$0xff]  }
 0x3aa   : > { %6734 = vmatprep.subr.bf16.mxu1 %v7862_v53  ;;  %v7870_v38 = vld [vmem:[%s8978_s3 + $0xe0] sm:$0xff]   ;;  %v7874_v0 = vld [vmem:[%s8978_s3 + $0xd8] sm:$0xff]   ;;  %v7878_v6 = vld [vmem:[%s8978_s3 + $0xd0] sm:$0xff]  }
 0x3ab   : > { %v7871_v49 = vld [vmem:[%s8978_s3 + $0x20] sm:$0xff]   ;;  %v7875_v1 = vld [vmem:[%s8978_s3 + $0x18] sm:$0xff]   ;;  %v7879_v45 = vld [vmem:[%s8978_s3 + $0x10] sm:$0xff]  }
 0x3ac   : > { %6713 = vmatpush3.bf16.msra.mxu0 %v7863_v54  ;;  %v7872_v56 = vld [vmem:[%s8978_s3 + $0xa0] sm:$0xff]   ;;  %v7876_v3 = vld [vmem:[%s8978_s3 + $0x98] sm:$0xff]   ;;  %v7880_v55 = vld [vmem:[%s8978_s3 + $0x90] sm:$0xff]  }
 0x3ad   : > { %6735 = vmatpush3.bf16.msra.mxu1 %v7864_v57  ;;  %6714 = vmatprep.subr.bf16.mxu0 %v7865_v58  ;;  %v7881_v62 = vld [vmem:[%s8978_s3 + $0x48] sm:$0xff]   ;;  %v7885_v5 = vld [vmem:[%s8978_s3 + $0x40] sm:$0xff]   ;;  %v5514_v8 = vld [vmem:[#allocation2 + $0x10] sm:$0xff] }
 0x3ae   : > { %6736 = vmatprep.subr.bf16.mxu1 %v7866_v59  ;;  %v7882_v52 = vld [vmem:[%s8978_s3 + $0xc8] sm:$0xff]   ;;  %v7886_v7 = vld [vmem:[%s8978_s3 + $0xc0] sm:$0xff]   ;;  %v5518_v14 = vld [vmem:[#allocation2 + $0x38] sm:$0xff]  ;;  %v5522_v16 = vmax.f32 %v5514_v8, 0.0 }
 0x3af   : > { %v7883_v61 = vld [vmem:[%s8978_s3 + $0x8] sm:$0xff]   ;;  %v7887_v9 = vld [vmem:[%s8978_s3] sm:$0xff]   ;;  %v5511_v17 = vld [vmem:[#allocation2 + $0x30] sm:$0xff]  ;;  %v5526_v19 = vmax.f32 %v5518_v14, 0.0 }
 0x3b0   : > { %6715 = vmatpush3.bf16.msra.mxu0 %v7867_v60  ;;  %v7884_v2 = vld [vmem:[%s8978_s3 + $0x88] sm:$0xff]   ;;  %v7888_v10 = vld [vmem:[%s8978_s3 + $0x80] sm:$0xff]   ;;  %v5519_v21 = vmax.f32 %v5511_v17, 0.0  ;;  %v5513_v23 = vld [vmem:[#allocation2 + $0x18] sm:$0xff] }
 0x3b1   : > { %6737 = vmatpush3.bf16.msra.mxu1 %v7868_v33  ;;  %6716 = vmatprep.subr.bf16.mxu0 %v7869_v41  ;;  %v5512_v12 = vld [vmem:[#allocation2] sm:$0xff]  ;;  %v5515_v18 = vld [vmem:[#allocation2 + $0x8] sm:$0xff]  ;;  %v5521_v24 = vmax.f32 %v5513_v23, 0.0  ;;  %v5530_v27 = vpack.c.bf16 %v5526_v19, %v5522_v16 }
 0x3b2   : > { %6738 = vmatprep.subr.bf16.mxu1 %v7870_v38  ;;  %v5516_v13 = vld [vmem:[#allocation2 + $0x20] sm:$0xff]  ;;  %v5520_v11 = vmax.f32 %v5512_v12, 0.0  ;;  %v5523_v22 = vmax.f32 %v5515_v18, 0.0  ;;  %v5517_v25 = vld [vmem:[#allocation2 + $0x28] sm:$0xff] }
 0x3b3   : > { %v5524_v15 = vmax.f32 %v5516_v13, 0.0  ;;  %v5525_v26 = vmax.f32 %v5517_v25, 0.0  ;;  %5867 = vmatprep.mubr.bf16.mxu1 %v5530_v27  ;;  %v6671_v32 = vld [vmem:[%s8979_s4] ss:$0 sm:$0xff] }
 0x3b4   : > { %6717 = vmatpush3.bf16.msra.mxu0 %v7871_v49  ;;  %v5527_v28 = vpack.c.bf16 %v5523_v22, %v5519_v21 }
 0x3b5   : > { %6739 = vmatpush3.bf16.msra.mxu1 %v7872_v56  ;;  %6718 = vmatprep.subr.bf16.mxu0 %v7873_v63  ;;  %v5528_v20 = vpack.c.bf16 %v5524_v15, %v5520_v11  ;;  %v5529_v29 = vpack.c.bf16 %v5525_v26, %v5521_v24 }
 0x3b6   : > { %6740 = vmatprep.subr.bf16.mxu1 %v7874_v0 }
 0x3b7   : > { %5826 = vmatprep.mubr.bf16.mxu0 %v5528_v20 }
 0x3b8   : > { %6719 = vmatpush3.bf16.msra.mxu0 %v7875_v1 }
 0x3b9   : > { %6741 = vmatpush3.bf16.msra.mxu1 %v7876_v3  ;;  %6720 = vmatprep.subr.bf16.mxu0 %v7877_v4 }
 0x3ba   : > { %6742 = vmatprep.subr.bf16.mxu1 %v7878_v6 }
 0x3bc   : > { %6721 = vmatpush3.bf16.msra.mxu0 %v7879_v45 }
 0x3bd   : > { %6743 = vmatpush3.bf16.msra.mxu1 %v7880_v55  ;;  %6722 = vmatprep.subr.bf16.mxu0 %v7881_v62 }
 0x3be   : > { %6744 = vmatprep.subr.bf16.mxu1 %v7882_v52 }
 0x3c0   : > { %6723 = vmatpush3.bf16.msra.mxu0 %v7883_v61 }
 0x3c1   : > { %6745 = vmatpush3.bf16.msra.mxu1 %v7884_v2  ;;  %6724 = vmatprep.subr.bf16.mxu0 %v7885_v5 }
 0x3c2   : > { %6746 = vmatprep.subr.bf16.mxu1 %v7886_v7 }
 0x3c4   : > { %6725 = vmatpush3.bf16.msra.mxu0 %v7887_v9 }
 0x3c5   : > { %6747 = vmatpush3.bf16.msra.mxu1 %v7888_v10 }
 0x3c7   : > { %5827 = vmatmul.mubr.bf16.vlgmr.msra.gmra.mxu0 %v5527_v28 }
 0x3c8   : > { %5868 = vmatmul.mubr.bf16.vlgmr.msra.gmra.mxu1 %v5529_v29 }
 0x487   : > { %v6726_v30 = vpop.f32.mrf.mxu0 }
 0x488   : > { %v6748_v31 = vpop.f32.mrf.mxu1 }
 0x489   : > { %v6727_v34 = vpop.f32.mrf.mxu0 }
 0x48a   : > { %v6728_v35 = vadd.f32 %v6727_v34, %v6726_v30  ;;  %v6749_v36 = vpop.f32.mrf.mxu1 }
 0x48b   : > { %v6729_v37 = vpop.f32.mrf.mxu0  ;;  %v6750_v40 = vadd.f32 %v6749_v36, %v6748_v31 }
 0x48c   : > { %v5829_v39 = vadd.f32 %v6728_v35, %v6671_v32  ;;  %v6751_v42 = vpop.f32.mrf.mxu1 }
 0x48d   : > { %v6730_v43 = vpop.f32.mrf.mxu0 }
 0x48e   : > { %v5870_v44 = vadd.f32 %v6750_v40, %v5829_v39  ;;  %v6731_v46 = vadd.f32 %v6730_v43, %v6729_v37  ;;  %v6752_v47 = vpop.f32.mrf.mxu1 }
 0x48f   : > { %v6753_v50 = vadd.f32 %v6752_v47, %v6751_v42 }
 0x490   : > { %5876 = vst [vmem:[%s8980_s5] sm:$0xff] %v5870_v44  ;;  %v5832_v48 = vadd.f32 %v6731_v46, %v6671_v32 }
 0x492   : > { %v5873_v51 = vadd.f32 %v6753_v50, %v5832_v48 }
 0x494   : > { %5877 = vst [vmem:[%s8980_s5 + $0x8] sm:$0xff] %v5873_v51 }
 0x495 PF: > { %s15_s22 = sadd.s32 1, %s7927_s22   ;;  %s8981_s18 = smov %s7915_s19 }
 0x496   : > { %p12_p12 = scmp.ge.s32.totalorder %s15_s22, 4   ;;  %s8982_s19 = smov %s7995_s26 }
 0x497   : > { %s8983_s20 = smov %s7923_s21  ;;  %s8984_s21 = smov %s8986_s23 }
 0x498   :  { %14 = sbr.rel (!%p12_p12) target bundleno = 3 (0x3), region = 118 }

</bundles_post_ra>
